<compile_context>
chip_gen: v6e
topology: v6e:2x2x1
jax: 0.10.0
libtpu: 0.0.40
codegen_flags: <defaults>
</compile_context>

<pallas_src>
import jax
import jax.numpy as jnp
from jax.experimental import pallas as pl
from jax.experimental.pallas import tpu as pltpu


def _vq_kernel(z_ref, cbt_ref, hsq_ref, idx_ref):
    # z_ref:   (TN, D)            streamed chunk of flattened encoder outputs
    # cbt_ref: (D, K)              transposed codebook, VMEM-resident across grid steps
    # hsq_ref: (1, K)              precomputed 0.5 * ||e_k||^2 (f32)
    # idx_ref: (1, TN//128, 128)   int32 nearest-codebook index, lane-dense layout
    scores = jnp.dot(z_ref[...], cbt_ref[...],
                     preferred_element_type=jnp.float32) - hsq_ref[...]    # (TN, K) f32

    K = cbt_ref.shape[1]
    max_s = jnp.max(scores, axis=-1, keepdims=True)                        # (TN, 1)
    iota = jax.lax.broadcasted_iota(jnp.int32, scores.shape, 1)
    # First maximum of scores == first minimum of distances (torch tie-break).
    idx = jnp.min(jnp.where(scores == max_s, iota, K), axis=-1)            # (TN,)
    idx_ref[...] = idx.reshape(idx_ref.shape).astype(jnp.int32)


def _num_tensorcores():
    """Best-effort TensorCores-per-chip (2 on v7x, else 1)."""
    try:
        kind = (jax.devices()[0].device_kind or "").lower()
    except Exception:
        return 1
    return 2 if ("v7" in kind or "7x" in kind) else 1


def vq_embedding_forward(z_e_x, codebook, *, max_tile_n=2048,
                         compute_dtype=jnp.bfloat16):
    """VQEmbedding.forward: nearest-codebook indices of shape (B, H, W), int32."""
    B, D, H, W = z_e_x.shape
    K, D2 = codebook.shape
    assert D == D2
    N = B * H * W

    # glue: NCHW -> NHWC -> (N, D), cast once in the wrapper (half the HBM traffic).
    z_flat = jnp.transpose(z_e_x, (0, 2, 3, 1)).reshape(-1, D).astype(compute_dtype)

    # --- generation-aware tiling -------------------------------------------------
    two_cores = _num_tensorcores() >= 2
    n128 = pl.cdiv(N, 128) * 128
    # Only force >=2 grid steps when there are 2 TensorCores to use them (v7x);
    # on v5e/v6e a split is a pure serial loop that just adds per-step overhead.
    min_tiles = 2 if (two_cores and n128 >= 256) else 1
    num_tiles = max(min_tiles, pl.cdiv(n128, max_tile_n))
    if two_cores and num_tiles > 1 and num_tiles % 2 == 1:
        num_tiles += 1                       # even split across the 2 TensorCores
    tile_n = pl.cdiv(pl.cdiv(n128, num_tiles), 128) * 128
    n_pad = tile_n * num_tiles
    rows = tile_n // 128

    if n_pad != N:
        z_flat = jnp.pad(z_flat, ((0, n_pad - N), (0, 0)))

    # One-time wrapper work: weight-stationary (D, K) codebook layout + 0.5||e_k||^2.
    cb_f32 = codebook.astype(jnp.float32)
    cb_t = jnp.transpose(cb_f32).astype(compute_dtype)                 # (D, K)
    half_cb_sq = 0.5 * jnp.sum(cb_f32 * cb_f32, axis=1).reshape(1, K)  # f32

    itemsize = jnp.finfo(compute_dtype).bits // 8
    cost = pl.CostEstimate(
        flops=2 * n_pad * K * D,
        transcendentals=0,
        bytes_accessed=(n_pad * D + K * D) * itemsize + K * 4 + n_pad * 4)

    # NOTE: codebook / half_cb_sq have constant index_maps (fetched once, resident);
    # pl.Buffered(1) would drop their second pipeline buffer (~0.25 MiB) but is left
    # at the default for lowering compatibility.
    idx_tiles = pl.pallas_call(
        _vq_kernel,
        out_shape=jax.ShapeDtypeStruct((num_tiles, rows, 128), jnp.int32),
        grid_spec=pltpu.PrefetchScalarGridSpec(
            num_scalar_prefetch=0,
            grid=(num_tiles,),
            in_specs=[
                pl.BlockSpec((tile_n, D), lambda i: (i, 0)),   # streamed z rows
                pl.BlockSpec((D, K), lambda i: (0, 0)),        # resident codebook^T
                pl.BlockSpec((1, K), lambda i: (0, 0)),        # resident 0.5||e||^2
            ],
            out_specs=pl.BlockSpec((1, rows, 128), lambda i: (i, 0, 0)),
        ),
        compiler_params=pltpu.CompilerParams(
            dimension_semantics=("parallel",),
            vmem_limit_bytes=32 * 1024 * 1024),
        cost_estimate=cost,
    )(z_flat, cb_t, half_cb_sq)

    return idx_tiles.reshape(-1)[:N].reshape(B, H, W)


def _reference_vq(z_e_x, codebook):
    B, D, H, W = z_e_x.shape
    z = jnp.transpose(z_e_x, (0, 2, 3, 1)).reshape(-1, D).astype(jnp.float32)
    cb = codebook.astype(jnp.float32)
    dist = (jnp.sum(z * z, axis=1, keepdims=True)
            + jnp.sum(cb * cb, axis=1)[None, :]
            - 2.0 * z @ cb.T)
    return jnp.argmin(dist, axis=1).reshape(B, H, W).astype(jnp.int32)


if __name__ == "__main__":
    # Module defaults: num_clusters=512 codes of dim hidden_size=256; small spatial map.
    K, D = 512, 256
    B, H, W = 2, 16, 16

    key = jax.random.PRNGKey(0)
    k_emb, k_x = jax.random.split(key)
    codebook = jax.random.uniform(
        k_emb, (K, D), dtype=jnp.float32, minval=-1.0 / K, maxval=1.0 / K)
    z_e_x = jax.random.normal(k_x, (B, D, H, W), dtype=jnp.float32)  # NCHW like PyTorch

    ref = _reference_vq(z_e_x, codebook)

    # Exact-precision path: must match the f32 reference argmin.
    lat_f32 = jax.block_until_ready(
        vq_embedding_forward(z_e_x, codebook, compute_dtype=jnp.float32))
    assert lat_f32.shape == (B, H, W)
    assert bool(jnp.all(lat_f32 == ref))

    # Default fast path: bf16 MXU inputs, f32 accumulation.  Validate that every chosen
    # code attains the f32-optimal score up to bf16 quantization slack (near-ties may flip).
    latents = jax.block_until_ready(vq_embedding_forward(z_e_x, codebook))
    assert latents.shape == (B, H, W)
    z = jnp.transpose(z_e_x, (0, 2, 3, 1)).reshape(-1, D)
    scores = z @ codebook.T - 0.5 * jnp.sum(codebook * codebook, axis=1)[None, :]
    best = jnp.max(scores, axis=1)
    chosen = jnp.take_along_axis(scores, latents.reshape(-1, 1), axis=1)[:, 0]
    match_rate = float(jnp.mean(latents.reshape(-1) == ref.reshape(-1)))
    assert bool(jnp.all(best - chosen <= 5e-3)), match_rate
    assert match_rate >= 0.9, match_rate
    print("KERNEL_OK")
</pallas_src>

<mosaic_0001>
module attributes {stable_mosaic.version = 11 : i64} {
  func.func @_vq_kernel(%arg0: i32, %arg1: memref<512x256xf32, #tpu.memory_space<vmem>>, %arg2: memref<256x512xf32, #tpu.memory_space<vmem>>, %arg3: memref<1x512xf32, #tpu.memory_space<vmem>>, %arg4: memref<1x4x128xi32, #tpu.memory_space<vmem>>) attributes {dimension_semantics = [#tpu.dimension_semantics<parallel>], iteration_bounds = array<i64: 1>, scalar_prefetch = 0 : i64, scratch_operands = 0 : i64, tpu.core_type = #tpu.core_type<tc>, window_params = [{transform_indices = @transform_0, window_bounds = array<i64: 512, 256>}, {pipeline_mode = #tpu.pipeline_mode<synchronous>, transform_indices = @transform_1, window_bounds = array<i64: 256, 512>}, {pipeline_mode = #tpu.pipeline_mode<synchronous>, transform_indices = @transform_2, window_bounds = array<i64: 1, 512>}, {transform_indices = @transform_3, window_bounds = array<i64: 1, 4, 128>}]} {
    %c0 = arith.constant 0 : index
    %c0_0 = arith.constant 0 : index
    %0 = vector.load %arg1[%c0, %c0_0] : memref<512x256xf32, #tpu.memory_space<vmem>>, vector<512x256xf32>
    %c0_1 = arith.constant 0 : index
    %c0_2 = arith.constant 0 : index
    %1 = vector.load %arg2[%c0_1, %c0_2] : memref<256x512xf32, #tpu.memory_space<vmem>>, vector<256x512xf32>
    %cst = arith.constant dense<0.000000e+00> : vector<512x512xf32>
    %2 = tpu.matmul %0, %1, %cst {dimension_numbers = #tpu.dot_dimension_numbers<[1], [0], [0], [1], [0, 0, 1, 1], [], []>} : vector<512x256xf32>, vector<256x512xf32>, vector<512x512xf32> -> vector<512x512xf32>
    %c0_3 = arith.constant 0 : index
    %c0_4 = arith.constant 0 : index
    %3 = vector.load %arg3[%c0_3, %c0_4] : memref<1x512xf32, #tpu.memory_space<vmem>>, vector<1x512xf32>
    %4 = vector.broadcast %3 : vector<1x512xf32> to vector<512x512xf32>
    %5 = arith.subf %2, %4 : vector<512x512xf32>
    %cst_5 = arith.constant dense<0xFF800000> : vector<512xf32>
    %6 = vector.multi_reduction <maximumf>, %5, %cst_5 [1] : vector<512x512xf32> to vector<512xf32>
    %7 = vector.shape_cast %6 : vector<512xf32> to vector<512x1xf32>
    %8 = tpu.iota {dimensions = array<i32: 1>} : vector<512x512xi32>
    %9 = vector.broadcast %7 : vector<512x1xf32> to vector<512x512xf32>
    %10 = arith.cmpf oeq, %5, %9 : vector<512x512xf32>
    %c512_i32 = arith.constant 512 : i32
    %11 = vector.broadcast %c512_i32 : i32 to vector<512x512xi32>
    %12 = arith.select %10, %8, %11 : vector<512x512xi1>, vector<512x512xi32>
    %cst_6 = arith.constant dense<2147483647> : vector<512xi32>
    %13 = vector.multi_reduction <minsi>, %12, %cst_6 [1] : vector<512x512xi32> to vector<512xi32>
    %14 = vector.shape_cast %13 : vector<512xi32> to vector<1x4x128xi32>
    %c0_7 = arith.constant 0 : index
    %c0_8 = arith.constant 0 : index
    %c0_9 = arith.constant 0 : index
    %15 = vector.load %arg4[%c0_7, %c0_8, %c0_9] : memref<1x4x128xi32, #tpu.memory_space<vmem>>, vector<1x4x128xi32>
    tpu.vector_store %arg4[%c0_7, %c0_8, %c0_9], %14 {strides = array<i32>} : memref<1x4x128xi32, #tpu.memory_space<vmem>>, vector<1x4x128xi32>,
    return
  }
  func.func @transform_0(%arg0: i32) -> (i32, i32) {
    %c0_i32 = arith.constant 0 : i32
    %c0_i32_0 = arith.constant 0 : i32
    return %arg0, %c0_i32 : i32, i32
  }
  func.func @transform_1(%arg0: i32) -> (i32, i32) {
    %c0_i32 = arith.constant 0 : i32
    %c0_i32_0 = arith.constant 0 : i32
    %c0_i32_1 = arith.constant 0 : i32
    return %c0_i32, %c0_i32_0 : i32, i32
  }
  func.func @transform_2(%arg0: i32) -> (i32, i32) {
    %c0_i32 = arith.constant 0 : i32
    %c0_i32_0 = arith.constant 0 : i32
    %c0_i32_1 = arith.constant 0 : i32
    return %c0_i32, %c0_i32_0 : i32, i32
  }
  func.func @transform_3(%arg0: i32) -> (i32, i32, i32) {
    %c0_i32 = arith.constant 0 : i32
    %c0_i32_0 = arith.constant 0 : i32
    %c0_i32_1 = arith.constant 0 : i32
    return %arg0, %c0_i32, %c0_i32_0 : i32, i32, i32
  }
}

</mosaic_0001>

<bundles_post_ra>
// kernel: tpu_custom_call.1
= control target key start
LH: loop header
LB: loop body
LE: loop exit
PB: predicated region body
PF: predicated region fallthrough
CT: control target
= control target key end

     0   :  { %8 = vsyncpa [#allocation3], 0  ;;  %s7722_s0 = inlined_call_operand.hbm [shape: f32[512,256], index: 0, kind: input, shape index: {}]   ;;  %s7723_s1 = inlined_call_operand.hbm [shape: f32[256,512], index: 1, kind: input, shape index: {}]   ;;  %s7724_s2 = inlined_call_operand.hbm [shape: f32[1,512], index: 2, kind: input, shape index: {}]   ;;  %s7725_s3 = inlined_call_operand.hbm [shape: s32[1,4,128], index: 3, kind: output, shape index: {}]  }
   0x1   :  { %9 = vsyncpa [#allocation6], 0 }
   0x2   :  { %10 = vsyncpa [#allocation4], 0  ;;  %s4066_s12 = smov [#allocation5]  }
   0x3   :  { %s28_s13 = sshll.u32 %s4066_s12, 4  ;;  %s29_s13 = int_to_ptr.vmem [resolvable:$true] %s28_s13 }
   0x4   :  { %s3988_s14 = scalar_lea.vmem %s29_s13, 16384  ;;  %p3993_p1 = scmp.lt.s32.totalorder %s29_s13, %s29_s13 }
   0x5   :  { %p3989_p0 = scmp.ne.s32.totalorder %s29_s13, %s3988_s14  ;;  %p3994_p2 = scmp.lt.s32.totalorder %s3988_s14, %s3988_s14 }
   0x7   :  { %p3995_p3 = por %p3994_p2, %p3993_p1 }
   0x9   :  { %p3996_p4 = pnand %p3995_p3, %p3989_p0 }
   0xb   :  { %3999 = shalt.err (!%p3996_p4)
}
   0xc   :  { %s4067_s15 = smov 512   ;;  %s4068_s16 = smov 32  }
   0xd   :  { %34 = dma.hbm_to_vmem [thread:$0]  %s7723_s1, 16384, %s29_s13, [#allocation6], %s4067_s15, %s4067_s15, %s4068_s16  }
   0xe   :  { %s4069_s19 = smov [#allocation2]  }
   0xf   :  { %s16_s20 = sshll.u32 %s4069_s19, 4  ;;  %s17_s20 = int_to_ptr.vmem [resolvable:$true] %s16_s20 }
  0x10   :  { %s4008_s21 = scalar_lea.vmem %s17_s20, 16384  ;;  %p4013_p6 = scmp.lt.s32.totalorder %s17_s20, %s17_s20 }
  0x11   :  { %p4009_p5 = scmp.ne.s32.totalorder %s17_s20, %s4008_s21  ;;  %p4014_p7 = scmp.lt.s32.totalorder %s4008_s21, %s4008_s21 }
  0x13   :  { %p4015_p8 = por %p4014_p7, %p4013_p6 }
  0x15   :  { %p4016_p9 = pnand %p4015_p8, %p4009_p5 }
  0x17   :  { %4019 = shalt.err (!%p4016_p9)
}
  0x18   :  { %s4070_s22 = smov 256   ;;  %s4071_s23 = smov 16  }
  0x19   :  { %22 = dma.hbm_to_vmem [thread:$0]  %s7722_s0, 16384, %s17_s20, [#allocation3], %s4070_s22, %s4070_s22, %s4071_s23  }
  0x1a   :  { %s4072_s26 = smov [#allocation7]  }
  0x1b   :  { %s41_s27 = sshll.u32 %s4072_s26, 4  ;;  %s42_s27 = int_to_ptr.vmem [resolvable:$true] %s41_s27 }
  0x1c   :  { %s4028_s1 = scalar_lea.vmem %s42_s27, 64  ;;  %p4033_p11 = scmp.lt.s32.totalorder %s42_s27, %s42_s27 }
  0x1d   :  { %p4029_p10 = scmp.ne.s32.totalorder %s42_s27, %s4028_s1  ;;  %p4034_p12 = scmp.lt.s32.totalorder %s4028_s1, %s4028_s1 }
  0x1f   :  { %p4035_p13 = por %p4034_p12, %p4033_p11 }
  0x21   :  { %p4036_p0 = pnand %p4035_p13, %p4029_p10 }
  0x23   :  { %4039 = shalt.err (!%p4036_p0)
}
  0x24   :  { %44 = dma.hbm_to_vmem [thread:$0]  %s7724_s2, 64, %s42_s27, [#allocation6]  }
  0x25   :  { %4060 = dma.done.wait [#allocation3], 16384  }
  0x26   :  { %4061 = vsyncadd [#allocation3], 4294950912 }
  0x27   :  { %4062 = dma.done.wait [#allocation6], 16448  }
  0x28   :  { %4063 = vsyncadd [#allocation6], 4294950848  ;;  %v243_v0 = vld [vmem:[#allocation5 + $0x1e8] sm:$0xff]  ;;  %v242_v1 = vld [vmem:[#allocation5 + $0x1e0] sm:$0xff]  ;;  %s4073_s0 = smov [#allocation8]  }
  0x29   :  { %v239_v2 = vld [vmem:[#allocation5 + $0x1c8] sm:$0xff]  ;;  %310 = vmatprep.subr.mxu0 %v243_v0  ;;  %v245_v3 = vld [vmem:[#allocation5 + $0x1f8] sm:$0xff]  ;;  %v238_v4 = vld [vmem:[#allocation5 + $0x1c0] sm:$0xff]  ;;  %s3962_s2 = sshll.u32 %s4073_s0, 4  ;;  %s3963_s2 = int_to_ptr.vmem [resolvable:$true] %s3962_s2 }
  0x2a   :  { %v244_v5 = vld [vmem:[#allocation5 + $0x1f0] sm:$0xff]  ;;  %311 = vmatpush1.msra.mxu0 %v242_v1  ;;  %759 = vmatprep.subr.mxu1 %v245_v3  ;;  %v235_v6 = vld [vmem:[#allocation5 + $0x1a8] sm:$0xff]  ;;  %v241_v7 = vld [vmem:[#allocation5 + $0x1d8] sm:$0xff]  ;;  %s4040_s30 = scalar_lea.vmem %s3963_s2, 64  ;;  %p4045_p2 = scmp.lt.s32.totalorder %s3963_s2, %s3963_s2 }
  0x2b   :  { %312 = vmatprep.subr.mxu0 %v239_v2  ;;  %760 = vmatpush1.msra.mxu1 %v244_v5  ;;  %v234_v8 = vld [vmem:[#allocation5 + $0x1a0] sm:$0xff]  ;;  %v240_v9 = vld [vmem:[#allocation5 + $0x1d0] sm:$0xff]  ;;  %v237_v10 = vld [vmem:[#allocation5 + $0x1b8] sm:$0xff]  ;;  %p4041_p1 = scmp.ne.s32.totalorder %s3963_s2, %s4040_s30  ;;  %p4046_p3 = scmp.lt.s32.totalorder %s4040_s30, %s4040_s30 }
  0x2c   :  { %313 = vmatpush1.msra.mxu0 %v238_v4  ;;  %761 = vmatprep.subr.mxu1 %v241_v7  ;;  %v231_v11 = vld [vmem:[#allocation5 + $0x188] sm:$0xff]  ;;  %v236_v12 = vld [vmem:[#allocation5 + $0x1b0] sm:$0xff]  ;;  %v230_v13 = vld [vmem:[#allocation5 + $0x180] sm:$0xff] }
  0x2d   :  { %314 = vmatprep.subr.mxu0 %v235_v6  ;;  %762 = vmatpush1.msra.mxu1 %v240_v9  ;;  %v233_v14 = vld [vmem:[#allocation5 + $0x198] sm:$0xff]  ;;  %v227_v15 = vld [vmem:[#allocation5 + $0x168] sm:$0xff]  ;;  %v232_v16 = vld [vmem:[#allocation5 + $0x190] sm:$0xff]  ;;  %p4047_p4 = por %p4046_p3, %p4045_p2 }
  0x2e   :  { %315 = vmatpush1.msra.mxu0 %v234_v8  ;;  %763 = vmatprep.subr.mxu1 %v237_v10  ;;  %v226_v17 = vld [vmem:[#allocation5 + $0x160] sm:$0xff]  ;;  %v229_v18 = vld [vmem:[#allocation5 + $0x178] sm:$0xff]  ;;  %v223_v19 = vld [vmem:[#allocation5 + $0x148] sm:$0xff] }
  0x2f   :  { %316 = vmatprep.subr.mxu0 %v231_v11  ;;  %764 = vmatpush1.msra.mxu1 %v236_v12  ;;  %v228_v20 = vld [vmem:[#allocation5 + $0x170] sm:$0xff]  ;;  %v222_v21 = vld [vmem:[#allocation5 + $0x140] sm:$0xff]  ;;  %v225_v22 = vld [vmem:[#allocation5 + $0x158] sm:$0xff]  ;;  %p4048_p5 = pnand %p4047_p4, %p4041_p1 }
  0x30   :  { %317 = vmatpush1.msra.mxu0 %v230_v13  ;;  %765 = vmatprep.subr.mxu1 %v233_v14  ;;  %v219_v23 = vld [vmem:[#allocation5 + $0x128] sm:$0xff]  ;;  %v224_v24 = vld [vmem:[#allocation5 + $0x150] sm:$0xff]  ;;  %v218_v25 = vld [vmem:[#allocation5 + $0x120] sm:$0xff] }
  0x31   :  { %318 = vmatprep.subr.mxu0 %v227_v15  ;;  %766 = vmatpush1.msra.mxu1 %v232_v16  ;;  %v221_v26 = vld [vmem:[#allocation5 + $0x138] sm:$0xff]  ;;  %v215_v27 = vld [vmem:[#allocation5 + $0x108] sm:$0xff]  ;;  %v220_v28 = vld [vmem:[#allocation5 + $0x130] sm:$0xff] }
  0x32   :  { %319 = vmatpush1.msra.mxu0 %v226_v17  ;;  %767 = vmatprep.subr.mxu1 %v229_v18  ;;  %v214_v29 = vld [vmem:[#allocation5 + $0x100] sm:$0xff]  ;;  %v217_v30 = vld [vmem:[#allocation5 + $0x118] sm:$0xff]  ;;  %v211_v31 = vld [vmem:[#allocation5 + $0xe8] sm:$0xff] }
  0x33   :  { %320 = vmatprep.subr.mxu0 %v223_v19  ;;  %768 = vmatpush1.msra.mxu1 %v228_v20  ;;  %v216_v32 = vld [vmem:[#allocation5 + $0x110] sm:$0xff]  ;;  %v210_v33 = vld [vmem:[#allocation5 + $0xe0] sm:$0xff]  ;;  %v213_v34 = vld [vmem:[#allocation5 + $0xf8] sm:$0xff] }
  0x34   :  { %321 = vmatpush1.msra.mxu0 %v222_v21  ;;  %769 = vmatprep.subr.mxu1 %v225_v22  ;;  %v207_v35 = vld [vmem:[#allocation5 + $0xc8] sm:$0xff]  ;;  %v212_v36 = vld [vmem:[#allocation5 + $0xf0] sm:$0xff]  ;;  %v206_v37 = vld [vmem:[#allocation5 + $0xc0] sm:$0xff] }
  0x35   :  { %322 = vmatprep.subr.mxu0 %v219_v23  ;;  %770 = vmatpush1.msra.mxu1 %v224_v24  ;;  %v209_v38 = vld [vmem:[#allocation5 + $0xd8] sm:$0xff]  ;;  %v203_v39 = vld [vmem:[#allocation5 + $0xa8] sm:$0xff]  ;;  %v208_v40 = vld [vmem:[#allocation5 + $0xd0] sm:$0xff] }
  0x36   :  { %323 = vmatpush1.msra.mxu0 %v218_v25  ;;  %771 = vmatprep.subr.mxu1 %v221_v26  ;;  %v202_v41 = vld [vmem:[#allocation5 + $0xa0] sm:$0xff]  ;;  %v205_v42 = vld [vmem:[#allocation5 + $0xb8] sm:$0xff]  ;;  %v199_v43 = vld [vmem:[#allocation5 + $0x88] sm:$0xff] }
  0x37   :  { %324 = vmatprep.subr.mxu0 %v215_v27  ;;  %772 = vmatpush1.msra.mxu1 %v220_v28  ;;  %v204_v44 = vld [vmem:[#allocation5 + $0xb0] sm:$0xff]  ;;  %v198_v45 = vld [vmem:[#allocation5 + $0x80] sm:$0xff]  ;;  %v201_v46 = vld [vmem:[#allocation5 + $0x98] sm:$0xff] }
  0x38   :  { %325 = vmatpush1.msra.mxu0 %v214_v29  ;;  %773 = vmatprep.subr.mxu1 %v217_v30  ;;  %v195_v47 = vld [vmem:[#allocation5 + $0x68] sm:$0xff]  ;;  %v200_v48 = vld [vmem:[#allocation5 + $0x90] sm:$0xff]  ;;  %v194_v49 = vld [vmem:[#allocation5 + $0x60] sm:$0xff] }
  0x39   :  { %326 = vmatprep.subr.mxu0 %v211_v31  ;;  %774 = vmatpush1.msra.mxu1 %v216_v32  ;;  %v197_v50 = vld [vmem:[#allocation5 + $0x78] sm:$0xff]  ;;  %v191_v51 = vld [vmem:[#allocation5 + $0x48] sm:$0xff]  ;;  %v196_v52 = vld [vmem:[#allocation5 + $0x70] sm:$0xff] }
  0x3a   :  { %327 = vmatpush1.msra.mxu0 %v210_v33  ;;  %775 = vmatprep.subr.mxu1 %v213_v34  ;;  %v190_v53 = vld [vmem:[#allocation5 + $0x40] sm:$0xff]  ;;  %v193_v54 = vld [vmem:[#allocation5 + $0x58] sm:$0xff]  ;;  %v187_v55 = vld [vmem:[#allocation5 + $0x28] sm:$0xff] }
  0x3b   :  { %328 = vmatprep.subr.mxu0 %v207_v35  ;;  %776 = vmatpush1.msra.mxu1 %v212_v36  ;;  %v192_v56 = vld [vmem:[#allocation5 + $0x50] sm:$0xff]  ;;  %v186_v57 = vld [vmem:[#allocation5 + $0x20] sm:$0xff]  ;;  %v189_v58 = vld [vmem:[#allocation5 + $0x38] sm:$0xff] }
  0x3c   :  { %329 = vmatpush1.msra.mxu0 %v206_v37  ;;  %777 = vmatprep.subr.mxu1 %v209_v38  ;;  %v183_v59 = vld [vmem:[#allocation5 + $0x8] sm:$0xff]  ;;  %v188_v60 = vld [vmem:[#allocation5 + $0x30] sm:$0xff]  ;;  %v182_v61 = vld [vmem:[#allocation5] sm:$0xff] }
  0x3d   :  { %330 = vmatprep.subr.mxu0 %v203_v39  ;;  %778 = vmatpush1.msra.mxu1 %v208_v40  ;;  %v185_v62 = vld [vmem:[#allocation5 + $0x18] sm:$0xff]  ;;  %v307_v63 = vld [vmem:[#allocation5 + $0x3e8] sm:$0xff]  ;;  %v184_v0 = vld [vmem:[#allocation5 + $0x10] sm:$0xff] }
  0x3e   :  { %331 = vmatpush1.msra.mxu0 %v202_v41  ;;  %779 = vmatprep.subr.mxu1 %v205_v42  ;;  %v306_v1 = vld [vmem:[#allocation5 + $0x3e0] sm:$0xff]  ;;  %v309_v2 = vld [vmem:[#allocation5 + $0x3f8] sm:$0xff]  ;;  %v303_v3 = vld [vmem:[#allocation5 + $0x3c8] sm:$0xff] }
  0x3f   :  { %332 = vmatprep.subr.mxu0 %v199_v43  ;;  %780 = vmatpush1.msra.mxu1 %v204_v44  ;;  %v308_v4 = vld [vmem:[#allocation5 + $0x3f0] sm:$0xff]  ;;  %v302_v5 = vld [vmem:[#allocation5 + $0x3c0] sm:$0xff]  ;;  %v305_v6 = vld [vmem:[#allocation5 + $0x3d8] sm:$0xff] }
  0x40   :  { %333 = vmatpush1.msra.mxu0 %v198_v45  ;;  %781 = vmatprep.subr.mxu1 %v201_v46  ;;  %v299_v7 = vld [vmem:[#allocation5 + $0x3a8] sm:$0xff]  ;;  %v304_v8 = vld [vmem:[#allocation5 + $0x3d0] sm:$0xff]  ;;  %v298_v9 = vld [vmem:[#allocation5 + $0x3a0] sm:$0xff] }
  0x41   :  { %334 = vmatprep.subr.mxu0 %v195_v47  ;;  %782 = vmatpush1.msra.mxu1 %v200_v48  ;;  %v301_v10 = vld [vmem:[#allocation5 + $0x3b8] sm:$0xff]  ;;  %v295_v11 = vld [vmem:[#allocation5 + $0x388] sm:$0xff]  ;;  %v300_v12 = vld [vmem:[#allocation5 + $0x3b0] sm:$0xff] }
  0x42   :  { %335 = vmatpush1.msra.mxu0 %v194_v49  ;;  %783 = vmatprep.subr.mxu1 %v197_v50  ;;  %v294_v13 = vld [vmem:[#allocation5 + $0x380] sm:$0xff]  ;;  %v297_v14 = vld [vmem:[#allocation5 + $0x398] sm:$0xff]  ;;  %v291_v15 = vld [vmem:[#allocation5 + $0x368] sm:$0xff] }
  0x43   :  { %336 = vmatprep.subr.mxu0 %v191_v51  ;;  %784 = vmatpush1.msra.mxu1 %v196_v52  ;;  %v296_v16 = vld [vmem:[#allocation5 + $0x390] sm:$0xff]  ;;  %v290_v17 = vld [vmem:[#allocation5 + $0x360] sm:$0xff]  ;;  %v293_v18 = vld [vmem:[#allocation5 + $0x378] sm:$0xff] }
  0x44   :  { %337 = vmatpush1.msra.mxu0 %v190_v53  ;;  %785 = vmatprep.subr.mxu1 %v193_v54  ;;  %v287_v19 = vld [vmem:[#allocation5 + $0x348] sm:$0xff]  ;;  %v292_v20 = vld [vmem:[#allocation5 + $0x370] sm:$0xff]  ;;  %v286_v21 = vld [vmem:[#allocation5 + $0x340] sm:$0xff] }
  0x45   :  { %338 = vmatprep.subr.mxu0 %v187_v55  ;;  %786 = vmatpush1.msra.mxu1 %v192_v56  ;;  %v289_v22 = vld [vmem:[#allocation5 + $0x358] sm:$0xff]  ;;  %v283_v23 = vld [vmem:[#allocation5 + $0x328] sm:$0xff]  ;;  %v288_v24 = vld [vmem:[#allocation5 + $0x350] sm:$0xff] }
  0x46   :  { %339 = vmatpush1.msra.mxu0 %v186_v57  ;;  %787 = vmatprep.subr.mxu1 %v189_v58  ;;  %v282_v25 = vld [vmem:[#allocation5 + $0x320] sm:$0xff]  ;;  %v285_v26 = vld [vmem:[#allocation5 + $0x338] sm:$0xff]  ;;  %v279_v27 = vld [vmem:[#allocation5 + $0x308] sm:$0xff] }
  0x47   :  { %340 = vmatprep.subr.mxu0 %v183_v59  ;;  %788 = vmatpush1.msra.mxu1 %v188_v60  ;;  %v284_v28 = vld [vmem:[#allocation5 + $0x330] sm:$0xff]  ;;  %v278_v29 = vld [vmem:[#allocation5 + $0x300] sm:$0xff]  ;;  %v281_v30 = vld [vmem:[#allocation5 + $0x318] sm:$0xff] }
  0x48   :  { %341 = vmatpush1.msra.mxu0 %v182_v61  ;;  %789 = vmatprep.subr.mxu1 %v185_v62  ;;  %v275_v31 = vld [vmem:[#allocation5 + $0x2e8] sm:$0xff]  ;;  %v280_v32 = vld [vmem:[#allocation5 + $0x310] sm:$0xff]  ;;  %v274_v33 = vld [vmem:[#allocation5 + $0x2e0] sm:$0xff] }
  0x49   :  { %342 = vmatprep.subr.mxu0 %v307_v63  ;;  %790 = vmatpush1.msra.mxu1 %v184_v0  ;;  %v277_v34 = vld [vmem:[#allocation5 + $0x2f8] sm:$0xff]  ;;  %v271_v35 = vld [vmem:[#allocation5 + $0x2c8] sm:$0xff]  ;;  %v276_v36 = vld [vmem:[#allocation5 + $0x2f0] sm:$0xff] }
  0x4a   :  { %343 = vmatpush2.msra.mxu0 %v306_v1  ;;  %791 = vmatprep.subr.mxu1 %v309_v2  ;;  %v270_v37 = vld [vmem:[#allocation5 + $0x2c0] sm:$0xff]  ;;  %v273_v38 = vld [vmem:[#allocation5 + $0x2d8] sm:$0xff]  ;;  %v267_v39 = vld [vmem:[#allocation5 + $0x2a8] sm:$0xff] }
  0x4b   :  { %344 = vmatprep.subr.mxu0 %v303_v3  ;;  %792 = vmatpush2.msra.mxu1 %v308_v4  ;;  %v272_v40 = vld [vmem:[#allocation5 + $0x2d0] sm:$0xff]  ;;  %v266_v41 = vld [vmem:[#allocation5 + $0x2a0] sm:$0xff]  ;;  %v269_v42 = vld [vmem:[#allocation5 + $0x2b8] sm:$0xff] }
  0x4c   :  { %345 = vmatpush2.msra.mxu0 %v302_v5  ;;  %793 = vmatprep.subr.mxu1 %v305_v6  ;;  %v263_v43 = vld [vmem:[#allocation5 + $0x288] sm:$0xff]  ;;  %v268_v44 = vld [vmem:[#allocation5 + $0x2b0] sm:$0xff]  ;;  %v262_v45 = vld [vmem:[#allocation5 + $0x280] sm:$0xff] }
  0x4d   :  { %346 = vmatprep.subr.mxu0 %v299_v7  ;;  %794 = vmatpush2.msra.mxu1 %v304_v8  ;;  %v265_v46 = vld [vmem:[#allocation5 + $0x298] sm:$0xff]  ;;  %v259_v47 = vld [vmem:[#allocation5 + $0x268] sm:$0xff]  ;;  %v264_v48 = vld [vmem:[#allocation5 + $0x290] sm:$0xff] }
  0x4e   :  { %347 = vmatpush2.msra.mxu0 %v298_v9  ;;  %795 = vmatprep.subr.mxu1 %v301_v10  ;;  %v258_v49 = vld [vmem:[#allocation5 + $0x260] sm:$0xff]  ;;  %v261_v50 = vld [vmem:[#allocation5 + $0x278] sm:$0xff]  ;;  %v255_v51 = vld [vmem:[#allocation5 + $0x248] sm:$0xff] }
  0x4f   :  { %348 = vmatprep.subr.mxu0 %v295_v11  ;;  %796 = vmatpush2.msra.mxu1 %v300_v12  ;;  %v260_v52 = vld [vmem:[#allocation5 + $0x270] sm:$0xff]  ;;  %v254_v53 = vld [vmem:[#allocation5 + $0x240] sm:$0xff]  ;;  %v257_v54 = vld [vmem:[#allocation5 + $0x258] sm:$0xff] }
  0x50   :  { %349 = vmatpush2.msra.mxu0 %v294_v13  ;;  %797 = vmatprep.subr.mxu1 %v297_v14  ;;  %v251_v55 = vld [vmem:[#allocation5 + $0x228] sm:$0xff]  ;;  %v256_v56 = vld [vmem:[#allocation5 + $0x250] sm:$0xff]  ;;  %v250_v57 = vld [vmem:[#allocation5 + $0x220] sm:$0xff] }
  0x51   :  { %350 = vmatprep.subr.mxu0 %v291_v15  ;;  %798 = vmatpush2.msra.mxu1 %v296_v16  ;;  %v253_v58 = vld [vmem:[#allocation5 + $0x238] sm:$0xff]  ;;  %v247_v59 = vld [vmem:[#allocation5 + $0x208] sm:$0xff]  ;;  %v246_v61 = vld [vmem:[#allocation5 + $0x200] sm:$0xff] }
  0x52   :  { %351 = vmatpush2.msra.mxu0 %v290_v17  ;;  %799 = vmatprep.subr.mxu1 %v293_v18  ;;  %v55_v60 = vld [vmem:[#allocation2 + $0x8] sm:$0xff]  ;;  %v252_v62 = vld [vmem:[#allocation5 + $0x230] sm:$0xff]  ;;  %v54_v63 = vld [vmem:[#allocation2] sm:$0xff] }
  0x53   :  { %352 = vmatprep.subr.mxu0 %v287_v19  ;;  %800 = vmatpush2.msra.mxu1 %v292_v20  ;;  %v249_v0 = vld [vmem:[#allocation5 + $0x218] sm:$0xff]  ;;  %v248_v1 = vld [vmem:[#allocation5 + $0x210] sm:$0xff]  ;;  %v59_v4 = vld [vmem:[#allocation2 + $0x28] sm:$0xff] }
  0x54   :  { %353 = vmatpush2.msra.mxu0 %v286_v21  ;;  %801 = vmatprep.subr.mxu1 %v289_v22  ;;  %v57_v2 = vld [vmem:[#allocation2 + $0x18] sm:$0xff]  ;;  %v56_v3 = vld [vmem:[#allocation2 + $0x10] sm:$0xff]  ;;  %v58_v5 = vld [vmem:[#allocation2 + $0x20] sm:$0xff] }
  0x55   :  { %354 = vmatprep.subr.mxu0 %v283_v23  ;;  %802 = vmatpush2.msra.mxu1 %v288_v24  ;;  %v61_v6 = vld [vmem:[#allocation2 + $0x38] sm:$0xff]  ;;  %v60_v7 = vld [vmem:[#allocation2 + $0x30] sm:$0xff]  ;;  %v63_v8 = vld [vmem:[#allocation2 + $0x48] sm:$0xff] }
  0x56   :  { %355 = vmatpush2.msra.mxu0 %v282_v25  ;;  %803 = vmatprep.subr.mxu1 %v285_v26  ;;  %v62_v9 = vld [vmem:[#allocation2 + $0x40] sm:$0xff]  ;;  %v65_v10 = vld [vmem:[#allocation2 + $0x58] sm:$0xff]  ;;  %v64_v11 = vld [vmem:[#allocation2 + $0x50] sm:$0xff] }
  0x57   :  { %356 = vmatprep.subr.mxu0 %v279_v27  ;;  %804 = vmatpush2.msra.mxu1 %v284_v28  ;;  %v67_v12 = vld [vmem:[#allocation2 + $0x68] sm:$0xff]  ;;  %v66_v13 = vld [vmem:[#allocation2 + $0x60] sm:$0xff]  ;;  %v69_v14 = vld [vmem:[#allocation2 + $0x78] sm:$0xff] }
  0x58   :  { %357 = vmatpush2.msra.mxu0 %v278_v29  ;;  %805 = vmatprep.subr.mxu1 %v281_v30  ;;  %v68_v15 = vld [vmem:[#allocation2 + $0x70] sm:$0xff]  ;;  %v71_v16 = vld [vmem:[#allocation2 + $0x88] sm:$0xff]  ;;  %v70_v17 = vld [vmem:[#allocation2 + $0x80] sm:$0xff] }
  0x59   :  { %358 = vmatprep.subr.mxu0 %v275_v31  ;;  %806 = vmatpush2.msra.mxu1 %v280_v32  ;;  %v73_v18 = vld [vmem:[#allocation2 + $0x98] sm:$0xff]  ;;  %v72_v19 = vld [vmem:[#allocation2 + $0x90] sm:$0xff]  ;;  %v75_v20 = vld [vmem:[#allocation2 + $0xa8] sm:$0xff] }
  0x5a   :  { %359 = vmatpush2.msra.mxu0 %v274_v33  ;;  %807 = vmatprep.subr.mxu1 %v277_v34  ;;  %v74_v21 = vld [vmem:[#allocation2 + $0xa0] sm:$0xff]  ;;  %v77_v22 = vld [vmem:[#allocation2 + $0xb8] sm:$0xff]  ;;  %v76_v23 = vld [vmem:[#allocation2 + $0xb0] sm:$0xff] }
  0x5b   :  { %360 = vmatprep.subr.mxu0 %v271_v35  ;;  %808 = vmatpush2.msra.mxu1 %v276_v36  ;;  %v79_v24 = vld [vmem:[#allocation2 + $0xc8] sm:$0xff]  ;;  %v78_v25 = vld [vmem:[#allocation2 + $0xc0] sm:$0xff]  ;;  %v81_v26 = vld [vmem:[#allocation2 + $0xd8] sm:$0xff] }
  0x5c   :  { %361 = vmatpush2.msra.mxu0 %v270_v37  ;;  %809 = vmatprep.subr.mxu1 %v273_v38  ;;  %v80_v27 = vld [vmem:[#allocation2 + $0xd0] sm:$0xff]  ;;  %v83_v28 = vld [vmem:[#allocation2 + $0xe8] sm:$0xff]  ;;  %v82_v29 = vld [vmem:[#allocation2 + $0xe0] sm:$0xff] }
  0x5d   :  { %362 = vmatprep.subr.mxu0 %v267_v39  ;;  %810 = vmatpush2.msra.mxu1 %v272_v40  ;;  %v85_v30 = vld [vmem:[#allocation2 + $0xf8] sm:$0xff]  ;;  %v84_v31 = vld [vmem:[#allocation2 + $0xf0] sm:$0xff]  ;;  %v87_v32 = vld [vmem:[#allocation2 + $0x108] sm:$0xff] }
  0x5e   :  { %363 = vmatpush2.msra.mxu0 %v266_v41  ;;  %811 = vmatprep.subr.mxu1 %v269_v42  ;;  %v86_v33 = vld [vmem:[#allocation2 + $0x100] sm:$0xff]  ;;  %v89_v34 = vld [vmem:[#allocation2 + $0x118] sm:$0xff]  ;;  %v88_v35 = vld [vmem:[#allocation2 + $0x110] sm:$0xff] }
  0x5f   :  { %364 = vmatprep.subr.mxu0 %v263_v43  ;;  %812 = vmatpush2.msra.mxu1 %v268_v44  ;;  %v91_v36 = vld [vmem:[#allocation2 + $0x128] sm:$0xff]  ;;  %v90_v37 = vld [vmem:[#allocation2 + $0x120] sm:$0xff]  ;;  %v93_v38 = vld [vmem:[#allocation2 + $0x138] sm:$0xff] }
  0x60   :  { %365 = vmatpush2.msra.mxu0 %v262_v45  ;;  %813 = vmatprep.subr.mxu1 %v265_v46  ;;  %v92_v39 = vld [vmem:[#allocation2 + $0x130] sm:$0xff]  ;;  %v95_v40 = vld [vmem:[#allocation2 + $0x148] sm:$0xff]  ;;  %v94_v41 = vld [vmem:[#allocation2 + $0x140] sm:$0xff] }
  0x61   :  { %366 = vmatprep.subr.mxu0 %v259_v47  ;;  %814 = vmatpush2.msra.mxu1 %v264_v48  ;;  %v97_v42 = vld [vmem:[#allocation2 + $0x158] sm:$0xff]  ;;  %v96_v43 = vld [vmem:[#allocation2 + $0x150] sm:$0xff]  ;;  %v99_v44 = vld [vmem:[#allocation2 + $0x168] sm:$0xff] }
  0x62   :  { %367 = vmatpush2.msra.mxu0 %v258_v49  ;;  %815 = vmatprep.subr.mxu1 %v261_v50  ;;  %v98_v45 = vld [vmem:[#allocation2 + $0x160] sm:$0xff]  ;;  %v101_v46 = vld [vmem:[#allocation2 + $0x178] sm:$0xff]  ;;  %v100_v47 = vld [vmem:[#allocation2 + $0x170] sm:$0xff] }
  0x63   :  { %368 = vmatprep.subr.mxu0 %v255_v51  ;;  %816 = vmatpush2.msra.mxu1 %v260_v52  ;;  %v103_v48 = vld [vmem:[#allocation2 + $0x188] sm:$0xff]  ;;  %v102_v49 = vld [vmem:[#allocation2 + $0x180] sm:$0xff]  ;;  %v105_v50 = vld [vmem:[#allocation2 + $0x198] sm:$0xff] }
  0x64   :  { %369 = vmatpush2.msra.mxu0 %v254_v53  ;;  %817 = vmatprep.subr.mxu1 %v257_v54  ;;  %v104_v51 = vld [vmem:[#allocation2 + $0x190] sm:$0xff]  ;;  %v107_v52 = vld [vmem:[#allocation2 + $0x1a8] sm:$0xff]  ;;  %v106_v53 = vld [vmem:[#allocation2 + $0x1a0] sm:$0xff] }
  0x65   :  { %370 = vmatprep.subr.mxu0 %v251_v55  ;;  %818 = vmatpush2.msra.mxu1 %v256_v56  ;;  %v109_v54 = vld [vmem:[#allocation2 + $0x1b8] sm:$0xff]  ;;  %v108_v55 = vld [vmem:[#allocation2 + $0x1b0] sm:$0xff]  ;;  %v111_v56 = vld [vmem:[#allocation2 + $0x1c8] sm:$0xff] }
  0x66   :  { %371 = vmatpush2.msra.mxu0 %v250_v57  ;;  %819 = vmatprep.subr.mxu1 %v253_v58  ;;  %v110_v57 = vld [vmem:[#allocation2 + $0x1c0] sm:$0xff]  ;;  %v113_v58 = vld [vmem:[#allocation2 + $0x1d8] sm:$0xff] }
  0x67   :  { %372 = vmatprep.subr.mxu0 %v247_v59  ;;  %374 = vmatprep.mubr.f32.mxu0 %v55_v60  ;;  %v112_v59 = vld [vmem:[#allocation2 + $0x1d0] sm:$0xff] }
  0x68   :  { %373 = vmatpush2.msra.mxu0 %v246_v61  ;;  %820 = vmatpush2.msra.mxu1 %v252_v62  ;;  %v114_v61 = vld [vmem:[#allocation2 + $0x1e0] sm:$0xff]  ;;  %v117_v62 = vld [vmem:[#allocation2 + $0x1f8] sm:$0xff] }
  0x69   :  { %375 = vmatmul.mubr.f32.vlgmr.msra.gmra.mxu0 %v54_v63  ;;  %821 = vmatprep.subr.mxu1 %v249_v0  ;;  %v119_v0 = vld [vmem:[#allocation2 + $0x208] sm:$0xff] }
  0x6a   :  { %822 = vmatpush2.msra.mxu1 %v248_v1  ;;  %823 = vmatprep.mubr.f32.mxu1 %v55_v60  ;;  %v115_v60 = vld [vmem:[#allocation2 + $0x1e8] sm:$0xff]  ;;  %v118_v1 = vld [vmem:[#allocation2 + $0x200] sm:$0xff] }
  0x6b   :  { %824 = vmatmul.mubr.f32.vlgmr.msra.gmra.mxu1 %v54_v63  ;;  %380 = vmatprep.mubr.f32.mxu0 %v57_v2  ;;  %v116_v63 = vld [vmem:[#allocation2 + $0x1f0] sm:$0xff] }
  0x6c   :  { %829 = vmatprep.mubr.f32.mxu1 %v57_v2  ;;  %v121_v2 = vld [vmem:[#allocation2 + $0x218] sm:$0xff] }
  0x6d   :  { %381 = vmatmul.mubr.f32.gmra.mxu0 %v56_v3 }
  0x6e   :  { %386 = vmatprep.mubr.f32.mxu0 %v59_v4 }
  0x6f   :  { %830 = vmatmul.mubr.f32.gmra.mxu1 %v56_v3  ;;  %v120_v3 = vld [vmem:[#allocation2 + $0x210] sm:$0xff] }
  0x70   :  { %835 = vmatprep.mubr.f32.mxu1 %v59_v4  ;;  %v123_v4 = vld [vmem:[#allocation2 + $0x228] sm:$0xff] }
  0x71   :  { %387 = vmatmul.mubr.f32.gmra.mxu0 %v58_v5 }
  0x72   :  { %392 = vmatprep.mubr.f32.mxu0 %v61_v6 }
  0x73   :  { %836 = vmatmul.mubr.f32.gmra.mxu1 %v58_v5  ;;  %v122_v5 = vld [vmem:[#allocation2 + $0x220] sm:$0xff] }
  0x74   :  { %841 = vmatprep.mubr.f32.mxu1 %v61_v6  ;;  %v125_v6 = vld [vmem:[#allocation2 + $0x238] sm:$0xff] }
  0x75   :  { %393 = vmatmul.mubr.f32.gmra.mxu0 %v60_v7 }
  0x76   :  { %398 = vmatprep.mubr.f32.mxu0 %v63_v8 }
  0x77   :  { %842 = vmatmul.mubr.f32.gmra.mxu1 %v60_v7  ;;  %v124_v7 = vld [vmem:[#allocation2 + $0x230] sm:$0xff] }
  0x78   :  { %847 = vmatprep.mubr.f32.mxu1 %v63_v8  ;;  %v127_v8 = vld [vmem:[#allocation2 + $0x248] sm:$0xff] }
  0x79   :  { %399 = vmatmul.mubr.f32.gmra.mxu0 %v62_v9 }
  0x7a   :  { %404 = vmatprep.mubr.f32.mxu0 %v65_v10 }
  0x7b   :  { %848 = vmatmul.mubr.f32.gmra.mxu1 %v62_v9  ;;  %v126_v9 = vld [vmem:[#allocation2 + $0x240] sm:$0xff] }
  0x7c   :  { %853 = vmatprep.mubr.f32.mxu1 %v65_v10  ;;  %v129_v10 = vld [vmem:[#allocation2 + $0x258] sm:$0xff] }
  0x7d   :  { %405 = vmatmul.mubr.f32.gmra.mxu0 %v64_v11 }
  0x7e   :  { %410 = vmatprep.mubr.f32.mxu0 %v67_v12 }
  0x7f   :  { %854 = vmatmul.mubr.f32.gmra.mxu1 %v64_v11  ;;  %v128_v11 = vld [vmem:[#allocation2 + $0x250] sm:$0xff] }
  0x80   :  { %859 = vmatprep.mubr.f32.mxu1 %v67_v12  ;;  %v131_v12 = vld [vmem:[#allocation2 + $0x268] sm:$0xff] }
  0x81   :  { %411 = vmatmul.mubr.f32.gmra.mxu0 %v66_v13 }
  0x82   :  { %416 = vmatprep.mubr.f32.mxu0 %v69_v14 }
  0x83   :  { %860 = vmatmul.mubr.f32.gmra.mxu1 %v66_v13  ;;  %v130_v13 = vld [vmem:[#allocation2 + $0x260] sm:$0xff] }
  0x84   :  { %865 = vmatprep.mubr.f32.mxu1 %v69_v14  ;;  %v133_v14 = vld [vmem:[#allocation2 + $0x278] sm:$0xff] }
  0x85   :  { %417 = vmatmul.mubr.f32.gmra.mxu0 %v68_v15 }
  0x86   :  { %422 = vmatprep.mubr.f32.mxu0 %v71_v16 }
  0x87   :  { %866 = vmatmul.mubr.f32.gmra.mxu1 %v68_v15  ;;  %v132_v15 = vld [vmem:[#allocation2 + $0x270] sm:$0xff] }
  0x88   :  { %871 = vmatprep.mubr.f32.mxu1 %v71_v16  ;;  %v135_v16 = vld [vmem:[#allocation2 + $0x288] sm:$0xff] }
  0x89   :  { %423 = vmatmul.mubr.f32.gmra.mxu0 %v70_v17 }
  0x8a   :  { %428 = vmatprep.mubr.f32.mxu0 %v73_v18 }
  0x8b   :  { %872 = vmatmul.mubr.f32.gmra.mxu1 %v70_v17  ;;  %v134_v17 = vld [vmem:[#allocation2 + $0x280] sm:$0xff] }
  0x8c   :  { %877 = vmatprep.mubr.f32.mxu1 %v73_v18  ;;  %v137_v18 = vld [vmem:[#allocation2 + $0x298] sm:$0xff] }
  0x8d   :  { %429 = vmatmul.mubr.f32.gmra.mxu0 %v72_v19 }
  0x8e   :  { %434 = vmatprep.mubr.f32.mxu0 %v75_v20 }
  0x8f   :  { %878 = vmatmul.mubr.f32.gmra.mxu1 %v72_v19  ;;  %v136_v19 = vld [vmem:[#allocation2 + $0x290] sm:$0xff] }
  0x90   :  { %883 = vmatprep.mubr.f32.mxu1 %v75_v20  ;;  %v139_v20 = vld [vmem:[#allocation2 + $0x2a8] sm:$0xff] }
  0x91   :  { %435 = vmatmul.mubr.f32.gmra.mxu0 %v74_v21 }
  0x92   :  { %440 = vmatprep.mubr.f32.mxu0 %v77_v22 }
  0x93   :  { %884 = vmatmul.mubr.f32.gmra.mxu1 %v74_v21  ;;  %v138_v21 = vld [vmem:[#allocation2 + $0x2a0] sm:$0xff] }
  0x94   :  { %889 = vmatprep.mubr.f32.mxu1 %v77_v22  ;;  %v141_v22 = vld [vmem:[#allocation2 + $0x2b8] sm:$0xff] }
  0x95   :  { %441 = vmatmul.mubr.f32.gmra.mxu0 %v76_v23 }
  0x96   :  { %446 = vmatprep.mubr.f32.mxu0 %v79_v24 }
  0x97   :  { %890 = vmatmul.mubr.f32.gmra.mxu1 %v76_v23  ;;  %v140_v23 = vld [vmem:[#allocation2 + $0x2b0] sm:$0xff] }
  0x98   :  { %895 = vmatprep.mubr.f32.mxu1 %v79_v24  ;;  %v143_v24 = vld [vmem:[#allocation2 + $0x2c8] sm:$0xff] }
  0x99   :  { %447 = vmatmul.mubr.f32.gmra.mxu0 %v78_v25 }
  0x9a   :  { %452 = vmatprep.mubr.f32.mxu0 %v81_v26 }
  0x9b   :  { %896 = vmatmul.mubr.f32.gmra.mxu1 %v78_v25  ;;  %v142_v25 = vld [vmem:[#allocation2 + $0x2c0] sm:$0xff] }
  0x9c   :  { %901 = vmatprep.mubr.f32.mxu1 %v81_v26  ;;  %v145_v26 = vld [vmem:[#allocation2 + $0x2d8] sm:$0xff] }
  0x9d   :  { %453 = vmatmul.mubr.f32.gmra.mxu0 %v80_v27 }
  0x9e   :  { %458 = vmatprep.mubr.f32.mxu0 %v83_v28 }
  0x9f   :  { %902 = vmatmul.mubr.f32.gmra.mxu1 %v80_v27  ;;  %v144_v27 = vld [vmem:[#allocation2 + $0x2d0] sm:$0xff] }
  0xa0   :  { %907 = vmatprep.mubr.f32.mxu1 %v83_v28  ;;  %v147_v28 = vld [vmem:[#allocation2 + $0x2e8] sm:$0xff] }
  0xa1   :  { %459 = vmatmul.mubr.f32.gmra.mxu0 %v82_v29 }
  0xa2   :  { %464 = vmatprep.mubr.f32.mxu0 %v85_v30 }
  0xa3   :  { %908 = vmatmul.mubr.f32.gmra.mxu1 %v82_v29  ;;  %v7726_v29 = vlaneseq }
  0xa4   :  { %913 = vmatprep.mubr.f32.mxu1 %v85_v30  ;;  %v146_v30 = vld [vmem:[#allocation2 + $0x2e0] sm:$0xff] }
  0xa5   :  { %465 = vmatmul.mubr.f32.gmra.mxu0 %v84_v31 }
  0xa6   :  { %470 = vmatprep.mubr.f32.mxu0 %v87_v32 }
  0xa7   :  { %914 = vmatmul.mubr.f32.gmra.mxu1 %v84_v31  ;;  %v149_v31 = vld [vmem:[#allocation2 + $0x2f8] sm:$0xff] }
  0xa8   :  { %919 = vmatprep.mubr.f32.mxu1 %v87_v32  ;;  %v4104_v32 = vshrl.u32 %v7726_v29, 7 }
  0xa9   :  { %471 = vmatmul.mubr.f32.gmra.mxu0 %v86_v33 }
  0xaa   :  { %476 = vmatprep.mubr.f32.mxu0 %v89_v34  ;;  %8191 = vst [vmem:[#allocation12_spill] sm:$0xff] %v4104_v32 }
  0xab   :  { %920 = vmatmul.mubr.f32.gmra.mxu1 %v86_v33  ;;  %v148_v33 = vld [vmem:[#allocation2 + $0x2f0] sm:$0xff] }
  0xac   :  { %925 = vmatprep.mubr.f32.mxu1 %v89_v34  ;;  %v151_v34 = vld [vmem:[#allocation2 + $0x308] sm:$0xff] }
  0xad   :  { %477 = vmatmul.mubr.f32.gmra.mxu0 %v88_v35 }
  0xae   :  { %482 = vmatprep.mubr.f32.mxu0 %v91_v36 }
  0xaf   :  { %926 = vmatmul.mubr.f32.gmra.mxu1 %v88_v35  ;;  %v1212_v35 = vsub.s32 0, %v4104_v32 }
  0xb0   :  { %931 = vmatprep.mubr.f32.mxu1 %v91_v36  ;;  %v1216_v36 = vsub.s32 1, %v4104_v32 }
  0xb1   :  { %483 = vmatmul.mubr.f32.gmra.mxu0 %v90_v37 }
  0xb2   :  { %488 = vmatprep.mubr.f32.mxu0 %v93_v38 }
  0xb3   :  { %932 = vmatmul.mubr.f32.gmra.mxu1 %v90_v37  ;;  %v1220_v37 = vsub.s32 2, %v4104_v32 }
  0xb4   :  { %937 = vmatprep.mubr.f32.mxu1 %v93_v38  ;;  %v1208_v38 = vld [vmem:[#allocation7] sm:$0xf] }
  0xb5   :  { %489 = vmatmul.mubr.f32.gmra.mxu0 %v92_v39 }
  0xb6   :  { %494 = vmatprep.mubr.f32.mxu0 %v95_v40 }
  0xb7   :  { %938 = vmatmul.mubr.f32.gmra.mxu1 %v92_v39  ;;  %v150_v39 = vld [vmem:[#allocation2 + $0x300] sm:$0xff] }
  0xb8   :  { %943 = vmatprep.mubr.f32.mxu1 %v95_v40  ;;  %v153_v40 = vld [vmem:[#allocation2 + $0x318] sm:$0xff] }
  0xb9   :  { %495 = vmatmul.mubr.f32.gmra.mxu0 %v94_v41 }
  0xba   :  { %500 = vmatprep.mubr.f32.mxu0 %v97_v42 }
  0xbb   :  { %944 = vmatmul.mubr.f32.gmra.mxu1 %v94_v41  ;;  %v4109_v41 = vrot.slane %v1208_v38, %v1212_v35 }
  0xbc   :  { %949 = vmatprep.mubr.f32.mxu1 %v97_v42  ;;  %v4111_v42 = vrot.slane %v1208_v38, %v1216_v36  ;;  %v160_v36 = vld [vmem:[#allocation2 + $0x350] sm:$0xff] }
  0xbd   :  { %501 = vmatmul.mubr.f32.gmra.mxu0 %v96_v43 }
  0xbe   :  { %506 = vmatprep.mubr.f32.mxu0 %v99_v44 }
  0xbf   :  { %950 = vmatmul.mubr.f32.gmra.mxu1 %v96_v43  ;;  %v4113_v43 = vrot.slane %v1208_v38, %v1220_v37 }
  0xc0   :  { %955 = vmatprep.mubr.f32.mxu1 %v99_v44  ;;  %v1224_v44 = vsub.s32 3, %v4104_v32 }
  0xc1   :  { %507 = vmatmul.mubr.f32.gmra.mxu0 %v98_v45 }
  0xc2   :  { %512 = vmatprep.mubr.f32.mxu0 %v101_v46 }
  0xc3   :  { %956 = vmatmul.mubr.f32.gmra.mxu1 %v98_v45 }
  0xc4   :  { %961 = vmatprep.mubr.f32.mxu1 %v101_v46  ;;  %v152_v46 = vld [vmem:[#allocation2 + $0x310] sm:$0xff] }
  0xc5   :  { %513 = vmatmul.mubr.f32.gmra.mxu0 %v100_v47 }
  0xc6   :  { %518 = vmatprep.mubr.f32.mxu0 %v103_v48 }
  0xc7   :  { %962 = vmatmul.mubr.f32.gmra.mxu1 %v100_v47 }
  0xc8   :  { %967 = vmatprep.mubr.f32.mxu1 %v103_v48 }
  0xc9   :  { %519 = vmatmul.mubr.f32.gmra.mxu0 %v102_v49 }
  0xca   :  { %524 = vmatprep.mubr.f32.mxu0 %v105_v50 }
  0xcb   :  { %968 = vmatmul.mubr.f32.gmra.mxu1 %v102_v49  ;;  %v155_v49 = vld [vmem:[#allocation2 + $0x328] sm:$0xff] }
  0xcc   :  { %973 = vmatprep.mubr.f32.mxu1 %v105_v50 }
  0xcd   :  { %525 = vmatmul.mubr.f32.gmra.mxu0 %v104_v51 }
  0xce   :  { %530 = vmatprep.mubr.f32.mxu0 %v107_v52 }
  0xcf   :  { %974 = vmatmul.mubr.f32.gmra.mxu1 %v104_v51 }
  0xd0   :  { %979 = vmatprep.mubr.f32.mxu1 %v107_v52 }
  0xd1   :  { %531 = vmatmul.mubr.f32.gmra.mxu0 %v106_v53 }
  0xd2   :  { %536 = vmatprep.mubr.f32.mxu0 %v109_v54 }
  0xd3   :  { %980 = vmatmul.mubr.f32.gmra.mxu1 %v106_v53  ;;  %v4125_v53 = vrot.slane %v1208_v38, %v1224_v44 }
  0xd4   :  { %985 = vmatprep.mubr.f32.mxu1 %v109_v54 }
  0xd5   :  { %537 = vmatmul.mubr.f32.gmra.mxu0 %v108_v55 }
  0xd6   :  { %542 = vmatprep.mubr.f32.mxu0 %v111_v56 }
  0xd7   :  { %986 = vmatmul.mubr.f32.gmra.mxu1 %v108_v55 }
  0xd8   :  { %991 = vmatprep.mubr.f32.mxu1 %v111_v56 }
  0xd9   :  { %543 = vmatmul.mubr.f32.gmra.mxu0 %v110_v57 }
  0xda   :  { %548 = vmatprep.mubr.f32.mxu0 %v113_v58 }
  0xdb   :  { %992 = vmatmul.mubr.f32.gmra.mxu1 %v110_v57 }
  0xdc   :  { %997 = vmatprep.mubr.f32.mxu1 %v113_v58  ;;  %v154_v58 = vld [vmem:[#allocation2 + $0x320] sm:$0xff] }
  0xdd   :  { %549 = vmatmul.mubr.f32.gmra.mxu0 %v112_v59 }
  0xde   :  { %554 = vmatprep.mubr.f32.mxu0 %v115_v60 }
  0xdf   :  { %998 = vmatmul.mubr.f32.gmra.mxu1 %v112_v59 }
  0xe0   :  { %1003 = vmatprep.mubr.f32.mxu1 %v115_v60 }
  0xe1   :  { %555 = vmatmul.mubr.f32.gmra.mxu0 %v114_v61 }
  0xe2   :  { %560 = vmatprep.mubr.f32.mxu0 %v117_v62 }
  0xe3   :  { %1004 = vmatmul.mubr.f32.gmra.mxu1 %v114_v61  ;;  %v157_v61 = vld [vmem:[#allocation2 + $0x338] sm:$0xff] }
  0xe4   :  { %1009 = vmatprep.mubr.f32.mxu1 %v117_v62 }
  0xe5   :  { %561 = vmatmul.mubr.f32.gmra.mxu0 %v116_v63 }
  0xe6   :  { %566 = vmatprep.mubr.f32.mxu0 %v119_v0 }
  0xe7   :  { %1010 = vmatmul.mubr.f32.gmra.mxu1 %v116_v63 }
  0xe8   :  { %1015 = vmatprep.mubr.f32.mxu1 %v119_v0 }
  0xe9   :  { %567 = vmatmul.mubr.f32.gmra.mxu0 %v118_v1 }
  0xea   :  { %572 = vmatprep.mubr.f32.mxu0 %v121_v2 }
  0xeb   :  { %1016 = vmatmul.mubr.f32.gmra.mxu1 %v118_v1 }
  0xec   :  { %1021 = vmatprep.mubr.f32.mxu1 %v121_v2 }
  0xed   :  { %573 = vmatmul.mubr.f32.gmra.mxu0 %v120_v3 }
  0xee   :  { %578 = vmatprep.mubr.f32.mxu0 %v123_v4 }
  0xef   :  { %1022 = vmatmul.mubr.f32.gmra.mxu1 %v120_v3 }
  0xf0   :  { %1027 = vmatprep.mubr.f32.mxu1 %v123_v4 }
  0xf1   :  { %579 = vmatmul.mubr.f32.gmra.mxu0 %v122_v5 }
  0xf2   :  { %584 = vmatprep.mubr.f32.mxu0 %v125_v6 }
  0xf3   :  { %1028 = vmatmul.mubr.f32.gmra.mxu1 %v122_v5 }
  0xf4   :  { %1033 = vmatprep.mubr.f32.mxu1 %v125_v6 }
  0xf5   :  { %585 = vmatmul.mubr.f32.gmra.mxu0 %v124_v7 }
  0xf6   :  { %590 = vmatprep.mubr.f32.mxu0 %v127_v8 }
  0xf7   :  { %1034 = vmatmul.mubr.f32.gmra.mxu1 %v124_v7 }
  0xf8   :  { %1039 = vmatprep.mubr.f32.mxu1 %v127_v8  ;;  %v156_v8 = vld [vmem:[#allocation2 + $0x330] sm:$0xff] }
  0xf9   :  { %591 = vmatmul.mubr.f32.gmra.mxu0 %v126_v9 }
  0xfa   :  { %596 = vmatprep.mubr.f32.mxu0 %v129_v10 }
  0xfb   :  { %1040 = vmatmul.mubr.f32.gmra.mxu1 %v126_v9 }
  0xfc   :  { %1045 = vmatprep.mubr.f32.mxu1 %v129_v10 }
  0xfd   :  { %597 = vmatmul.mubr.f32.gmra.mxu0 %v128_v11 }
  0xfe   :  { %602 = vmatprep.mubr.f32.mxu0 %v131_v12 }
  0xff   :  { %1046 = vmatmul.mubr.f32.gmra.mxu1 %v128_v11  ;;  %v159_v11 = vld [vmem:[#allocation2 + $0x348] sm:$0xff] }
 0x100   :  { %1051 = vmatprep.mubr.f32.mxu1 %v131_v12 }
 0x101   :  { %603 = vmatmul.mubr.f32.gmra.mxu0 %v130_v13 }
 0x102   :  { %608 = vmatprep.mubr.f32.mxu0 %v133_v14 }
 0x103   :  { %1052 = vmatmul.mubr.f32.gmra.mxu1 %v130_v13 }
 0x104   :  { %1057 = vmatprep.mubr.f32.mxu1 %v133_v14 }
 0x105   :  { %609 = vmatmul.mubr.f32.gmra.mxu0 %v132_v15 }
 0x106   :  { %614 = vmatprep.mubr.f32.mxu0 %v135_v16 }
 0x107   :  { %1058 = vmatmul.mubr.f32.gmra.mxu1 %v132_v15 }
 0x108   :  { %1063 = vmatprep.mubr.f32.mxu1 %v135_v16 }
 0x109   :  { %615 = vmatmul.mubr.f32.gmra.mxu0 %v134_v17 }
 0x10a   :  { %620 = vmatprep.mubr.f32.mxu0 %v137_v18 }
 0x10b   :  { %1064 = vmatmul.mubr.f32.gmra.mxu1 %v134_v17 }
 0x10c   :  { %1069 = vmatprep.mubr.f32.mxu1 %v137_v18 }
 0x10d   :  { %621 = vmatmul.mubr.f32.gmra.mxu0 %v136_v19 }
 0x10e   :  { %626 = vmatprep.mubr.f32.mxu0 %v139_v20 }
 0x10f   :  { %1070 = vmatmul.mubr.f32.gmra.mxu1 %v136_v19 }
 0x110   :  { %1075 = vmatprep.mubr.f32.mxu1 %v139_v20 }
 0x111   :  { %627 = vmatmul.mubr.f32.gmra.mxu0 %v138_v21 }
 0x112   :  { %632 = vmatprep.mubr.f32.mxu0 %v141_v22 }
 0x113   :  { %1076 = vmatmul.mubr.f32.gmra.mxu1 %v138_v21  ;;  %v158_v21 = vld [vmem:[#allocation2 + $0x340] sm:$0xff] }
 0x114   :  { %1081 = vmatprep.mubr.f32.mxu1 %v141_v22 }
 0x115   :  { %633 = vmatmul.mubr.f32.gmra.mxu0 %v140_v23 }
 0x116   :  { %638 = vmatprep.mubr.f32.mxu0 %v143_v24 }
 0x117   :  { %1082 = vmatmul.mubr.f32.gmra.mxu1 %v140_v23 }
 0x118   :  { %1087 = vmatprep.mubr.f32.mxu1 %v143_v24  ;;  %v161_v24 = vld [vmem:[#allocation2 + $0x358] sm:$0xff] }
 0x119   :  { %639 = vmatmul.mubr.f32.gmra.mxu0 %v142_v25 }
 0x11a   :  { %644 = vmatprep.mubr.f32.mxu0 %v145_v26 }
 0x11b   :  { %1088 = vmatmul.mubr.f32.gmra.mxu1 %v142_v25 }
 0x11c   :  { %1093 = vmatprep.mubr.f32.mxu1 %v145_v26 }
 0x11d   :  { %645 = vmatmul.mubr.f32.gmra.mxu0 %v144_v27 }
 0x11e   :  { %650 = vmatprep.mubr.f32.mxu0 %v147_v28 }
 0x11f   :  { %1094 = vmatmul.mubr.f32.gmra.mxu1 %v144_v27 }
 0x120   :  { %1099 = vmatprep.mubr.f32.mxu1 %v147_v28 }
 0x121   :  { %651 = vmatmul.mubr.f32.gmra.mxu0 %v146_v30 }
 0x122   :  { %656 = vmatprep.mubr.f32.mxu0 %v149_v31 }
 0x123   :  { %1100 = vmatmul.mubr.f32.gmra.mxu1 %v146_v30 }
 0x124   :  { %1105 = vmatprep.mubr.f32.mxu1 %v149_v31 }
 0x125   :  { %657 = vmatmul.mubr.f32.gmra.mxu0 %v148_v33 }
 0x126   :  { %662 = vmatprep.mubr.f32.mxu0 %v151_v34 }
 0x127   :  { %1106 = vmatmul.mubr.f32.gmra.mxu1 %v148_v33 }
 0x128   :  { %1111 = vmatprep.mubr.f32.mxu1 %v151_v34 }
 0x129   :  { %v376_v45 = vpop.f32.mrf.mxu0  ;;  %663 = vmatmul.mubr.f32.gmra.mxu0 %v150_v39 }
 0x12a   :  { %668 = vmatprep.mubr.f32.mxu0 %v153_v40  ;;  %v4117_v50 = vsub.f32 %v376_v45, %v4109_v41 }
 0x12b   :  { %v378_v47 = vpop.f32.mrf.mxu0  ;;  %v825_v48 = vpop.f32.mrf.mxu1  ;;  %1112 = vmatmul.mubr.f32.gmra.mxu1 %v150_v39  ;;  %v163_v39 = vld [vmem:[#allocation2 + $0x368] sm:$0xff] }
 0x12c   :  { %v4120_v51 = vsub.f32 %v378_v47, %v4111_v42  ;;  %v4123_v52 = vsub.f32 %v825_v48, %v4113_v43  ;;  %1117 = vmatprep.mubr.f32.mxu1 %v153_v40 }
 0x12d   :  { %v382_v54 = vpop.f32.mrf.mxu0  ;;  %669 = vmatmul.mubr.f32.gmra.mxu0 %v152_v46  ;;  %v827_v55 = vpop.f32.mrf.mxu1 }
 0x12e   :  { %v1486_v56 = vmax.f32 %v4117_v50, %v4120_v51  ;;  %v4130_v57 = vsub.f32 %v382_v54, %v4109_v41  ;;  %674 = vmatprep.mubr.f32.mxu0 %v155_v49  ;;  %v4133_v62 = vsub.f32 %v827_v55, %v4125_v53 }
 0x12f   :  { %v384_v59 = vpop.f32.mrf.mxu0  ;;  %v831_v60 = vpop.f32.mrf.mxu1  ;;  %1118 = vmatmul.mubr.f32.gmra.mxu1 %v152_v46 }
 0x130   :  { %v4136_v63 = vsub.f32 %v384_v59, %v4111_v42  ;;  %v4139_v0 = vsub.f32 %v831_v60, %v4113_v43  ;;  %1123 = vmatprep.mubr.f32.mxu1 %v155_v49  ;;  %v1487_v1 = vmax.f32 %v1486_v56, %v4123_v52  ;;  %v162_v56 = vld [vmem:[#allocation2 + $0x360] sm:$0xff]  ;;  %v165_v60 = vld [vmem:[#allocation2 + $0x378] sm:$0xff] }
 0x131   :  { %v388_v2 = vpop.f32.mrf.mxu0  ;;  %675 = vmatmul.mubr.f32.gmra.mxu0 %v154_v58  ;;  %v833_v3 = vpop.f32.mrf.mxu1 }
 0x132   :  { %v1491_v4 = vmax.f32 %v4130_v57, %v4136_v63  ;;  %v4145_v5 = vsub.f32 %v388_v2, %v4109_v41  ;;  %v4148_v6 = vsub.f32 %v833_v3, %v4125_v53  ;;  %680 = vmatprep.mubr.f32.mxu0 %v157_v61  ;;  %v1488_v7 = vmax.f32 %v1487_v1, %v4133_v62 }
 0x133   :  { %v390_v9 = vpop.f32.mrf.mxu0  ;;  %v837_v10 = vpop.f32.mrf.mxu1  ;;  %1124 = vmatmul.mubr.f32.gmra.mxu1 %v154_v58 }
 0x134   :  { %v1492_v12 = vmax.f32 %v1491_v4, %v4139_v0  ;;  %v4153_v13 = vsub.f32 %v390_v9, %v4111_v42  ;;  %1489 = vmax.xlane.f32.xlu0 %v1488_v7  ;;  %v4156_v14 = vsub.f32 %v837_v10, %v4113_v43  ;;  %1129 = vmatprep.mubr.f32.mxu1 %v157_v61 }
 0x135   :  { %v394_v15 = vpop.f32.mrf.mxu0  ;;  %681 = vmatmul.mubr.f32.gmra.mxu0 %v156_v8  ;;  %v839_v16 = vpop.f32.mrf.mxu1 }
 0x136   :  { %v1496_v17 = vmax.f32 %v4145_v5, %v4153_v13  ;;  %v4161_v18 = vsub.f32 %v394_v15, %v4109_v41  ;;  %v4164_v19 = vsub.f32 %v839_v16, %v4125_v53  ;;  %686 = vmatprep.mubr.f32.mxu0 %v159_v11  ;;  %v1493_v20 = vmax.f32 %v1492_v12, %v4148_v6  ;;  %v167_v16 = vld [vmem:[#allocation2 + $0x388] sm:$0xff] }
 0x137   :  { %v396_v22 = vpop.f32.mrf.mxu0  ;;  %v843_v23 = vpop.f32.mrf.mxu1  ;;  %1130 = vmatmul.mubr.f32.gmra.mxu1 %v156_v8 }
 0x138   :  { %v4168_v25 = vsub.f32 %v396_v22, %v4111_v42  ;;  %1494 = vmax.xlane.f32.xlu0 %v1493_v20  ;;  %v4171_v26 = vsub.f32 %v843_v23, %v4113_v43  ;;  %1135 = vmatprep.mubr.f32.mxu1 %v159_v11  ;;  %v1497_v27 = vmax.f32 %v1496_v17, %v4156_v14  ;;  %v164_v11 = vld [vmem:[#allocation2 + $0x370] sm:$0xff] }
 0x139   :  { %v400_v28 = vpop.f32.mrf.mxu0  ;;  %687 = vmatmul.mubr.f32.gmra.mxu0 %v158_v21  ;;  %v845_v30 = vpop.f32.mrf.mxu1 }
 0x13a   :  { %v1501_v31 = vmax.f32 %v4161_v18, %v4168_v25  ;;  %v4177_v33 = vsub.f32 %v400_v28, %v4109_v41  ;;  %v4180_v34 = vsub.f32 %v845_v30, %v4125_v53  ;;  %692 = vmatprep.mubr.f32.mxu0 %v161_v24  ;;  %v1498_v35 = vmax.f32 %v1497_v27, %v4164_v19 }
 0x13b   :  { %v402_v37 = vpop.f32.mrf.mxu0  ;;  %v849_v38 = vpop.f32.mrf.mxu1  ;;  %1136 = vmatmul.mubr.f32.gmra.mxu1 %v158_v21 }
 0x13c   :  { %v1502_v40 = vmax.f32 %v1501_v31, %v4171_v26  ;;  %v4185_v44 = vsub.f32 %v402_v37, %v4111_v42  ;;  %1499 = vmax.xlane.f32.xlu1 %v1498_v35  ;;  %v4188_v45 = vsub.f32 %v849_v38, %v4113_v43  ;;  %1141 = vmatprep.mubr.f32.mxu1 %v161_v24  ;;  %v166_v31 = vld [vmem:[#allocation2 + $0x380] sm:$0xff]  ;;  %v169_v37 = vld [vmem:[#allocation2 + $0x398] sm:$0xff] }
 0x13d   :  { %v406_v46 = vpop.f32.mrf.mxu0  ;;  %693 = vmatmul.mubr.f32.gmra.mxu0 %v160_v36  ;;  %v851_v47 = vpop.f32.mrf.mxu1 }
 0x13e   :  { %v1506_v48 = vmax.f32 %v4177_v33, %v4185_v44  ;;  %v4193_v49 = vsub.f32 %v406_v46, %v4109_v41  ;;  %v4196_v54 = vsub.f32 %v851_v47, %v4125_v53  ;;  %698 = vmatprep.mubr.f32.mxu0 %v163_v39  ;;  %v1503_v55 = vmax.f32 %v1502_v40, %v4180_v34 }
 0x13f   :  { %v408_v58 = vpop.f32.mrf.mxu0  ;;  %v855_v59 = vpop.f32.mrf.mxu1  ;;  %1142 = vmatmul.mubr.f32.gmra.mxu1 %v160_v36 }
 0x140   :  { %v1507_v61 = vmax.f32 %v1506_v48, %v4188_v45  ;;  %v4201_v1 = vsub.f32 %v408_v58, %v4111_v42  ;;  %1504 = vmax.xlane.f32.xlu1 %v1503_v55  ;;  %v4204_v2 = vsub.f32 %v855_v59, %v4113_v43  ;;  %1147 = vmatprep.mubr.f32.mxu1 %v163_v39  ;;  %v168_v59 = vld [vmem:[#allocation2 + $0x390] sm:$0xff] }
 0x141   :  { %v412_v3 = vpop.f32.mrf.mxu0  ;;  %699 = vmatmul.mubr.f32.gmra.mxu0 %v162_v56  ;;  %v857_v4 = vpop.f32.mrf.mxu1 }
 0x142   :  { %v1511_v7 = vmax.f32 %v4193_v49, %v4201_v1  ;;  %v4209_v8 = vsub.f32 %v412_v3, %v4109_v41  ;;  %v4212_v9 = vsub.f32 %v857_v4, %v4125_v53  ;;  %704 = vmatprep.mubr.f32.mxu0 %v165_v60  ;;  %v1508_v10 = vmax.f32 %v1507_v61, %v4196_v54  ;;  %v171_v3 = vld [vmem:[#allocation2 + $0x3a8] sm:$0xff] }
 0x143   :  { %v414_v12 = vpop.f32.mrf.mxu0  ;;  %v861_v15 = vpop.f32.mrf.mxu1  ;;  %1148 = vmatmul.mubr.f32.gmra.mxu1 %v162_v56 }
 0x144   :  { %v1512_v17 = vmax.f32 %v1511_v7, %v4204_v2  ;;  %v4217_v20 = vsub.f32 %v414_v12, %v4111_v42  ;;  %1509 = vmax.xlane.f32.xlu0 %v1508_v10  ;;  %v4220_v21 = vsub.f32 %v861_v15, %v4113_v43  ;;  %1153 = vmatprep.mubr.f32.mxu1 %v165_v60 }
 0x145   :  { %v418_v22 = vpop.f32.mrf.mxu0  ;;  %705 = vmatmul.mubr.f32.gmra.mxu0 %v164_v11  ;;  %v863_v23 = vpop.f32.mrf.mxu1 }
 0x146   :  { %v1516_v24 = vmax.f32 %v4209_v8, %v4217_v20  ;;  %v4225_v27 = vsub.f32 %v418_v22, %v4109_v41  ;;  %v4228_v28 = vsub.f32 %v863_v23, %v4125_v53  ;;  %710 = vmatprep.mubr.f32.mxu0 %v167_v16  ;;  %v1513_v30 = vmax.f32 %v1512_v17, %v4212_v9  ;;  %v170_v23 = vld [vmem:[#allocation2 + $0x3a0] sm:$0xff] }
 0x147   :  { %v420_v35 = vpop.f32.mrf.mxu0  ;;  %v867_v36 = vpop.f32.mrf.mxu1  ;;  %1154 = vmatmul.mubr.f32.gmra.mxu1 %v164_v11 }
 0x148   :  { %v1517_v38 = vmax.f32 %v1516_v24, %v4220_v21  ;;  %v4233_v39 = vsub.f32 %v420_v35, %v4111_v42  ;;  %1514 = vmax.xlane.f32.xlu1 %v1513_v30  ;;  %v4236_v40 = vsub.f32 %v867_v36, %v4113_v43  ;;  %1159 = vmatprep.mubr.f32.mxu1 %v167_v16 }
 0x149   :  { %v424_v46 = vpop.f32.mrf.mxu0  ;;  %711 = vmatmul.mubr.f32.gmra.mxu0 %v166_v31  ;;  %v869_v47 = vpop.f32.mrf.mxu1 }
 0x14a   :  { %v1521_v48 = vmax.f32 %v4225_v27, %v4233_v39  ;;  %v4241_v55 = vsub.f32 %v424_v46, %v4109_v41  ;;  %v4244_v56 = vsub.f32 %v869_v47, %v4125_v53  ;;  %716 = vmatprep.mubr.f32.mxu0 %v169_v37  ;;  %v1518_v58 = vmax.f32 %v1517_v38, %v4228_v28 }
 0x14b   :  { %v426_v60 = vpop.f32.mrf.mxu0  ;;  %v873_v61 = vpop.f32.mrf.mxu1  ;;  %1160 = vmatmul.mubr.f32.gmra.mxu1 %v166_v31  ;;  %v173_v31 = vld [vmem:[#allocation2 + $0x3b8] sm:$0xff] }
 0x14c   :  { %v1522_v4 = vmax.f32 %v1521_v48, %v4236_v40  ;;  %v4249_v7 = vsub.f32 %v426_v60, %v4111_v42  ;;  %1519 = vmax.xlane.f32.xlu0 %v1518_v58  ;;  %v4252_v10 = vsub.f32 %v873_v61, %v4113_v43  ;;  %1165 = vmatprep.mubr.f32.mxu1 %v169_v37  ;;  %v172_v60 = vld [vmem:[#allocation2 + $0x3b0] sm:$0xff] }
 0x14d   :  { %v430_v11 = vpop.f32.mrf.mxu0  ;;  %717 = vmatmul.mubr.f32.gmra.mxu0 %v168_v59  ;;  %v875_v12 = vpop.f32.mrf.mxu1 }
 0x14e   :  { %v1526_v15 = vmax.f32 %v4241_v55, %v4249_v7  ;;  %v4257_v16 = vsub.f32 %v430_v11, %v4109_v41  ;;  %v4260_v17 = vsub.f32 %v875_v12, %v4125_v53  ;;  %722 = vmatprep.mubr.f32.mxu0 %v171_v3  ;;  %v1523_v22 = vmax.f32 %v1522_v4, %v4244_v56 }
 0x14f   :  { %v432_v24 = vpop.f32.mrf.mxu0  ;;  %v879_v30 = vpop.f32.mrf.mxu1  ;;  %1166 = vmatmul.mubr.f32.gmra.mxu1 %v168_v59 }
 0x150   :  { %v1527_v35 = vmax.f32 %v1526_v15, %v4252_v10  ;;  %v4265_v36 = vsub.f32 %v432_v24, %v4111_v42  ;;  %1524 = vmax.xlane.f32.xlu1 %v1523_v22  ;;  %v4268_v37 = vsub.f32 %v879_v30, %v4113_v43  ;;  %1171 = vmatprep.mubr.f32.mxu1 %v171_v3  ;;  %v175_v3 = vld [vmem:[#allocation2 + $0x3c8] sm:$0xff] }
 0x151   :  { %v436_v38 = vpop.f32.mrf.mxu0  ;;  %723 = vmatmul.mubr.f32.gmra.mxu0 %v170_v23  ;;  %v881_v46 = vpop.f32.mrf.mxu1 }
 0x152   :  { %8192 = vst [vmem:[#allocation13_spill] sm:$0xff] %v4268_v37  ;;  %v1531_v47 = vmax.f32 %v4257_v16, %v4265_v36  ;;  %v4273_v48 = vsub.f32 %v436_v38, %v4109_v41  ;;  %v4276_v58 = vsub.f32 %v881_v46, %v4125_v53  ;;  %728 = vmatprep.mubr.f32.mxu0 %v173_v31  ;;  %v174_v46 = vld [vmem:[#allocation2 + $0x3c0] sm:$0xff] }
 0x153   :  { %v1528_v59 = vmax.f32 %v1527_v35, %v4260_v17  ;;  %v438_v61 = vpop.f32.mrf.mxu0  ;;  %v885_v4 = vpop.f32.mrf.mxu1  ;;  %1172 = vmatmul.mubr.f32.gmra.mxu1 %v170_v23 }
 0x154   :  { %8193 = vst [vmem:[#allocation14_spill] sm:$0xff] %v4276_v58  ;;  %v1532_v11 = vmax.f32 %v1531_v47, %v4268_v37  ;;  %v4281_v12 = vsub.f32 %v438_v61, %v4111_v42  ;;  %v4284_v15 = vsub.f32 %v885_v4, %v4113_v43  ;;  %1177 = vmatprep.mubr.f32.mxu1 %v173_v31  ;;  %v177_v31 = vld [vmem:[#allocation2 + $0x3d8] sm:$0xff] }
 0x155   :  { %1529 = vmax.xlane.f32.xlu0 %v1528_v59  ;;  %v442_v22 = vpop.f32.mrf.mxu0  ;;  %729 = vmatmul.mubr.f32.gmra.mxu0 %v172_v60  ;;  %v887_v24 = vpop.f32.mrf.mxu1 }
 0x156   :  { %8194 = vst [vmem:[#allocation15_spill] sm:$0xff] %v4281_v12  ;;  %8195 = vst [vmem:[#allocation16_spill] sm:$0xff] %v4284_v15  ;;  %v1536_v30 = vmax.f32 %v4273_v48, %v4281_v12  ;;  %v4289_v35 = vsub.f32 %v442_v22, %v4109_v41  ;;  %v4292_v23 = vsub.f32 %v887_v24, %v4125_v53  ;;  %734 = vmatprep.mubr.f32.mxu0 %v175_v3 }
 0x157   :  { %v1533_v38 = vmax.f32 %v1532_v11, %v4276_v58  ;;  %v444_v47 = vpop.f32.mrf.mxu0  ;;  %v891_v59 = vpop.f32.mrf.mxu1  ;;  %1178 = vmatmul.mubr.f32.gmra.mxu1 %v172_v60 }
 0x158   :  { %8196 = vst [vmem:[#allocation17_spill] sm:$0xff] %v4289_v35  ;;  %8197 = vst [vmem:[#allocation18_spill] sm:$0xff] %v4292_v23  ;;  %v1537_v61 = vmax.f32 %v1536_v30, %v4284_v15  ;;  %v4297_v4 = vsub.f32 %v444_v47, %v4111_v42  ;;  %v4300_v22 = vsub.f32 %v891_v59, %v4113_v43  ;;  %1183 = vmatprep.mubr.f32.mxu1 %v175_v3  ;;  %v179_v3 = vld [vmem:[#allocation2 + $0x3e8] sm:$0xff] }
 0x159   :  { %1534 = vmax.xlane.f32.xlu1 %v1533_v38  ;;  %v448_v24 = vpop.f32.mrf.mxu0  ;;  %735 = vmatmul.mubr.f32.gmra.mxu0 %v174_v46  ;;  %v893_v29 = vpop.f32.mrf.mxu1  ;;  %v176_v38 = vld [vmem:[#allocation2 + $0x3d0] sm:$0xff] }
 0x15a   :  { %8198 = vst [vmem:[#allocation19_spill] sm:$0xff] %v4297_v4  ;;  %8199 = vst [vmem:[#allocation20_spill] sm:$0xff] %v4300_v22  ;;  %v1541_v11 = vmax.f32 %v4289_v35, %v4297_v4  ;;  %v4305_v32 = vsub.f32 %v448_v24, %v4109_v41  ;;  %v4308_v60 = vsub.f32 %v893_v29, %v4125_v53  ;;  %740 = vmatprep.mubr.f32.mxu0 %v177_v31 }
 0x15b   :  { %v1538_v30 = vmax.f32 %v1537_v61, %v4292_v23  ;;  %v450_v47 = vpop.f32.mrf.mxu0  ;;  %v897_v59 = vpop.f32.mrf.mxu1  ;;  %1184 = vmatmul.mubr.f32.gmra.mxu1 %v174_v46 }
 0x15c   :  { %8200 = vst [vmem:[#allocation21_spill] sm:$0xff] %v4305_v32  ;;  %8201 = vst [vmem:[#allocation22_spill] sm:$0xff] %v4308_v60  ;;  %v1542_v15 = vmax.f32 %v1541_v11, %v4300_v22  ;;  %v4313_v58 = vsub.f32 %v450_v47, %v4111_v42  ;;  %v4316_v24 = vsub.f32 %v897_v59, %v4113_v43  ;;  %1189 = vmatprep.mubr.f32.mxu1 %v177_v31  ;;  %v181_v31 = vld [vmem:[#allocation2 + $0x3f8] sm:$0xff] }
 0x15d   :  { %1539 = vmax.xlane.f32.xlu0 %v1538_v30  ;;  %v454_v29 = vpop.f32.mrf.mxu0  ;;  %741 = vmatmul.mubr.f32.gmra.mxu0 %v176_v38  ;;  %v899_v4 = vpop.f32.mrf.mxu1  ;;  %v178_v30 = vld [vmem:[#allocation2 + $0x3e0] sm:$0xff] }
 0x15e   :  { %8202 = vst [vmem:[#allocation23_spill] sm:$0xff] %v4313_v58  ;;  %8203 = vst [vmem:[#allocation24_spill] sm:$0xff] %v4316_v24  ;;  %v1546_v61 = vmax.f32 %v4305_v32, %v4313_v58  ;;  %v4321_v35 = vsub.f32 %v454_v29, %v4109_v41  ;;  %v4324_v46 = vsub.f32 %v899_v4, %v4125_v53  ;;  %746 = vmatprep.mubr.f32.mxu0 %v179_v3 }
 0x15f   :  { %v1543_v11 = vmax.f32 %v1542_v15, %v4308_v60  ;;  %v456_v47 = vpop.f32.mrf.mxu0  ;;  %v903_v59 = vpop.f32.mrf.mxu1  ;;  %1190 = vmatmul.mubr.f32.gmra.mxu1 %v176_v38 }
 0x160   :  { %8204 = vst [vmem:[#allocation25_spill] sm:$0xff] %v4321_v35  ;;  %8205 = vst [vmem:[#allocation26_spill] sm:$0xff] %v4324_v46  ;;  %v1547_v22 = vmax.f32 %v1546_v61, %v4316_v24  ;;  %v4329_v23 = vsub.f32 %v456_v47, %v4111_v42  ;;  %v4332_v29 = vsub.f32 %v903_v59, %v4113_v43  ;;  %1195 = vmatprep.mubr.f32.mxu1 %v179_v3 }
 0x161   :  { %1544 = vmax.xlane.f32.xlu1 %v1543_v11  ;;  %v460_v4 = vpop.f32.mrf.mxu0  ;;  %747 = vmatmul.mubr.f32.gmra.mxu0 %v178_v30  ;;  %v905_v58 = vpop.f32.mrf.mxu1  ;;  %v180_v11 = vld [vmem:[#allocation2 + $0x3f0] sm:$0xff] }
 0x162   :  { %8206 = vst [vmem:[#allocation27_spill] sm:$0xff] %v4329_v23  ;;  %8207 = vst [vmem:[#allocation28_spill] sm:$0xff] %v4332_v29  ;;  %v1551_v15 = vmax.f32 %v4321_v35, %v4329_v23  ;;  %v4337_v60 = vsub.f32 %v460_v4, %v4109_v41  ;;  %v4340_v38 = vsub.f32 %v905_v58, %v4125_v53  ;;  %752 = vmatprep.mubr.f32.mxu0 %v181_v31 }
 0x163   :  { %v1548_v61 = vmax.f32 %v1547_v22, %v4324_v46  ;;  %v462_v47 = vpop.f32.mrf.mxu0  ;;  %v909_v59 = vpop.f32.mrf.mxu1  ;;  %1196 = vmatmul.mubr.f32.gmra.mxu1 %v178_v30 }
 0x164   :  { %8208 = vst [vmem:[#allocation29_spill] sm:$0xff] %v4337_v60  ;;  %8209 = vst [vmem:[#allocation30_spill] sm:$0xff] %v4340_v38  ;;  %v1552_v3 = vmax.f32 %v1551_v15, %v4332_v29  ;;  %v4345_v24 = vsub.f32 %v462_v47, %v4111_v42  ;;  %v4348_v23 = vsub.f32 %v909_v59, %v4113_v43  ;;  %1201 = vmatprep.mubr.f32.mxu1 %v181_v31 }
 0x165   :  { %1549 = vmax.xlane.f32.xlu0 %v1548_v61  ;;  %v466_v4 = vpop.f32.mrf.mxu0  ;;  %753 = vmatmul.mubr.f32.gmra.mxu0 %v180_v11  ;;  %v911_v58 = vpop.f32.mrf.mxu1 }
 0x166   :  { %8210 = vst [vmem:[#allocation31_spill] sm:$0xff] %v4345_v24  ;;  %8211 = vst [vmem:[#allocation32_spill] sm:$0xff] %v4348_v23  ;;  %v1556_v22 = vmax.f32 %v4337_v60, %v4345_v24  ;;  %v4353_v35 = vsub.f32 %v466_v4, %v4109_v41  ;;  %v4356_v30 = vsub.f32 %v911_v58, %v4125_v53 }
 0x167   :  { %v1553_v15 = vmax.f32 %v1552_v3, %v4340_v38  ;;  %v468_v47 = vpop.f32.mrf.mxu0  ;;  %v915_v61 = vpop.f32.mrf.mxu1  ;;  %1202 = vmatmul.mubr.f32.gmra.mxu1 %v180_v11 }
 0x168   :  { %8212 = vst [vmem:[#allocation33_spill] sm:$0xff] %v4353_v35  ;;  %8213 = vst [vmem:[#allocation34_spill] sm:$0xff] %v4356_v30  ;;  %v1557_v59 = vmax.f32 %v1556_v22, %v4348_v23  ;;  %v4361_v31 = vsub.f32 %v468_v47, %v4111_v42  ;;  %v4364_v29 = vsub.f32 %v915_v61, %v4113_v43 }
 0x169   :  { %1554 = vmax.xlane.f32.xlu1 %v1553_v15  ;;  %v472_v24 = vpop.f32.mrf.mxu0  ;;  %v917_v4 = vpop.f32.mrf.mxu1 }
 0x16a   :  { %8214 = vst [vmem:[#allocation35_spill] sm:$0xff] %v4361_v31  ;;  %8215 = vst [vmem:[#allocation36_spill] sm:$0xff] %v4364_v29  ;;  %v1561_v58 = vmax.f32 %v4353_v35, %v4361_v31  ;;  %v4369_v60 = vsub.f32 %v472_v24, %v4109_v41  ;;  %v4372_v3 = vsub.f32 %v917_v4, %v4125_v53 }
 0x16b   :  { %v1558_v11 = vmax.f32 %v1557_v59, %v4356_v30  ;;  %v474_v22 = vpop.f32.mrf.mxu0  ;;  %v921_v47 = vpop.f32.mrf.mxu1 }
 0x16c   :  { %8216 = vst [vmem:[#allocation37_spill] sm:$0xff] %v4369_v60  ;;  %8217 = vst [vmem:[#allocation38_spill] sm:$0xff] %v4372_v3  ;;  %v1562_v15 = vmax.f32 %v1561_v58, %v4364_v29  ;;  %v4377_v61 = vsub.f32 %v474_v22, %v4111_v42  ;;  %v4380_v23 = vsub.f32 %v921_v47, %v4113_v43 }
 0x16d   :  { %1559 = vmax.xlane.f32.xlu0 %v1558_v11  ;;  %v478_v31 = vpop.f32.mrf.mxu0  ;;  %v923_v35 = vpop.f32.mrf.mxu1 }
 0x16e   :  { %8218 = vst [vmem:[#allocation39_spill] sm:$0xff] %v4377_v61  ;;  %8219 = vst [vmem:[#allocation40_spill] sm:$0xff] %v4380_v23  ;;  %v1566_v24 = vmax.f32 %v4369_v60, %v4377_v61  ;;  %v4385_v4 = vsub.f32 %v478_v31, %v4109_v41  ;;  %v4388_v59 = vsub.f32 %v923_v35, %v4125_v53 }
 0x16f   :  { %v1563_v58 = vmax.f32 %v1562_v15, %v4372_v3  ;;  %v480_v29 = vpop.f32.mrf.mxu0  ;;  %v927_v22 = vpop.f32.mrf.mxu1 }
 0x170   :  { %8220 = vst [vmem:[#allocation41_spill] sm:$0xff] %v4385_v4  ;;  %8221 = vst [vmem:[#allocation42_spill] sm:$0xff] %v4388_v59  ;;  %v1567_v11 = vmax.f32 %v1566_v24, %v4380_v23  ;;  %v4393_v47 = vsub.f32 %v480_v29, %v4111_v42  ;;  %v4396_v30 = vsub.f32 %v927_v22, %v4113_v43 }
 0x171   :  { %1564 = vmax.xlane.f32.xlu1 %v1563_v58  ;;  %v484_v61 = vpop.f32.mrf.mxu0  ;;  %v929_v60 = vpop.f32.mrf.mxu1 }
 0x172   :  { %8222 = vst [vmem:[#allocation43_spill] sm:$0xff] %v4393_v47  ;;  %8223 = vst [vmem:[#allocation44_spill] sm:$0xff] %v4396_v30  ;;  %v1571_v31 = vmax.f32 %v4385_v4, %v4393_v47  ;;  %v4401_v35 = vsub.f32 %v484_v61, %v4109_v41  ;;  %v4404_v15 = vsub.f32 %v929_v60, %v4125_v53 }
 0x173   :  { %v1568_v24 = vmax.f32 %v1567_v11, %v4388_v59  ;;  %v486_v23 = vpop.f32.mrf.mxu0  ;;  %v933_v29 = vpop.f32.mrf.mxu1 }
 0x174   :  { %8224 = vst [vmem:[#allocation45_spill] sm:$0xff] %v4401_v35  ;;  %8225 = vst [vmem:[#allocation46_spill] sm:$0xff] %v4404_v15  ;;  %v1572_v58 = vmax.f32 %v1571_v31, %v4396_v30  ;;  %v4409_v22 = vsub.f32 %v486_v23, %v4111_v42  ;;  %v4412_v3 = vsub.f32 %v933_v29, %v4113_v43 }
 0x175   :  { %1569 = vmax.xlane.f32.xlu0 %v1568_v24  ;;  %v490_v47 = vpop.f32.mrf.mxu0  ;;  %v935_v4 = vpop.f32.mrf.mxu1 }
 0x176   :  { %8226 = vst [vmem:[#allocation47_spill] sm:$0xff] %v4409_v22  ;;  %8227 = vst [vmem:[#allocation48_spill] sm:$0xff] %v4412_v3  ;;  %v1576_v61 = vmax.f32 %v4401_v35, %v4409_v22  ;;  %v4417_v60 = vsub.f32 %v490_v47, %v4109_v41  ;;  %v4420_v11 = vsub.f32 %v935_v4, %v4125_v53 }
 0x177   :  { %v1573_v31 = vmax.f32 %v1572_v58, %v4404_v15  ;;  %v492_v30 = vpop.f32.mrf.mxu0  ;;  %v939_v23 = vpop.f32.mrf.mxu1 }
 0x178   :  { %8228 = vst [vmem:[#allocation49_spill] sm:$0xff] %v4417_v60  ;;  %8229 = vst [vmem:[#allocation50_spill] sm:$0xff] %v4420_v11  ;;  %v1577_v24 = vmax.f32 %v1576_v61, %v4412_v3  ;;  %v4425_v29 = vsub.f32 %v492_v30, %v4111_v42  ;;  %v4428_v59 = vsub.f32 %v939_v23, %v4113_v43 }
 0x179   :  { %1574 = vmax.xlane.f32.xlu1 %v1573_v31  ;;  %v496_v22 = vpop.f32.mrf.mxu0  ;;  %v941_v35 = vpop.f32.mrf.mxu1 }
 0x17a   :  { %8230 = vst [vmem:[#allocation51_spill] sm:$0xff] %v4425_v29  ;;  %8231 = vst [vmem:[#allocation52_spill] sm:$0xff] %v4428_v59  ;;  %v1581_v47 = vmax.f32 %v4417_v60, %v4425_v29  ;;  %v4433_v4 = vsub.f32 %v496_v22, %v4109_v41  ;;  %v4436_v58 = vsub.f32 %v941_v35, %v4125_v53 }
 0x17b   :  { %v1578_v61 = vmax.f32 %v1577_v24, %v4420_v11  ;;  %v498_v3 = vpop.f32.mrf.mxu0  ;;  %v945_v30 = vpop.f32.mrf.mxu1 }
 0x17c   :  { %8232 = vst [vmem:[#allocation53_spill] sm:$0xff] %v4433_v4  ;;  %8233 = vst [vmem:[#allocation54_spill] sm:$0xff] %v4436_v58  ;;  %v1582_v31 = vmax.f32 %v1581_v47, %v4428_v59  ;;  %v4441_v23 = vsub.f32 %v498_v3, %v4111_v42  ;;  %v4444_v15 = vsub.f32 %v945_v30, %v4113_v43 }
 0x17d   :  { %1579 = vmax.xlane.f32.xlu0 %v1578_v61  ;;  %v502_v29 = vpop.f32.mrf.mxu0  ;;  %v947_v60 = vpop.f32.mrf.mxu1 }
 0x17e   :  { %8234 = vst [vmem:[#allocation55_spill] sm:$0xff] %v4441_v23  ;;  %8235 = vst [vmem:[#allocation56_spill] sm:$0xff] %v4444_v15  ;;  %v1586_v22 = vmax.f32 %v4433_v4, %v4441_v23  ;;  %v4449_v35 = vsub.f32 %v502_v29, %v4109_v41  ;;  %v4452_v24 = vsub.f32 %v947_v60, %v4125_v53 }
 0x17f   :  { %v1583_v47 = vmax.f32 %v1582_v31, %v4436_v58  ;;  %v504_v59 = vpop.f32.mrf.mxu0  ;;  %v951_v3 = vpop.f32.mrf.mxu1 }
 0x180   :  { %8236 = vst [vmem:[#allocation57_spill] sm:$0xff] %v4449_v35  ;;  %8237 = vst [vmem:[#allocation58_spill] sm:$0xff] %v4452_v24  ;;  %v1587_v61 = vmax.f32 %v1586_v22, %v4444_v15  ;;  %v4457_v30 = vsub.f32 %v504_v59, %v4111_v42  ;;  %v4460_v11 = vsub.f32 %v951_v3, %v4113_v43 }
 0x181   :  { %1584 = vmax.xlane.f32.xlu1 %v1583_v47  ;;  %v508_v23 = vpop.f32.mrf.mxu0  ;;  %v953_v4 = vpop.f32.mrf.mxu1 }
 0x182   :  { %8238 = vst [vmem:[#allocation59_spill] sm:$0xff] %v4457_v30  ;;  %8239 = vst [vmem:[#allocation60_spill] sm:$0xff] %v4460_v11  ;;  %v1591_v29 = vmax.f32 %v4449_v35, %v4457_v30  ;;  %v4465_v60 = vsub.f32 %v508_v23, %v4109_v41  ;;  %v4468_v31 = vsub.f32 %v953_v4, %v4125_v53 }
 0x183   :  { %v1588_v22 = vmax.f32 %v1587_v61, %v4452_v24  ;;  %v510_v58 = vpop.f32.mrf.mxu0  ;;  %v957_v59 = vpop.f32.mrf.mxu1 }
 0x184   :  { %8240 = vst [vmem:[#allocation61_spill] sm:$0xff] %v4465_v60  ;;  %8241 = vst [vmem:[#allocation62_spill] sm:$0xff] %v4468_v31  ;;  %v1592_v47 = vmax.f32 %v1591_v29, %v4460_v11  ;;  %v4473_v3 = vsub.f32 %v510_v58, %v4111_v42  ;;  %v4476_v15 = vsub.f32 %v957_v59, %v4113_v43 }
 0x185   :  { %1589 = vmax.xlane.f32.xlu0 %v1588_v22  ;;  %v514_v30 = vpop.f32.mrf.mxu0  ;;  %v959_v35 = vpop.f32.mrf.mxu1 }
 0x186   :  { %8242 = vst [vmem:[#allocation63_spill] sm:$0xff] %v4473_v3  ;;  %8243 = vst [vmem:[#allocation64_spill] sm:$0xff] %v4476_v15  ;;  %v1596_v23 = vmax.f32 %v4465_v60, %v4473_v3  ;;  %v4481_v4 = vsub.f32 %v514_v30, %v4109_v41  ;;  %v4484_v61 = vsub.f32 %v959_v35, %v4125_v53 }
 0x187   :  { %v1593_v29 = vmax.f32 %v1592_v47, %v4468_v31  ;;  %v516_v11 = vpop.f32.mrf.mxu0  ;;  %v963_v58 = vpop.f32.mrf.mxu1 }
 0x188   :  { %8244 = vst [vmem:[#allocation65_spill] sm:$0xff] %v4481_v4  ;;  %8245 = vst [vmem:[#allocation66_spill] sm:$0xff] %v4484_v61  ;;  %v1597_v22 = vmax.f32 %v1596_v23, %v4476_v15  ;;  %v4489_v59 = vsub.f32 %v516_v11, %v4111_v42  ;;  %v4492_v24 = vsub.f32 %v963_v58, %v4113_v43 }
 0x189   :  { %1594 = vmax.xlane.f32.xlu1 %v1593_v29  ;;  %v520_v3 = vpop.f32.mrf.mxu0  ;;  %v965_v60 = vpop.f32.mrf.mxu1 }
 0x18a   :  { %8246 = vst [vmem:[#allocation67_spill] sm:$0xff] %v4489_v59  ;;  %8247 = vst [vmem:[#allocation68_spill] sm:$0xff] %v4492_v24  ;;  %v1601_v30 = vmax.f32 %v4481_v4, %v4489_v59  ;;  %v4497_v35 = vsub.f32 %v520_v3, %v4109_v41  ;;  %v4500_v47 = vsub.f32 %v965_v60, %v4125_v53 }
 0x18b   :  { %v1598_v23 = vmax.f32 %v1597_v22, %v4484_v61  ;;  %v522_v31 = vpop.f32.mrf.mxu0  ;;  %v969_v11 = vpop.f32.mrf.mxu1 }
 0x18c   :  { %8248 = vst [vmem:[#allocation69_spill] sm:$0xff] %v4497_v35  ;;  %8249 = vst [vmem:[#allocation70_spill] sm:$0xff] %v4500_v47  ;;  %v1602_v29 = vmax.f32 %v1601_v30, %v4492_v24  ;;  %v4505_v58 = vsub.f32 %v522_v31, %v4111_v42  ;;  %v4508_v15 = vsub.f32 %v969_v11, %v4113_v43 }
 0x18d   :  { %1599 = vmax.xlane.f32.xlu0 %v1598_v23  ;;  %v526_v59 = vpop.f32.mrf.mxu0  ;;  %v971_v4 = vpop.f32.mrf.mxu1 }
 0x18e   :  { %8250 = vst [vmem:[#allocation71_spill] sm:$0xff] %v4505_v58  ;;  %8251 = vst [vmem:[#allocation72_spill] sm:$0xff] %v4508_v15  ;;  %v1606_v3 = vmax.f32 %v4497_v35, %v4505_v58  ;;  %v4513_v60 = vsub.f32 %v526_v59, %v4109_v41  ;;  %v4516_v22 = vsub.f32 %v971_v4, %v4125_v53 }
 0x18f   :  { %v1603_v30 = vmax.f32 %v1602_v29, %v4500_v47  ;;  %v528_v61 = vpop.f32.mrf.mxu0  ;;  %v975_v31 = vpop.f32.mrf.mxu1 }
 0x190   :  { %8252 = vst [vmem:[#allocation73_spill] sm:$0xff] %v4513_v60  ;;  %8253 = vst [vmem:[#allocation74_spill] sm:$0xff] %v4516_v22  ;;  %v1607_v23 = vmax.f32 %v1606_v3, %v4508_v15  ;;  %v4521_v11 = vsub.f32 %v528_v61, %v4111_v42  ;;  %v4524_v24 = vsub.f32 %v975_v31, %v4113_v43 }
 0x191   :  { %1604 = vmax.xlane.f32.xlu1 %v1603_v30  ;;  %v532_v58 = vpop.f32.mrf.mxu0  ;;  %v977_v35 = vpop.f32.mrf.mxu1 }
 0x192   :  { %8254 = vst [vmem:[#allocation75_spill] sm:$0xff] %v4521_v11  ;;  %8255 = vst [vmem:[#allocation76_spill] sm:$0xff] %v4524_v24  ;;  %v1611_v59 = vmax.f32 %v4513_v60, %v4521_v11  ;;  %v4529_v4 = vsub.f32 %v532_v58, %v4109_v41  ;;  %v4532_v29 = vsub.f32 %v977_v35, %v4125_v53 }
 0x193   :  { %v1608_v3 = vmax.f32 %v1607_v23, %v4516_v22  ;;  %v534_v47 = vpop.f32.mrf.mxu0  ;;  %v981_v61 = vpop.f32.mrf.mxu1 }
 0x194   :  { %8256 = vst [vmem:[#allocation77_spill] sm:$0xff] %v4529_v4  ;;  %8257 = vst [vmem:[#allocation78_spill] sm:$0xff] %v4532_v29  ;;  %v1612_v30 = vmax.f32 %v1611_v59, %v4524_v24  ;;  %v4537_v31 = vsub.f32 %v534_v47, %v4111_v42  ;;  %v4540_v15 = vsub.f32 %v981_v61, %v4113_v43 }
 0x195   :  { %1609 = vmax.xlane.f32.xlu0 %v1608_v3  ;;  %v538_v11 = vpop.f32.mrf.mxu0  ;;  %v983_v60 = vpop.f32.mrf.mxu1 }
 0x196   :  { %8258 = vst [vmem:[#allocation79_spill] sm:$0xff] %v4537_v31  ;;  %8259 = vst [vmem:[#allocation80_spill] sm:$0xff] %v4540_v15  ;;  %v1616_v58 = vmax.f32 %v4529_v4, %v4537_v31  ;;  %v4545_v35 = vsub.f32 %v538_v11, %v4109_v41  ;;  %v4548_v23 = vsub.f32 %v983_v60, %v4125_v53 }
 0x197   :  { %v1613_v59 = vmax.f32 %v1612_v30, %v4532_v29  ;;  %v540_v24 = vpop.f32.mrf.mxu0  ;;  %v987_v47 = vpop.f32.mrf.mxu1 }
 0x198   :  { %8260 = vst [vmem:[#allocation81_spill] sm:$0xff] %v4545_v35  ;;  %8261 = vst [vmem:[#allocation82_spill] sm:$0xff] %v4548_v23  ;;  %v1617_v3 = vmax.f32 %v1616_v58, %v4540_v15  ;;  %v4553_v61 = vsub.f32 %v540_v24, %v4111_v42  ;;  %v4556_v22 = vsub.f32 %v987_v47, %v4113_v43 }
 0x199   :  { %1614 = vmax.xlane.f32.xlu1 %v1613_v59  ;;  %v544_v31 = vpop.f32.mrf.mxu0  ;;  %v989_v4 = vpop.f32.mrf.mxu1 }
 0x19a   :  { %8262 = vst [vmem:[#allocation83_spill] sm:$0xff] %v4553_v61  ;;  %8263 = vst [vmem:[#allocation84_spill] sm:$0xff] %v4556_v22  ;;  %v1621_v11 = vmax.f32 %v4545_v35, %v4553_v61  ;;  %v4561_v60 = vsub.f32 %v544_v31, %v4109_v41  ;;  %v4564_v30 = vsub.f32 %v989_v4, %v4125_v53 }
 0x19b   :  { %v1618_v58 = vmax.f32 %v1617_v3, %v4548_v23  ;;  %v546_v29 = vpop.f32.mrf.mxu0  ;;  %v993_v24 = vpop.f32.mrf.mxu1 }
 0x19c   :  { %8264 = vst [vmem:[#allocation85_spill] sm:$0xff] %v4561_v60  ;;  %8265 = vst [vmem:[#allocation86_spill] sm:$0xff] %v4564_v30  ;;  %v1622_v59 = vmax.f32 %v1621_v11, %v4556_v22  ;;  %v4569_v47 = vsub.f32 %v546_v29, %v4111_v42  ;;  %v4572_v15 = vsub.f32 %v993_v24, %v4113_v43 }
 0x19d   :  { %1619 = vmax.xlane.f32.xlu0 %v1618_v58  ;;  %v550_v61 = vpop.f32.mrf.mxu0  ;;  %v995_v35 = vpop.f32.mrf.mxu1 }
 0x19e   :  { %8266 = vst [vmem:[#allocation87_spill] sm:$0xff] %v4569_v47  ;;  %8267 = vst [vmem:[#allocation88_spill] sm:$0xff] %v4572_v15  ;;  %v1626_v31 = vmax.f32 %v4561_v60, %v4569_v47  ;;  %v4577_v4 = vsub.f32 %v550_v61, %v4109_v41  ;;  %v4580_v3 = vsub.f32 %v995_v35, %v4125_v53 }
 0x19f   :  { %v1623_v11 = vmax.f32 %v1622_v59, %v4564_v30  ;;  %v552_v22 = vpop.f32.mrf.mxu0  ;;  %v999_v29 = vpop.f32.mrf.mxu1 }
 0x1a0   :  { %8268 = vst [vmem:[#allocation89_spill] sm:$0xff] %v4577_v4  ;;  %8269 = vst [vmem:[#allocation90_spill] sm:$0xff] %v4580_v3  ;;  %v1627_v58 = vmax.f32 %v1626_v31, %v4572_v15  ;;  %v4585_v24 = vsub.f32 %v552_v22, %v4111_v42  ;;  %v4588_v23 = vsub.f32 %v999_v29, %v4113_v43 }
 0x1a1   :  { %1624 = vmax.xlane.f32.xlu1 %v1623_v11  ;;  %v556_v47 = vpop.f32.mrf.mxu0  ;;  %v1001_v60 = vpop.f32.mrf.mxu1 }
 0x1a2   :  { %8270 = vst [vmem:[#allocation91_spill] sm:$0xff] %v4585_v24  ;;  %8271 = vst [vmem:[#allocation92_spill] sm:$0xff] %v4588_v23  ;;  %v1631_v61 = vmax.f32 %v4577_v4, %v4585_v24  ;;  %v4593_v35 = vsub.f32 %v556_v47, %v4109_v41  ;;  %v4596_v59 = vsub.f32 %v1001_v60, %v4125_v53 }
 0x1a3   :  { %v1628_v31 = vmax.f32 %v1627_v58, %v4580_v3  ;;  %v558_v30 = vpop.f32.mrf.mxu0  ;;  %v1005_v22 = vpop.f32.mrf.mxu1 }
 0x1a4   :  { %8272 = vst [vmem:[#allocation93_spill] sm:$0xff] %v4593_v35  ;;  %8273 = vst [vmem:[#allocation94_spill] sm:$0xff] %v4596_v59  ;;  %v1632_v11 = vmax.f32 %v1631_v61, %v4588_v23  ;;  %v4601_v29 = vsub.f32 %v558_v30, %v4111_v42  ;;  %v4604_v15 = vsub.f32 %v1005_v22, %v4113_v43 }
 0x1a5   :  { %1629 = vmax.xlane.f32.xlu0 %v1628_v31  ;;  %v562_v24 = vpop.f32.mrf.mxu0  ;;  %v1007_v4 = vpop.f32.mrf.mxu1 }
 0x1a6   :  { %8274 = vst [vmem:[#allocation95_spill] sm:$0xff] %v4601_v29  ;;  %8275 = vst [vmem:[#allocation96_spill] sm:$0xff] %v4604_v15  ;;  %v1636_v47 = vmax.f32 %v4593_v35, %v4601_v29  ;;  %v4609_v60 = vsub.f32 %v562_v24, %v4109_v41  ;;  %v4612_v58 = vsub.f32 %v1007_v4, %v4125_v53 }
 0x1a7   :  { %v1633_v61 = vmax.f32 %v1632_v11, %v4596_v59  ;;  %v564_v23 = vpop.f32.mrf.mxu0  ;;  %v1011_v30 = vpop.f32.mrf.mxu1 }
 0x1a8   :  { %8276 = vst [vmem:[#allocation97_spill] sm:$0xff] %v4609_v60  ;;  %8277 = vst [vmem:[#allocation98_spill] sm:$0xff] %v4612_v58  ;;  %v1637_v31 = vmax.f32 %v1636_v47, %v4604_v15  ;;  %v4617_v22 = vsub.f32 %v564_v23, %v4111_v42  ;;  %v4620_v3 = vsub.f32 %v1011_v30, %v4113_v43 }
 0x1a9   :  { %1634 = vmax.xlane.f32.xlu1 %v1633_v61  ;;  %v568_v29 = vpop.f32.mrf.mxu0  ;;  %v1013_v35 = vpop.f32.mrf.mxu1 }
 0x1aa   :  { %8278 = vst [vmem:[#allocation99_spill] sm:$0xff] %v4617_v22  ;;  %8279 = vst [vmem:[#allocation100_spill] sm:$0xff] %v4620_v3  ;;  %v1641_v24 = vmax.f32 %v4609_v60, %v4617_v22  ;;  %v4625_v4 = vsub.f32 %v568_v29, %v4109_v41  ;;  %v4628_v11 = vsub.f32 %v1013_v35, %v4125_v53 }
 0x1ab   :  { %v1638_v47 = vmax.f32 %v1637_v31, %v4612_v58  ;;  %v570_v59 = vpop.f32.mrf.mxu0  ;;  %v1017_v23 = vpop.f32.mrf.mxu1 }
 0x1ac   :  { %8280 = vst [vmem:[#allocation101_spill] sm:$0xff] %v4625_v4  ;;  %8281 = vst [vmem:[#allocation102_spill] sm:$0xff] %v4628_v11  ;;  %v1642_v61 = vmax.f32 %v1641_v24, %v4620_v3  ;;  %v4633_v30 = vsub.f32 %v570_v59, %v4111_v42  ;;  %v4636_v15 = vsub.f32 %v1017_v23, %v4113_v43 }
 0x1ad   :  { %1639 = vmax.xlane.f32.xlu0 %v1638_v47  ;;  %v574_v22 = vpop.f32.mrf.mxu0  ;;  %v1019_v60 = vpop.f32.mrf.mxu1 }
 0x1ae   :  { %8282 = vst [vmem:[#allocation103_spill] sm:$0xff] %v4633_v30  ;;  %8283 = vst [vmem:[#allocation104_spill] sm:$0xff] %v4636_v15  ;;  %v1646_v29 = vmax.f32 %v4625_v4, %v4633_v30  ;;  %v4641_v35 = vsub.f32 %v574_v22, %v4109_v41  ;;  %v4644_v31 = vsub.f32 %v1019_v60, %v4125_v53 }
 0x1af   :  { %v1643_v24 = vmax.f32 %v1642_v61, %v4628_v11  ;;  %v576_v3 = vpop.f32.mrf.mxu0  ;;  %v1023_v59 = vpop.f32.mrf.mxu1 }
 0x1b0   :  { %8284 = vst [vmem:[#allocation105_spill] sm:$0xff] %v4641_v35  ;;  %8285 = vst [vmem:[#allocation106_spill] sm:$0xff] %v4644_v31  ;;  %v1647_v47 = vmax.f32 %v1646_v29, %v4636_v15  ;;  %v4649_v23 = vsub.f32 %v576_v3, %v4111_v42  ;;  %v4652_v58 = vsub.f32 %v1023_v59, %v4113_v43 }
 0x1b1   :  { %1644 = vmax.xlane.f32.xlu1 %v1643_v24  ;;  %v580_v30 = vpop.f32.mrf.mxu0  ;;  %v1025_v4 = vpop.f32.mrf.mxu1 }
 0x1b2   :  { %8286 = vst [vmem:[#allocation107_spill] sm:$0xff] %v4649_v23  ;;  %8287 = vst [vmem:[#allocation108_spill] sm:$0xff] %v4652_v58  ;;  %v1651_v22 = vmax.f32 %v4641_v35, %v4649_v23  ;;  %v4657_v60 = vsub.f32 %v580_v30, %v4109_v41  ;;  %v4660_v61 = vsub.f32 %v1025_v4, %v4125_v53 }
 0x1b3   :  { %v1648_v29 = vmax.f32 %v1647_v47, %v4644_v31  ;;  %v582_v15 = vpop.f32.mrf.mxu0  ;;  %v1029_v3 = vpop.f32.mrf.mxu1  ;;  %v8294_v31 = vlaneseq }
 0x1b4   :  { %8288 = vst [vmem:[#allocation109_spill] sm:$0xff] %v4657_v60  ;;  %8289 = vst [vmem:[#allocation110_spill] sm:$0xff] %v4660_v61  ;;  %v1652_v24 = vmax.f32 %v1651_v22, %v4652_v58  ;;  %v4665_v59 = vsub.f32 %v582_v15, %v4111_v42  ;;  %v4668_v11 = vsub.f32 %v1029_v3, %v4113_v43 }
 0x1b5   :  { %1649 = vmax.xlane.f32.xlu0 %v1648_v29  ;;  %v586_v23 = vpop.f32.mrf.mxu0  ;;  %v1031_v35 = vpop.f32.mrf.mxu1  ;;  %v4680_v15 = vand.u32 127, %v8294_v31 }
 0x1b6   :  { %8290 = vst [vmem:[#allocation111_spill] sm:$0xff] %v4665_v59  ;;  %8291 = vst [vmem:[#allocation112_spill] sm:$0xff] %v4668_v11  ;;  %v1656_v30 = vmax.f32 %v4657_v60, %v4665_v59  ;;  %v4673_v4 = vsub.f32 %v586_v23, %v4109_v41  ;;  %v4676_v47 = vsub.f32 %v1031_v35, %v4125_v53 }
 0x1b7   :  { %v1653_v22 = vmax.f32 %v1652_v24, %v4660_v61  ;;  %v588_v29 = vpop.f32.mrf.mxu0  ;;  %v1035_v58 = vpop.f32.mrf.mxu1 }
 0x1b8   :  { %8292 = vst [vmem:[#allocation113_spill] sm:$0xff] %v4673_v4  ;;  %8293 = vst [vmem:[#allocation114_spill] sm:$0xff] %v4676_v47  ;;  %v1657_v3 = vmax.f32 %v1656_v30, %v4668_v11  ;;  %v4684_v38 = vsub.f32 %v588_v29, %v4111_v42  ;;  %v4687_v59 = vsub.f32 %v1035_v58, %v4113_v43 }
 0x1b9   :  { %1654 = vmax.xlane.f32.xlu1 %v1653_v22  ;;  %v592_v23 = vpop.f32.mrf.mxu0  ;;  %v1037_v60 = vpop.f32.mrf.mxu1  ;;  %v4699_v22 = vadd.s32 128, %v4680_v15 }
 0x1ba   :  { %8295 = vst [vmem:[#allocation115_spill] sm:$0xff] %v4684_v38  ;;  %8296 = vst [vmem:[#allocation116_spill] sm:$0xff] %v4687_v59  ;;  %v1661_v35 = vmax.f32 %v4673_v4, %v4684_v38  ;;  %v4692_v24 = vsub.f32 %v592_v23, %v4109_v41  ;;  %v1658_v31 = vmax.f32 %v1657_v3, %v4676_v47  ;;  %v4709_v3 = vadd.s32 256, %v4680_v15 }
 0x1bb   :  { %v594_v61 = vpop.f32.mrf.mxu0  ;;  %v4696_v30 = vsub.f32 %v1037_v60, %v4125_v53  ;;  %v1041_v29 = vpop.f32.mrf.mxu1 }
 0x1bc   :  { %8297 = vst [vmem:[#allocation117_spill] sm:$0xff] %v4692_v24  ;;  %v1662_v58 = vmax.f32 %v1661_v35, %v4687_v59  ;;  %v4703_v11 = vsub.f32 %v594_v61, %v4111_v42  ;;  %1659 = vmax.xlane.f32.xlu0 %v1658_v31  ;;  %v4706_v38 = vsub.f32 %v1041_v29, %v4113_v43 }
 0x1bd   :  { %8298 = vst [vmem:[#allocation118_spill] sm:$0xff] %v4696_v30  ;;  %v1490_v23 = vpop.xlane.xlu0 %1489  ;;  %v598_v4 = vpop.f32.mrf.mxu0 }
 0x1be   :  { %8299 = vst [vmem:[#allocation119_spill] sm:$0xff] %v4703_v11  ;;  %8300 = vst [vmem:[#allocation120_spill] sm:$0xff] %v4706_v38  ;;  %v1666_v60 = vmax.f32 %v4692_v24, %v4703_v11  ;;  %vm1811_vm0 = vcmp.eq.f32.partialorder %v4117_v50, %v1490_v23  ;;  %vm1812_vm1 = vcmp.eq.f32.partialorder %v4120_v51, %v1490_v23  ;;  %v1043_v61 = vpop.f32.mrf.mxu1 }
 0x1bf   :  { %v4716_v35 = vsub.f32 %v598_v4, %v4109_v41  ;;  %v2067_v31 = vsel %vm1811_vm0, %v4680_v15, 512  ;;  %v2068_v29 = vsel %vm1812_vm1, %v4699_v22, 512  ;;  %v600_v47 = vpop.f32.mrf.mxu0  ;;  %v4721_v59 = vsub.f32 %v1043_v61, %v4125_v53 }
 0x1c0   :  { %v1663_v46 = vmax.f32 %v1662_v58, %v4696_v30  ;;  %v1667_v11 = vmax.f32 %v1666_v60, %v4706_v38  ;;  %v4726_v50 = vsub.f32 %v600_v47, %v4111_v42  ;;  %v1047_v51 = vpop.f32.mrf.mxu1  ;;  %vm1813_vm2 = vcmp.eq.f32.partialorder %v4123_v52, %v1490_v23 }
 0x1c1   :  { %8301 = vst [vmem:[#allocation121_spill] sm:$0xff] %v4716_v35  ;;  %8302 = vst [vmem:[#allocation122_spill] sm:$0xff] %v4721_v59  ;;  %v4730_v4 = vsub.f32 %v1047_v51, %v4113_v43  ;;  %v4732_v24 = vpop.xlane.xlu0 %1494  ;;  %v604_v32 = vpop.f32.mrf.mxu0  ;;  %vm2323_vm3 = vcmp.lt.s32.totalorder %v2067_v31, %v2068_v29  ;;  %v4741_v52 = vadd.s32 384, %v4680_v15  ;;  %vm1814_vm6 = vcmp.eq.f32.partialorder %v4133_v62, %v1490_v23 }
 0x1c2   :  { %8303 = vst [vmem:[#allocation123_spill] sm:$0xff] %v4726_v50  ;;  %1664 = vmax.xlane.f32.xlu1 %v1663_v46  ;;  %v1671_v61 = vmax.f32 %v4716_v35, %v4726_v50  ;;  %v1049_v58 = vpop.f32.mrf.mxu1  ;;  %v1668_v47 = vmax.f32 %v1667_v11, %v4721_v59  ;;  %v2069_v46 = vsel %vm1813_vm2, %v4709_v3, 512  ;;  %vm1815_vm4 = vcmp.eq.f32.partialorder %v4130_v57, %v4732_v24 }
 0x1c3   :  { %8304 = vst [vmem:[#allocation124_spill] sm:$0xff] %v4730_v4  ;;  %v606_v30 = vpop.f32.mrf.mxu0  ;;  %v4737_v60 = vsub.f32 %v1049_v58, %v4125_v53  ;;  %vm1816_vm5 = vcmp.eq.f32.partialorder %v4136_v63, %v4732_v24  ;;  %v2324_v35 = vsel %vm2323_vm3, %v2067_v31, %v2068_v29  ;;  %v4751_v11 = vsub.f32 %v604_v32, %v4109_v41 }
 0x1c4   :  { %v1672_v51 = vmax.f32 %v1671_v61, %v4730_v4  ;;  %v1053_v50 = vpop.f32.mrf.mxu1  ;;  %1669 = vmax.xlane.f32.xlu0 %v1668_v47  ;;  %vm2325_vm7 = vcmp.lt.s32.totalorder %v2324_v35, %v2069_v46  ;;  %v4754_v59 = vsub.f32 %v606_v30, %v4111_v42  ;;  %v2071_v4 = vsel %vm1815_vm4, %v4680_v15, 512 }
 0x1c5   :  { %8305 = vst [vmem:[#allocation125_spill] sm:$0xff] %v4737_v60  ;;  %v610_v58 = vpop.f32.mrf.mxu0  ;;  %8306 = vst [vmem:[#allocation126_spill] sm:$0xff] %v4751_v11  ;;  %v2072_v63 = vsel %vm1816_vm5, %v4699_v22, 512  ;;  %v4761_v31 = vpop.xlane.xlu1 %1499  ;;  %v2070_v30 = vsel %vm1814_vm6, %v4741_v52, 512  ;;  %v2326_v47 = vsel %vm2325_vm7, %v2324_v35, %v2069_v46  ;;  %vm1817_vm12 = vcmp.eq.f32.partialorder %v4139_v0, %v4732_v24 }
 0x1c6   :  { %8307 = vst [vmem:[#allocation127_spill] sm:$0xff] %v4754_v59  ;;  %v4757_v61 = vsub.f32 %v610_v58, %v4109_v41  ;;  %v1055_v57 = vpop.f32.mrf.mxu1  ;;  %v1673_v62 = vmax.f32 %v1672_v51, %v4737_v60  ;;  %v4769_v58 = vsub.f32 %v1053_v50, %v4113_v43  ;;  %vm2327_vm8 = vcmp.lt.s32.totalorder %v2326_v47, %v2070_v30 }
 0x1c7   :  { %v612_v29 = vpop.f32.mrf.mxu0  ;;  %v1676_v12 = vmax.f32 %v4751_v11, %v4754_v59  ;;  %vm1819_vm9 = vcmp.eq.f32.partialorder %v4145_v5, %v4761_v31  ;;  %vm2343_vm10 = vcmp.lt.s32.totalorder %v2071_v4, %v2072_v63  ;;  %vm1820_vm11 = vcmp.eq.f32.partialorder %v4153_v13, %v4761_v31 }
 0x1c8   :  { %8308 = vst [vmem:[#allocation128_spill] sm:$0xff] %v4757_v61  ;;  %v4765_v23 = vsub.f32 %v612_v29, %v4111_v42  ;;  %v1059_v32 = vpop.f32.mrf.mxu1  ;;  %8310 = vst [vmem:[#allocation130_spill] sm:$0xff] %v4769_v58  ;;  %1674 = vmax.xlane.f32.xlu1 %v1673_v62  ;;  %v4782_v35 = vsel %vm2327_vm8, %v2326_v47, %v2070_v30  ;;  %v2075_v5 = vsel %vm1819_vm9, %v4680_v15, 512  ;;  %v2076_v30 = vsel %vm1820_vm11, %v4699_v22, 512 }
 0x1c9   :  { %v4772_v38 = vsub.f32 %v1059_v32, %v4113_v43  ;;  %v616_v37 = vpop.f32.mrf.mxu0  ;;  %v2330_v62 = vshra.s32 %v4782_v35, 16  ;;  %v2344_v60 = vsel %vm2343_vm10, %v2071_v4, %v2072_v63  ;;  %v1677_v13 = vmax.f32 %v1676_v12, %v4769_v58  ;;  %v4821_v58 = vpop.xlane.xlu1 %1504 }
 0x1ca   :  { %8309 = vst [vmem:[#allocation129_spill] sm:$0xff] %v4765_v23  ;;  %v1681_v51 = vmax.f32 %v4757_v61, %v4765_v23  ;;  %v1061_v29 = vpop.f32.mrf.mxu1  ;;  %v4795_v47 = vsub.f32 %v1055_v57, %v4125_v53  ;;  %vm1818_vm13 = vcmp.eq.f32.partialorder %v4148_v6, %v4732_v24  ;;  %v2073_v0 = vsel %vm1817_vm12, %v4709_v3, 512 }
 0x1cb   :  { %8311 = vst [vmem:[#allocation131_spill] sm:$0xff] %v4772_v38  ;;  %v618_v50 = vpop.f32.mrf.mxu0  ;;  %v4787_v32 = vsub.f32 %v1061_v29, %v4125_v53  ;;  %vm2345_vm14 = vcmp.lt.s32.totalorder %v2344_v60, %v2073_v0  ;;  %vm1821_vm15 = vcmp.eq.f32.partialorder %v4156_v14, %v4761_v31  ;;  %vm2363_vm0 = vcmp.lt.s32.totalorder %v2075_v5, %v2076_v30 }
 0x1cc   :  { %v1682_v46 = vmax.f32 %v1681_v51, %v4772_v38  ;;  %v1065_v59 = vpop.f32.mrf.mxu1  ;;  %8313 = vst [vmem:[#allocation133_spill] sm:$0xff] %v4795_v47  ;;  %v4797_v51 = vcvt.s32.f32 %v2330_v62  ;;  %v2346_v62 = vsel %vm2345_vm14, %v2344_v60, %v2073_v0  ;;  %v1678_v6 = vmax.f32 %v1677_v13, %v4795_v47 }
 0x1cd   :  { %8312 = vst [vmem:[#allocation132_spill] sm:$0xff] %v4787_v32  ;;  %v622_v11 = vpop.f32.mrf.mxu0  ;;  %v4827_v60 = vsub.f32 %v618_v50, %v4111_v42  ;;  %vm1822_vm2 = vcmp.eq.f32.partialorder %v4164_v19, %v4761_v31  ;;  %vm1823_vm4 = vcmp.eq.f32.partialorder %v4161_v18, %v4821_v58  ;;  %vm1824_vm5 = vcmp.eq.f32.partialorder %v4168_v25, %v4821_v58  ;;  %v1510_v18 = vpop.xlane.xlu0 %1509 }
 0x1ce   :  { %v1067_v38 = vpop.f32.mrf.mxu1  ;;  %v4800_v29 = vsub.f32 %v622_v11, %v4109_v41  ;;  %2333 = vmin.xlane.f32.xlu0 %v4797_v51  ;;  %v1683_v4 = vmax.f32 %v1682_v46, %v4787_v32  ;;  %v4852_v14 = vsub.f32 %v1065_v59, %v4113_v43  ;;  %vm1825_vm7 = vcmp.eq.f32.partialorder %v4171_v26, %v4821_v58 }
 0x1cf   :  { %v624_v23 = vpop.f32.mrf.mxu0  ;;  %8318 = vst [vmem:[#allocation138_spill] sm:$0xff] %v4827_v60  ;;  %vm1826_vm9 = vcmp.eq.f32.partialorder %v4180_v34, %v4821_v58  ;;  %vm1827_vm10 = vcmp.eq.f32.partialorder %v4177_v33, %v1510_v18  ;;  %vm1828_vm11 = vcmp.eq.f32.partialorder %v4185_v44, %v1510_v18  ;;  %vm1829_vm14 = vcmp.eq.f32.partialorder %v4188_v45, %v1510_v18 }
 0x1d0   :  { %8314 = vst [vmem:[#allocation134_spill] sm:$0xff] %v4800_v29  ;;  %v4807_v12 = vsub.f32 %v624_v23, %v4111_v42  ;;  %v1071_v57 = vpop.f32.mrf.mxu1  ;;  %1684 = vmax.xlane.f32.xlu1 %v1683_v4  ;;  %v2074_v23 = vsel %vm1818_vm13, %v4741_v52, 512  ;;  %v2364_v4 = vsel %vm2363_vm0, %v2075_v5, %v2076_v30  ;;  %8320 = vst [vmem:[#allocation140_spill] sm:$0xff] %v4852_v14  ;;  %v2082_v34 = vsel %vm1826_vm9, %v4741_v52, 512 }
 0x1d1   :  { %v4811_v63 = vsub.f32 %v1071_v57, %v4113_v43  ;;  %v4813_v11 = vpop.f32.mrf.mxu0  ;;  %v4824_v57 = vsub.f32 %v616_v37, %v4109_v41  ;;  %vm2347_vm1 = vcmp.lt.s32.totalorder %v2346_v62, %v2074_v23  ;;  %v2077_v37 = vsel %vm1821_vm15, %v4709_v3, 512 }
 0x1d2   :  { %8315 = vst [vmem:[#allocation135_spill] sm:$0xff] %v4807_v12  ;;  %v1691_v24 = vmax.f32 %v4800_v29, %v4807_v12  ;;  %v1073_v46 = vpop.f32.mrf.mxu1  ;;  %1679 = vmax.xlane.f32.xlu0 %v1678_v6  ;;  %v4831_v13 = vsel %vm2347_vm1, %v2346_v62, %v2074_v23  ;;  %vm2365_vm3 = vcmp.lt.s32.totalorder %v2364_v4, %v2077_v37  ;;  %v2085_v45 = vsel %vm1829_vm14, %v4709_v3, 512 }
 0x1d3   :  { %8316 = vst [vmem:[#allocation136_spill] sm:$0xff] %v4811_v63  ;;  %8317 = vst [vmem:[#allocation137_spill] sm:$0xff] %v4824_v57  ;;  %v4829_v0 = vpop.f32.mrf.mxu0  ;;  %v2350_v12 = vshra.s32 %v4831_v13, 16  ;;  %v4845_v6 = vsub.f32 %v1073_v46, %v4125_v53  ;;  %v1686_v5 = vmax.f32 %v4824_v57, %v4827_v60  ;;  %v2366_v23 = vsel %vm2365_vm3, %v2364_v4, %v2077_v37 }
 0x1d4   :  { %v4833_v47 = vpop.f32.mrf.mxu1  ;;  %v1692_v50 = vmax.f32 %v1691_v24, %v4811_v63  ;;  %v2078_v24 = vsel %vm1822_vm2, %v4741_v52, 512  ;;  %v2079_v37 = vsel %vm1823_vm4, %v4680_v15, 512  ;;  %v2080_v4 = vsel %vm1824_vm5, %v4699_v22, 512 }
 0x1d5   :  { %8319 = vst [vmem:[#allocation139_spill] sm:$0xff] %v4845_v6  ;;  %v634_v62 = vpop.f32.mrf.mxu0  ;;  %v4861_v30 = vcvt.s32.f32 %v2350_v12  ;;  %vm2367_vm6 = vcmp.lt.s32.totalorder %v2366_v23, %v2078_v24  ;;  %vm2383_vm8 = vcmp.lt.s32.totalorder %v2079_v37, %v2080_v4  ;;  %vm1830_vm15 = vcmp.eq.f32.partialorder %v4196_v54, %v1510_v18 }
 0x1d6   :  { %v4855_v19 = vsub.f32 %v634_v62, %v4109_v41  ;;  %v4857_v31 = vpop.f32.mrf.mxu1  ;;  %v4868_v62 = vsel %vm2367_vm6, %v2366_v23, %v2078_v24  ;;  %v1693_v29 = vmax.f32 %v1692_v50, %v4845_v6 }
 0x1d7   :  { %v636_v46 = vpop.f32.mrf.mxu0  ;;  %2353 = vmin.xlane.f32.xlu0 %v4861_v30  ;;  %v2370_v24 = vshra.s32 %v4868_v62, 16 }
 0x1d8   :  { %8321 = vst [vmem:[#allocation141_spill] sm:$0xff] %v4855_v19  ;;  %v4865_v63 = vsub.f32 %v636_v46, %v4111_v42  ;;  %v1083_v59 = vpop.f32.mrf.mxu1  ;;  %v1687_v46 = vmax.f32 %v1686_v5, %v4852_v14  ;;  %1694 = vmax.xlane.f32.xlu1 %v1693_v29 }
 0x1d9   :  { %v4872_v32 = vsub.f32 %v1083_v59, %v4113_v43  ;;  %v4874_v12 = vpop.f32.mrf.mxu0  ;;  %v4889_v59 = vsub.f32 %v1067_v38, %v4125_v53  ;;  %v4893_v60 = vcvt.s32.f32 %v2370_v24  ;;  %v2081_v24 = vsel %vm1825_vm7, %v4709_v3, 512 }
 0x1da   :  { %8322 = vst [vmem:[#allocation142_spill] sm:$0xff] %v4865_v63  ;;  %v1701_v50 = vmax.f32 %v4855_v19, %v4865_v63  ;;  %v1085_v23 = vpop.f32.mrf.mxu1 }
 0x1db   :  { %8323 = vst [vmem:[#allocation143_spill] sm:$0xff] %v4872_v32  ;;  %8324 = vst [vmem:[#allocation144_spill] sm:$0xff] %v4889_v59  ;;  %v4891_v6 = vpop.f32.mrf.mxu0  ;;  %v4897_v57 = vsub.f32 %v1085_v23, %v4125_v53  ;;  %2373 = vmin.xlane.f32.xlu0 %v4893_v60  ;;  %v1688_v23 = vmax.f32 %v1687_v46, %v4889_v59 }
 0x1dc   :  { %8325 = vst [vmem:[#allocation145_spill] sm:$0xff] %v4893_v60  ;;  %v1702_v25 = vmax.f32 %v1701_v50, %v4872_v32  ;;  %v4899_v61 = vpop.f32.mrf.mxu1  ;;  %v2384_v50 = vsel %vm2383_vm8, %v2079_v37, %v2080_v4  ;;  %v2083_v37 = vsel %vm1827_vm10, %v4680_v15, 512  ;;  %v2084_v4 = vsel %vm1828_vm11, %v4699_v22, 512 }
 0x1dd   :  { %8326 = vst [vmem:[#allocation146_spill] sm:$0xff] %v4897_v57  ;;  %v646_v5 = vpop.f32.mrf.mxu0  ;;  %vm2385_vm12 = vcmp.lt.s32.totalorder %v2384_v50, %v2081_v24  ;;  %vm2403_vm0 = vcmp.lt.s32.totalorder %v2083_v37, %v2084_v4 }
 0x1de   :  { %v4905_v38 = vsub.f32 %v646_v5, %v4109_v41  ;;  %v4909_v29 = vpop.f32.mrf.mxu1  ;;  %v1703_v5 = vmax.f32 %v1702_v25, %v4897_v57  ;;  %v2386_v58 = vsel %vm2385_vm12, %v2384_v50, %v2081_v24  ;;  %v4933_v24 = vsub.f32 %v4813_v11, %v4109_v41 }
 0x1df   :  { %v648_v26 = vpop.f32.mrf.mxu0  ;;  %1689 = vmax.xlane.f32.xlu0 %v1688_v23  ;;  %vm2387_vm13 = vcmp.lt.s32.totalorder %v2386_v58, %v2082_v34 }
 0x1e0   :  { %8327 = vst [vmem:[#allocation147_spill] sm:$0xff] %v4905_v38  ;;  %v4916_v32 = vsub.f32 %v648_v26, %v4111_v42  ;;  %v1095_v63 = vpop.f32.mrf.mxu1  ;;  %1704 = vmax.xlane.f32.xlu1 %v1703_v5  ;;  %v4929_v26 = vpop.xlane.xlu1 %1514  ;;  %8330 = vst [vmem:[#allocation150_spill] sm:$0xff] %v4933_v24  ;;  %v4939_v50 = vsel %vm2387_vm13, %v2386_v58, %v2082_v34  ;;  %v2404_v58 = vsel %vm2403_vm0, %v2083_v37, %v2084_v4 }
 0x1e1   :  { %v4921_v33 = vsub.f32 %v1095_v63, %v4113_v43  ;;  %v4923_v44 = vpop.f32.mrf.mxu0  ;;  %v4937_v63 = vsub.f32 %v4829_v0, %v4111_v42  ;;  %8332 = vst [vmem:[#allocation152_spill] sm:$0xff] %v4939_v50  ;;  %vm1831_vm1 = vcmp.eq.f32.partialorder %v4193_v49, %v4929_v26  ;;  %vm1832_vm2 = vcmp.eq.f32.partialorder %v4201_v1, %v4929_v26 }
 0x1e2   :  { %8328 = vst [vmem:[#allocation148_spill] sm:$0xff] %v4916_v32  ;;  %v1711_v46 = vmax.f32 %v4905_v38, %v4916_v32  ;;  %v1097_v25 = vpop.f32.mrf.mxu1  ;;  %v2390_v32 = vshra.s32 %v4939_v50, 16  ;;  %vm2405_vm3 = vcmp.lt.s32.totalorder %v2404_v58, %v2085_v45  ;;  %v2086_v37 = vsel %vm1830_vm15, %v4741_v52, 512 }
 0x1e3   :  { %8329 = vst [vmem:[#allocation149_spill] sm:$0xff] %v4921_v33  ;;  %8331 = vst [vmem:[#allocation151_spill] sm:$0xff] %v4937_v63  ;;  %v4942_v23 = vpop.f32.mrf.mxu0  ;;  %v4950_v11 = vsub.f32 %v1097_v25, %v4125_v53  ;;  %v4965_v25 = vsub.f32 %v4833_v47, %v4113_v43  ;;  %v2406_v4 = vsel %vm2405_vm3, %v2404_v58, %v2085_v45  ;;  %v2087_v14 = vsel %vm1831_vm1, %v4680_v15, 512 }
 0x1e4   :  { %v4945_v5 = vpop.f32.mrf.mxu1  ;;  %v1712_v57 = vmax.f32 %v1711_v46, %v4921_v33  ;;  %v4954_v34 = vcvt.s32.f32 %v2390_v32  ;;  %v1696_v46 = vmax.f32 %v4933_v24, %v4937_v63  ;;  %v4967_v33 = vpop.xlane.xlu0 %1519  ;;  %vm2407_vm4 = vcmp.lt.s32.totalorder %v2406_v4, %v2086_v37 }
 0x1e5   :  { %8333 = vst [vmem:[#allocation153_spill] sm:$0xff] %v4950_v11  ;;  %v658_v0 = vpop.f32.mrf.mxu0  ;;  %8335 = vst [vmem:[#allocation155_spill] sm:$0xff] %v4965_v25  ;;  %v2088_v54 = vsel %vm1832_vm2, %v4699_v22, 512  ;;  %vm1835_vm5 = vcmp.eq.f32.partialorder %v4209_v8, %v4967_v33  ;;  %v4992_v18 = vsel %vm2407_vm4, %v2406_v4, %v2086_v37  ;;  %vm1836_vm6 = vcmp.eq.f32.partialorder %v4217_v20, %v4967_v33  ;;  %v5001_v45 = vpop.xlane.xlu1 %1524 }
 0x1e6   :  { %8334 = vst [vmem:[#allocation154_spill] sm:$0xff] %v4954_v34  ;;  %v4957_v38 = vpop.f32.mrf.mxu1  ;;  %2393 = vmin.xlane.f32.xlu0 %v4954_v34  ;;  %v4974_v19 = vsub.f32 %v658_v0, %v4109_v41  ;;  %v1713_v47 = vmax.f32 %v1712_v57, %v4950_v11  ;;  %8338 = vst [vmem:[#allocation158_spill] sm:$0xff] %v4992_v18  ;;  %v1697_v57 = vmax.f32 %v1696_v46, %v4965_v25 }
 0x1e7   :  { %v660_v32 = vpop.f32.mrf.mxu0  ;;  %v4999_v49 = vsub.f32 %v4857_v31, %v4125_v53  ;;  %v2410_v1 = vshra.s32 %v4992_v18, 16  ;;  %vm1833_vm7 = vcmp.eq.f32.partialorder %v4204_v2, %v4929_v26  ;;  %v2091_v31 = vsel %vm1835_vm5, %v4680_v15, 512 }
 0x1e8   :  { %8336 = vst [vmem:[#allocation156_spill] sm:$0xff] %v4974_v19  ;;  %v4977_v59 = vsub.f32 %v660_v32, %v4111_v42  ;;  %v1107_v63 = vpop.f32.mrf.mxu1  ;;  %1714 = vmax.xlane.f32.xlu1 %v1713_v47  ;;  %vm1834_vm8 = vcmp.eq.f32.partialorder %v4212_v9, %v4929_v26  ;;  %vm2423_vm9 = vcmp.lt.s32.totalorder %v2087_v14, %v2088_v54  ;;  %v2092_v4 = vsel %vm1836_vm6, %v4699_v22, 512 }
 0x1e9   :  { %v4980_v24 = vpop.f32.mrf.mxu0  ;;  %8339 = vst [vmem:[#allocation159_spill] sm:$0xff] %v4999_v49  ;;  %v5009_v32 = vsub.f32 %v1107_v63, %v4113_v43  ;;  %v5016_v46 = vcvt.s32.f32 %v2410_v1  ;;  %vm1839_vm10 = vcmp.eq.f32.partialorder %v4225_v27, %v5001_v45  ;;  %v2089_v63 = vsel %vm1833_vm7, %v4709_v3, 512 }
 0x1ea   :  { %8337 = vst [vmem:[#allocation157_spill] sm:$0xff] %v4977_v59  ;;  %v1109_v0 = vpop.f32.mrf.mxu1  ;;  %v1721_v8 = vmax.f32 %v4974_v19, %v4977_v59  ;;  %v2424_v47 = vsel %vm2423_vm9, %v2087_v14, %v2088_v54  ;;  %v5028_v59 = vsub.f32 %v4874_v12, %v4109_v41  ;;  %v5032_v1 = vsub.f32 %v4891_v6, %v4111_v42 }
 0x1eb   :  { %v5004_v58 = vpop.f32.mrf.mxu0  ;;  %8340 = vst [vmem:[#allocation160_spill] sm:$0xff] %v5009_v32  ;;  %8341 = vst [vmem:[#allocation161_spill] sm:$0xff] %v5016_v46  ;;  %2413 = vmin.xlane.f32.xlu0 %v5016_v46  ;;  %v1698_v9 = vmax.f32 %v1697_v57, %v4999_v49  ;;  %vm2425_vm11 = vcmp.lt.s32.totalorder %v2424_v47, %v2089_v63  ;;  %v2090_v14 = vsel %vm1834_vm8, %v4741_v52, 512  ;;  %v5078_v49 = vpop.xlane.xlu0 %1529  ;;  %v8446_v46 = vld [vmem:[#allocation69_spill] sm:$0xff] }
 0x1ec   :  { %v5013_v20 = vpop.f32.mrf.mxu1  ;;  %8342 = vst [vmem:[#allocation162_spill] sm:$0xff] %v5028_v59  ;;  %8343 = vst [vmem:[#allocation163_spill] sm:$0xff] %v5032_v1  ;;  %v1722_v19 = vmax.f32 %v1721_v8, %v5009_v32  ;;  %v2426_v54 = vsel %vm2425_vm11, %v2424_v47, %v2089_v63  ;;  %v5039_v11 = vsub.f32 %v1109_v0, %v4125_v53 }
 0x1ed   :  { %v670_v37 = vpop.f32.mrf.mxu0  ;;  %vm2427_vm12 = vcmp.lt.s32.totalorder %v2426_v54, %v2090_v14  ;;  %vm1837_vm13 = vcmp.eq.f32.partialorder %v4220_v21, %v4967_v33  ;;  %vm2443_vm14 = vcmp.lt.s32.totalorder %v2091_v31, %v2092_v4  ;;  %vm1840_vm15 = vcmp.eq.f32.partialorder %v4233_v39, %v5001_v45 }
 0x1ee   :  { %v5024_v2 = vpop.f32.mrf.mxu1  ;;  %8344 = vst [vmem:[#allocation164_spill] sm:$0xff] %v5039_v11  ;;  %v5042_v25 = vsub.f32 %v670_v37, %v4109_v41  ;;  %v5052_v57 = vsub.f32 %v4899_v61, %v4113_v43  ;;  %v5054_v0 = vsel %vm2427_vm12, %v2426_v54, %v2090_v14  ;;  %vm1838_vm0 = vcmp.eq.f32.partialorder %v4228_v28, %v4967_v33 }
 0x1ef   :  { %v672_v26 = vpop.f32.mrf.mxu0  ;;  %8347 = vst [vmem:[#allocation167_spill] sm:$0xff] %v5054_v0  ;;  %1699 = vmax.xlane.f32.xlu0 %v1698_v9  ;;  %v2430_v37 = vshra.s32 %v5054_v0, 16  ;;  %v2093_v21 = vsel %vm1837_vm13, %v4709_v3, 512  ;;  %v2444_v63 = vsel %vm2443_vm14, %v2091_v31, %v2092_v4  ;;  %v1706_v61 = vmax.f32 %v5028_v59, %v5032_v1  ;;  %v8376_v59 = vld [vmem:[#allocation16_spill] sm:$0xff] }
 0x1f0   :  { %v1119_v12 = vpop.f32.mrf.mxu1  ;;  %8345 = vst [vmem:[#allocation165_spill] sm:$0xff] %v5042_v25  ;;  %8346 = vst [vmem:[#allocation166_spill] sm:$0xff] %v5052_v57  ;;  %v5061_v47 = vsub.f32 %v672_v26, %v4111_v42  ;;  %vm2445_vm1 = vcmp.lt.s32.totalorder %v2444_v63, %v2093_v21  ;;  %v1723_v14 = vmax.f32 %v1722_v19, %v5039_v11  ;;  %v2094_v31 = vsel %vm1838_vm0, %v4741_v52, 512 }
 0x1f1   :  { %v5046_v6 = vpop.f32.mrf.mxu0  ;;  %v5069_v28 = vsub.f32 %v1119_v12, %v4113_v43  ;;  %v5073_v9 = vcvt.s32.f32 %v2430_v37  ;;  %v2446_v4 = vsel %vm2445_vm1, %v2444_v63, %v2093_v21  ;;  %v2095_v19 = vsel %vm1839_vm10, %v4680_v15, 512 }
 0x1f2   :  { %v1121_v8 = vpop.f32.mrf.mxu1  ;;  %8348 = vst [vmem:[#allocation168_spill] sm:$0xff] %v5061_v47  ;;  %v1731_v26 = vmax.f32 %v5042_v25, %v5061_v47  ;;  %vm2447_vm2 = vcmp.lt.s32.totalorder %v2446_v4, %v2094_v31  ;;  %1724 = vmax.xlane.f32.xlu1 %v1723_v14  ;;  %v2096_v21 = vsel %vm1840_vm15, %v4699_v22, 512  ;;  %v1707_v27 = vmax.f32 %v1706_v61, %v5052_v57 }
 0x1f3   :  { %v5063_v32 = vpop.f32.mrf.mxu0  ;;  %8349 = vst [vmem:[#allocation169_spill] sm:$0xff] %v5069_v28  ;;  %8350 = vst [vmem:[#allocation170_spill] sm:$0xff] %v5073_v9  ;;  %2433 = vmin.xlane.f32.xlu0 %v5073_v9  ;;  %v5087_v12 = vsel %vm2447_vm2, %v2446_v4, %v2094_v31  ;;  %v5096_v47 = vsub.f32 %v1121_v8, %v4125_v53  ;;  %vm1843_vm3 = vcmp.eq.f32.partialorder %v4241_v55, %v5078_v49  ;;  %v8430_v9 = vld [vmem:[#allocation39_spill] sm:$0xff] }
 0x1f4   :  { %v5071_v33 = vpop.f32.mrf.mxu1  ;;  %8351 = vst [vmem:[#allocation171_spill] sm:$0xff] %v5087_v12  ;;  %v2450_v63 = vshra.s32 %v5087_v12, 16  ;;  %v1732_v14 = vmax.f32 %v1731_v26, %v5069_v28  ;;  %v5103_v31 = vsub.f32 %v4909_v29, %v4125_v53  ;;  %vm1844_vm4 = vcmp.eq.f32.partialorder %v4249_v7, %v5078_v49 }
 0x1f5   :  { %v682_v54 = vpop.f32.mrf.mxu0  ;;  %8352 = vst [vmem:[#allocation172_spill] sm:$0xff] %v5096_v47  ;;  %vm1841_vm5 = vcmp.eq.f32.partialorder %v4236_v40, %v5001_v45  ;;  %vm1842_vm6 = vcmp.eq.f32.partialorder %v4244_v56, %v5001_v45  ;;  %vm2463_vm7 = vcmp.lt.s32.totalorder %v2095_v19, %v2096_v21  ;;  %v2099_v40 = vsel %vm1843_vm3, %v4680_v15, 512  ;;  %v5133_v45 = vpop.xlane.xlu1 %1534 }
 0x1f6   :  { %v5080_v1 = vpop.f32.mrf.mxu1  ;;  %8353 = vst [vmem:[#allocation173_spill] sm:$0xff] %v5103_v31  ;;  %v5109_v39 = vcvt.s32.f32 %v2450_v63  ;;  %v5112_v8 = vsub.f32 %v682_v54, %v4109_v41  ;;  %v2097_v26 = vsel %vm1841_vm5, %v4709_v3, 512  ;;  %v2464_v7 = vsel %vm2463_vm7, %v2095_v19, %v2096_v21 }
 0x1f7   :  { %v684_v37 = vpop.f32.mrf.mxu0  ;;  %v1733_v54 = vmax.f32 %v1732_v14, %v5096_v47  ;;  %v2100_v56 = vsel %vm1844_vm4, %v4699_v22, 512  ;;  %v1708_v11 = vmax.f32 %v1707_v27, %v5103_v31  ;;  %vm2465_vm8 = vcmp.lt.s32.totalorder %v2464_v7, %v2097_v26  ;;  %v8367_v31 = vld [vmem:[#allocation15_spill] sm:$0xff] }
 0x1f8   :  { %v1131_v25 = vpop.f32.mrf.mxu1  ;;  %8354 = vst [vmem:[#allocation174_spill] sm:$0xff] %v5109_v39  ;;  %8355 = vst [vmem:[#allocation175_spill] sm:$0xff] %v5112_v8  ;;  %2453 = vmin.xlane.f32.xlu0 %v5109_v39  ;;  %v5123_v63 = vsub.f32 %v684_v37, %v4111_v42  ;;  %v2098_v37 = vsel %vm1842_vm6, %v4741_v52, 512  ;;  %v2466_v21 = vsel %vm2465_vm8, %v2464_v7, %v2097_v26 }
 0x1f9   :  { %v5105_v4 = vpop.f32.mrf.mxu0  ;;  %1734 = vmax.xlane.f32.xlu1 %v1733_v54  ;;  %v5140_v47 = vsub.f32 %v1131_v25, %v4113_v43  ;;  %v5146_v57 = vsub.f32 %v4923_v44, %v4109_v41  ;;  %v5150_v27 = vsub.f32 %v4942_v23, %v4111_v42  ;;  %vm2467_vm9 = vcmp.lt.s32.totalorder %v2466_v21, %v2098_v37 }
 0x1fa   :  { %v1133_v61 = vpop.f32.mrf.mxu1  ;;  %8356 = vst [vmem:[#allocation176_spill] sm:$0xff] %v5123_v63  ;;  %v1741_v14 = vmax.f32 %v5112_v8, %v5123_v63  ;;  %vm1845_vm10 = vcmp.eq.f32.partialorder %v4252_v10, %v5078_v49  ;;  %vm1847_vm11 = vcmp.eq.f32.partialorder %v4257_v16, %v5133_v45  ;;  %v5156_v25 = vsel %vm2467_vm9, %v2466_v21, %v2098_v37 }
 0x1fb   :  { %v5118_v29 = vpop.f32.mrf.mxu0  ;;  %8357 = vst [vmem:[#allocation177_spill] sm:$0xff] %v5140_v47  ;;  %8358 = vst [vmem:[#allocation178_spill] sm:$0xff] %v5146_v57  ;;  %vm1848_vm12 = vcmp.eq.f32.partialorder %v4265_v36, %v5133_v45  ;;  %v2470_v44 = vshra.s32 %v5156_v25, 16  ;;  %vm1846_vm13 = vcmp.eq.f32.partialorder %v4260_v17, %v5078_v49  ;;  %vm2483_vm14 = vcmp.lt.s32.totalorder %v2099_v40, %v2100_v56 }
 0x1fc   :  { %v5126_v28 = vpop.f32.mrf.mxu1  ;;  %8359 = vst [vmem:[#allocation179_spill] sm:$0xff] %v5150_v27  ;;  %1709 = vmax.xlane.f32.xlu0 %v1708_v11  ;;  %8360 = vst [vmem:[#allocation180_spill] sm:$0xff] %v5156_v25  ;;  %v1742_v10 = vmax.f32 %v1741_v14, %v5140_v47  ;;  %v2101_v54 = vsel %vm1845_vm10, %v4709_v3, 512  ;;  %v2484_v63 = vsel %vm2483_vm14, %v2099_v40, %v2100_v56  ;;  %v5180_v14 = vpop.xlane.xlu0 %1539  ;;  %v2102_v40 = vsel %vm1846_vm13, %v4741_v52, 512 }
 0x1fd   :  { %v694_v19 = vpop.f32.mrf.mxu0  ;;  %v5168_v11 = vsub.f32 %v1133_v61, %v4125_v53  ;;  %v1716_v21 = vmax.f32 %v5146_v57, %v5150_v27  ;;  %v5174_v8 = vsub.f32 %v4945_v5, %v4113_v43  ;;  %v5176_v17 = vcvt.s32.f32 %v2470_v44  ;;  %v5249_v25 = vpop.xlane.xlu1 %1544 }
 0x1fe   :  { %v5142_v55 = vpop.f32.mrf.mxu1  ;;  %vm2485_vm15 = vcmp.lt.s32.totalorder %v2484_v63, %v2101_v54  ;;  %v5184_v61 = vsub.f32 %v694_v19, %v4109_v41  ;;  %v2103_v27 = vsel %vm1847_vm11, %v4680_v15, 512  ;;  %vm1851_vm1 = vcmp.eq.f32.partialorder %v4273_v48, %v5180_v14 }
 0x1ff   :  { %v696_v26 = vpop.f32.mrf.mxu0  ;;  %8361 = vst [vmem:[#allocation181_spill] sm:$0xff] %v5168_v11  ;;  %8362 = vst [vmem:[#allocation182_spill] sm:$0xff] %v5174_v8  ;;  %v2486_v56 = vsel %vm2485_vm15, %v2484_v63, %v2101_v54  ;;  %v2104_v63 = vsel %vm1848_vm12, %v4699_v22, 512  ;;  %v1743_v54 = vmax.f32 %v1742_v10, %v5168_v11  ;;  %vm1852_vm2 = vcmp.eq.f32.partialorder %v8367_v31, %v5180_v14 }
 0x200   :  { %v1143_v7 = vpop.f32.mrf.mxu1  ;;  %8363 = vst [vmem:[#allocation183_spill] sm:$0xff] %v5176_v17  ;;  %8364 = vst [vmem:[#allocation184_spill] sm:$0xff] %v5184_v61  ;;  %2473 = vmin.xlane.f32.xlu0 %v5176_v17  ;;  %vm2487_vm0 = vcmp.lt.s32.totalorder %v2486_v56, %v2102_v40  ;;  %v5190_v5 = vsub.f32 %v696_v26, %v4111_v42  ;;  %v1717_v26 = vmax.f32 %v1716_v21, %v5174_v8  ;;  %v8370_v21 = vld [vmem:[#allocation13_spill] sm:$0xff]  ;;  %v8372_v8 = vld [vmem:[#allocation14_spill] sm:$0xff] }
 0x201   :  { %v5163_v23 = vpop.f32.mrf.mxu0  ;;  %v5200_v19 = vsel %vm2487_vm0, %v2486_v56, %v2102_v40  ;;  %v5213_v36 = vsub.f32 %v4957_v38, %v4125_v53  ;;  %1744 = vmax.xlane.f32.xlu1 %v1743_v54  ;;  %v5218_v40 = vsub.f32 %v1143_v7, %v4113_v43  ;;  %vm1849_vm3 = vcmp.eq.f32.partialorder %v8370_v21, %v5133_v45 }
 0x202   :  { %v1145_v37 = vpop.f32.mrf.mxu1  ;;  %8365 = vst [vmem:[#allocation185_spill] sm:$0xff] %v5190_v5  ;;  %8366 = vst [vmem:[#allocation186_spill] sm:$0xff] %v5200_v19  ;;  %v2490_v16 = vshra.s32 %v5200_v19, 16  ;;  %v1751_v10 = vmax.f32 %v5184_v61, %v5190_v5  ;;  %v2107_v11 = vsel %vm1851_vm1, %v4680_v15, 512  ;;  %v2108_v38 = vsel %vm1852_vm2, %v4699_v22, 512 }
 0x203   :  { %v5178_v49 = vpop.f32.mrf.mxu0  ;;  %8368 = vst [vmem:[#allocation15_spill] sm:$0xff] %v5213_v36  ;;  %8369 = vst [vmem:[#allocation187_spill] sm:$0xff] %v5218_v40  ;;  %vm1850_vm4 = vcmp.eq.f32.partialorder %v8372_v8, %v5133_v45  ;;  %vm2503_vm5 = vcmp.lt.s32.totalorder %v2103_v27, %v2104_v63  ;;  %v5232_v7 = vsub.f32 %v4980_v24, %v4109_v41 }
 0x204   :  { %v5186_v47 = vpop.f32.mrf.mxu1  ;;  %v5222_v56 = vcvt.s32.f32 %v2490_v16  ;;  %v5236_v21 = vsub.f32 %v5004_v58, %v4111_v42  ;;  %v2105_v16 = vsel %vm1849_vm3, %v4709_v3, 512  ;;  %v2504_v5 = vsel %vm2503_vm5, %v2103_v27, %v2104_v63 }
 0x205   :  { %v706_v44 = vpop.f32.mrf.mxu0  ;;  %8373 = vst [vmem:[#allocation14_spill] sm:$0xff] %v5232_v7  ;;  %v1718_v19 = vmax.f32 %v1717_v26, %v5213_v36  ;;  %v1752_v8 = vmax.f32 %v1751_v10, %v5218_v40  ;;  %vm2505_vm6 = vcmp.lt.s32.totalorder %v2504_v5, %v2105_v16  ;;  %v5245_v45 = vsub.f32 %v1145_v37, %v4125_v53  ;;  %v8378_v26 = vld [vmem:[#allocation18_spill] sm:$0xff]  ;;  %v8381_v36 = vld [vmem:[#allocation17_spill] sm:$0xff] }
 0x206   :  { %v5203_v57 = vpop.f32.mrf.mxu1  ;;  %8371 = vst [vmem:[#allocation13_spill] sm:$0xff] %v5222_v56  ;;  %8374 = vst [vmem:[#allocation188_spill] sm:$0xff] %v5236_v21  ;;  %2493 = vmin.xlane.f32.xlu0 %v5222_v56  ;;  %v2106_v58 = vsel %vm1850_vm4, %v4741_v52, 512  ;;  %v2506_v56 = vsel %vm2505_vm6, %v2504_v5, %v2105_v16  ;;  %vm1853_vm7 = vcmp.eq.f32.partialorder %v8376_v59, %v5180_v14 }
 0x207   :  { %v708_v17 = vpop.f32.mrf.mxu0  ;;  %8375 = vst [vmem:[#allocation189_spill] sm:$0xff] %v5245_v45  ;;  %vm2523_vm8 = vcmp.lt.s32.totalorder %v2107_v11, %v2108_v38  ;;  %vm2507_vm9 = vcmp.lt.s32.totalorder %v2506_v56, %v2106_v58  ;;  %v5255_v63 = vsub.f32 %v706_v44, %v4109_v41  ;;  %vm1854_vm10 = vcmp.eq.f32.partialorder %v8378_v26, %v5180_v14 }
 0x208   :  { %v1155_v48 = vpop.f32.mrf.mxu1  ;;  %v5261_v10 = vsel %vm2507_vm9, %v2506_v56, %v2106_v58  ;;  %v2109_v40 = vsel %vm1853_vm7, %v4709_v3, 512  ;;  %v2524_v5 = vsel %vm2523_vm8, %v2107_v11, %v2108_v38  ;;  %v5265_v16 = vsub.f32 %v708_v17, %v4111_v42 }
 0x209   :  { %v5224_v31 = vpop.f32.mrf.mxu0  ;;  %8377 = vst [vmem:[#allocation16_spill] sm:$0xff] %v5255_v63  ;;  %8379 = vst [vmem:[#allocation18_spill] sm:$0xff] %v5261_v10  ;;  %vm1855_vm11 = vcmp.eq.f32.partialorder %v8381_v36, %v5249_v25  ;;  %v2510_v44 = vshra.s32 %v5261_v10, 16  ;;  %vm2525_vm12 = vcmp.lt.s32.totalorder %v2524_v5, %v2109_v40  ;;  %v1753_v14 = vmax.f32 %v1752_v8, %v5245_v45  ;;  %v8385_v45 = vld [vmem:[#allocation19_spill] sm:$0xff]  ;;  %v8390_v36 = vld [vmem:[#allocation21_spill] sm:$0xff] }
 0x20a   :  { %v1157_v54 = vpop.f32.mrf.mxu1  ;;  %1719 = vmax.xlane.f32.xlu0 %v1718_v19  ;;  %8380 = vst [vmem:[#allocation190_spill] sm:$0xff] %v5265_v16  ;;  %v1726_v19 = vmax.f32 %v5232_v7, %v5236_v21  ;;  %v5275_v56 = vsub.f32 %v5013_v20, %v4113_v43  ;;  %v2110_v11 = vsel %vm1854_vm10, %v4741_v52, 512  ;;  %v2526_v17 = vsel %vm2525_vm12, %v2524_v5, %v2109_v40 }
 0x20b   :  { %v5240_v61 = vpop.f32.mrf.mxu0  ;;  %v5280_v58 = vcvt.s32.f32 %v2510_v44  ;;  %vm2527_vm13 = vcmp.lt.s32.totalorder %v2526_v17, %v2110_v11  ;;  %v1761_v10 = vmax.f32 %v5255_v63, %v5265_v16  ;;  %1754 = vmax.xlane.f32.xlu1 %v1753_v14  ;;  %v5285_v8 = vsub.f32 %v1155_v48, %v4113_v43  ;;  %v1550_v14 = vpop.xlane.xlu0 %1549 }
 0x20c   :  { %v5247_v24 = vpop.f32.mrf.mxu1  ;;  %8382 = vst [vmem:[#allocation17_spill] sm:$0xff] %v5275_v56  ;;  %vm1856_vm14 = vcmp.eq.f32.partialorder %v8385_v45, %v5249_v25  ;;  %v5289_v20 = vsel %vm2527_vm13, %v2526_v17, %v2110_v11  ;;  %v2111_v44 = vsel %vm1855_vm11, %v4680_v15, 512  ;;  %v1727_v48 = vmax.f32 %v1726_v19, %v5275_v56  ;;  %v8391_v19 = vld [vmem:[#allocation23_spill] sm:$0xff] }
 0x20d   :  { %v718_v27 = vpop.f32.mrf.mxu0  ;;  %8383 = vst [vmem:[#allocation191_spill] sm:$0xff] %v5280_v58  ;;  %8384 = vst [vmem:[#allocation192_spill] sm:$0xff] %v5285_v8  ;;  %v2530_v5 = vshra.s32 %v5289_v20, 16  ;;  %v5302_v45 = vsub.f32 %v5024_v2, %v4125_v53  ;;  %v2112_v11 = vsel %vm1856_vm14, %v4699_v22, 512  ;;  %v1762_v16 = vmax.f32 %v1761_v10, %v5285_v8  ;;  %v8392_v2 = vld [vmem:[#allocation20_spill] sm:$0xff] }
 0x20e   :  { %v5259_v37 = vpop.f32.mrf.mxu1  ;;  %8386 = vst [vmem:[#allocation19_spill] sm:$0xff] %v5289_v20  ;;  %2513 = vmin.xlane.f32.xlu0 %v5280_v58  ;;  %v5309_v63 = vsub.f32 %v1157_v54, %v4125_v53  ;;  %vm1859_vm15 = vcmp.eq.f32.partialorder %v8390_v36, %v1550_v14  ;;  %vm1860_vm0 = vcmp.eq.f32.partialorder %v8391_v19, %v1550_v14  ;;  %v8394_v54 = vld [vmem:[#allocation22_spill] sm:$0xff] }
 0x20f   :  { %v720_v59 = vpop.f32.mrf.mxu0  ;;  %8387 = vst [vmem:[#allocation193_spill] sm:$0xff] %v5302_v45  ;;  %v5305_v17 = vcvt.s32.f32 %v2530_v5  ;;  %vm1857_vm1 = vcmp.eq.f32.partialorder %v8392_v2, %v5249_v25  ;;  %v1728_v5 = vmax.f32 %v1727_v48, %v5302_v45  ;;  %v5320_v56 = vsub.f32 %v718_v27, %v4109_v41 }
 0x210   :  { %v1167_v26 = vpop.f32.mrf.mxu1  ;;  %8389 = vst [vmem:[#allocation195_spill] sm:$0xff] %v5309_v63  ;;  %vm1858_vm2 = vcmp.eq.f32.partialorder %v8394_v54, %v5249_v25  ;;  %vm2543_vm3 = vcmp.lt.s32.totalorder %v2111_v44, %v2112_v11  ;;  %v2113_v10 = vsel %vm1857_vm1, %v4709_v3, 512  ;;  %v5326_v58 = vsub.f32 %v720_v59, %v4111_v42 }
 0x211   :  { %v5278_v38 = vpop.f32.mrf.mxu0  ;;  %8388 = vst [vmem:[#allocation194_spill] sm:$0xff] %v5305_v17  ;;  %8393 = vst [vmem:[#allocation21_spill] sm:$0xff] %v5320_v56  ;;  %v2544_v8 = vsel %vm2543_vm3, %v2111_v44, %v2112_v11  ;;  %v2114_v27 = vsel %vm1858_vm2, %v4741_v52, 512  ;;  %v2115_v25 = vsel %vm1859_vm15, %v4680_v15, 512  ;;  %v2116_v59 = vsel %vm1860_vm0, %v4699_v22, 512 }
 0x212   :  { %v1169_v40 = vpop.f32.mrf.mxu1  ;;  %2533 = vmin.xlane.f32.xlu0 %v5305_v17  ;;  %8395 = vst [vmem:[#allocation23_spill] sm:$0xff] %v5326_v58  ;;  %v1763_v17 = vmax.f32 %v1762_v16, %v5309_v63  ;;  %vm2545_vm4 = vcmp.lt.s32.totalorder %v2544_v8, %v2113_v10  ;;  %v1771_v16 = vmax.f32 %v5320_v56, %v5326_v58  ;;  %v8404_v63 = vld [vmem:[#allocation25_spill] sm:$0xff] }
 0x213   :  { %v5291_v21 = vpop.f32.mrf.mxu0  ;;  %v2546_v48 = vsel %vm2545_vm4, %v2544_v8, %v2113_v10  ;;  %v5343_v11 = vsub.f32 %v1167_v26, %v4113_v43  ;;  %v5351_v19 = vsub.f32 %v5046_v6, %v4109_v41  ;;  %v5355_v54 = vsub.f32 %v5063_v32, %v4111_v42  ;;  %v8401_v10 = vld [vmem:[#allocation26_spill] sm:$0xff]  ;;  %v1555_v26 = vpop.xlane.xlu1 %1554 }
 0x214   :  { %v5311_v20 = vpop.f32.mrf.mxu1  ;;  %1764 = vmax.xlane.f32.xlu1 %v1763_v17  ;;  %vm2547_vm5 = vcmp.lt.s32.totalorder %v2546_v48, %v2114_v27  ;;  %vm1862_vm7 = vcmp.eq.f32.partialorder %v8401_v10, %v1550_v14  ;;  %vm2563_vm8 = vcmp.lt.s32.totalorder %v2115_v25, %v2116_v59  ;;  %v5363_v56 = vsub.f32 %v1169_v40, %v4125_v53  ;;  %v8406_v40 = vld [vmem:[#allocation27_spill] sm:$0xff] }
 0x215   :  { %v730_v7 = vpop.f32.mrf.mxu0  ;;  %v5338_v44 = vsel %vm2547_vm5, %v2546_v48, %v2114_v27  ;;  %8397 = vst [vmem:[#allocation22_spill] sm:$0xff] %v5343_v11  ;;  %8400 = vst [vmem:[#allocation196_spill] sm:$0xff] %v5355_v54  ;;  %v1772_v58 = vmax.f32 %v1771_v16, %v5343_v11  ;;  %v2118_v32 = vsel %vm1862_vm7, %v4741_v52, 512  ;;  %vm1863_vm10 = vcmp.eq.f32.partialorder %v8404_v63, %v1555_v26 }
 0x216   :  { %v5329_v2 = vpop.f32.mrf.mxu1  ;;  %1729 = vmax.xlane.f32.xlu0 %v1728_v5  ;;  %8396 = vst [vmem:[#allocation20_spill] sm:$0xff] %v5338_v44  ;;  %v8398_v5 = vld [vmem:[#allocation24_spill] sm:$0xff]  ;;  %v2550_v17 = vshra.s32 %v5338_v44, 16  ;;  %8403 = vst [vmem:[#allocation197_spill] sm:$0xff] %v5363_v56  ;;  %vm1864_vm12 = vcmp.eq.f32.partialorder %v8406_v40, %v1555_v26  ;;  %v5382_v11 = vsub.f32 %v730_v7, %v4109_v41 }
 0x217   :  { %v732_v39 = vpop.f32.mrf.mxu0  ;;  %vm1861_vm6 = vcmp.eq.f32.partialorder %v8398_v5, %v1550_v14  ;;  %8399 = vst [vmem:[#allocation24_spill] sm:$0xff] %v5351_v19  ;;  %v2564_v5 = vsel %vm2563_vm8, %v2115_v25, %v2116_v59  ;;  %v5374_v25 = vsub.f32 %v5071_v33, %v4113_v43  ;;  %v5376_v59 = vpop.xlane.xlu0 %1559  ;;  %v2119_v33 = vsel %vm1863_vm10, %v4680_v15, 512 }
 0x218   :  { %v1179_v36 = vpop.f32.mrf.mxu1  ;;  %v5358_v27 = vcvt.s32.f32 %v2550_v17  ;;  %v2117_v48 = vsel %vm1861_vm6, %v4709_v3, 512  ;;  %v1736_v17 = vmax.f32 %v5351_v19, %v5355_v54  ;;  %8408 = vst [vmem:[#allocation198_spill] sm:$0xff] %v5382_v11  ;;  %v2120_v45 = vsel %vm1864_vm12, %v4699_v22, 512 }
 0x219   :  { %v5346_v8 = vpop.f32.mrf.mxu0  ;;  %vm2565_vm9 = vcmp.lt.s32.totalorder %v2564_v5, %v2117_v48  ;;  %8405 = vst [vmem:[#allocation25_spill] sm:$0xff] %v5374_v25  ;;  %v5396_v7 = vsub.f32 %v5080_v1, %v4125_v53  ;;  %v8415_v1 = vld [vmem:[#allocation28_spill] sm:$0xff]  ;;  %vm2583_vm1 = vcmp.lt.s32.totalorder %v2119_v33, %v2120_v45  ;;  %v5461_v12 = vsub.f32 %v5126_v28, %v4113_v43 }
 0x21a   :  { %8402 = vst [vmem:[#allocation26_spill] sm:$0xff] %v5358_v27  ;;  %2553 = vmin.xlane.f32.xlu0 %v5358_v27  ;;  %v2566_v14 = vsel %vm2565_vm9, %v2564_v5, %v2117_v48  ;;  %v1181_v10 = vpop.f32.mrf.mxu1  ;;  %v5385_v48 = vsub.f32 %v732_v39, %v4111_v42  ;;  %v1773_v5 = vmax.f32 %v1772_v58, %v5363_v56  ;;  %v8412_v58 = vld [vmem:[#allocation29_spill] sm:$0xff] }
 0x21b   :  { %v5365_v6 = vpop.f32.mrf.mxu0  ;;  %vm2567_vm11 = vcmp.lt.s32.totalorder %v2566_v14, %v2118_v32  ;;  %8410 = vst [vmem:[#allocation200_spill] sm:$0xff] %v5396_v7  ;;  %vm1867_vm13 = vcmp.eq.f32.partialorder %v8412_v58, %v5376_v59  ;;  %v5407_v56 = vsub.f32 %v1179_v36, %v4113_v43  ;;  %vm1865_vm15 = vcmp.eq.f32.partialorder %v8415_v1, %v1555_v26 }
 0x21c   :  { %v5379_v16 = vsel %vm2567_vm11, %v2566_v14, %v2118_v32  ;;  %8409 = vst [vmem:[#allocation199_spill] sm:$0xff] %v5385_v48  ;;  %v5390_v19 = vpop.f32.mrf.mxu1  ;;  %v1737_v32 = vmax.f32 %v1736_v17, %v5374_v25  ;;  %v5398_v14 = vpop.xlane.xlu0 %1569  ;;  %1774 = vmax.xlane.f32.xlu1 %v1773_v5  ;;  %v1781_v40 = vmax.f32 %v5382_v11, %v5385_v48  ;;  %v8414_v17 = vld [vmem:[#allocation31_spill] sm:$0xff]  ;;  %v8416_v5 = vld [vmem:[#allocation30_spill] sm:$0xff]  ;;  %v2123_v48 = vsel %vm1867_vm13, %v4680_v15, 512 }
 0x21d   :  { %8407 = vst [vmem:[#allocation27_spill] sm:$0xff] %v5379_v16  ;;  %v2570_v63 = vshra.s32 %v5379_v16, 16  ;;  %v742_v54 = vpop.f32.mrf.mxu0  ;;  %8413 = vst [vmem:[#allocation29_spill] sm:$0xff] %v5407_v56  ;;  %vm1868_vm14 = vcmp.eq.f32.partialorder %v8414_v17, %v5376_v59  ;;  %v5411_v25 = vpop.xlane.xlu1 %1564  ;;  %vm1866_vm0 = vcmp.eq.f32.partialorder %v8416_v5, %v1555_v26  ;;  %v2121_v17 = vsel %vm1865_vm15, %v4709_v3, 512 }
 0x21e   :  { %v5416_v58 = vpop.f32.mrf.mxu1  ;;  %v1738_v36 = vmax.f32 %v1737_v32, %v5396_v7  ;;  %v2584_v27 = vsel %vm2583_vm1, %v2119_v33, %v2120_v45  ;;  %v2124_v16 = vsel %vm1868_vm14, %v4699_v22, 512  ;;  %v1782_v1 = vmax.f32 %v1781_v40, %v5407_v56  ;;  %v8419_v32 = vld [vmem:[#allocation32_spill] sm:$0xff] }
 0x21f   :  { %v5400_v39 = vcvt.s32.f32 %v2570_v63  ;;  %v744_v63 = vpop.f32.mrf.mxu0  ;;  %vm2585_vm3 = vcmp.lt.s32.totalorder %v2584_v27, %v2121_v17  ;;  %v2122_v26 = vsel %vm1866_vm0, %v4741_v52, 512  ;;  %v5429_v44 = vsub.f32 %v1181_v10, %v4125_v53 }
 0x220   :  { %v5419_v11 = vpop.xlane.xlu0 %1579  ;;  %v2586_v5 = vsel %vm2585_vm3, %v2584_v27, %v2121_v17  ;;  %vm1869_vm4 = vcmp.eq.f32.partialorder %v8419_v32, %v5376_v59  ;;  %v5437_v45 = vsub.f32 %v5105_v4, %v4109_v41  ;;  %v5441_v33 = vsub.f32 %v5118_v29, %v4111_v42  ;;  %v1191_v27 = vpop.f32.mrf.mxu1  ;;  %v8424_v17 = vld [vmem:[#allocation34_spill] sm:$0xff]  ;;  %v8426_v32 = vld [vmem:[#allocation35_spill] sm:$0xff] }
 0x221   :  { %8411 = vst [vmem:[#allocation201_spill] sm:$0xff] %v5400_v39  ;;  %2573 = vmin.xlane.f32.xlu0 %v5400_v39  ;;  %v8417_v39 = vld [vmem:[#allocation33_spill] sm:$0xff]  ;;  %8418 = vst [vmem:[#allocation31_spill] sm:$0xff] %v5429_v44  ;;  %v5433_v7 = vpop.f32.mrf.mxu0  ;;  %vm2587_vm5 = vcmp.lt.s32.totalorder %v2586_v5, %v2122_v26  ;;  %v5444_v40 = vsub.f32 %v742_v54, %v4109_v41  ;;  %vm1870_vm6 = vcmp.eq.f32.partialorder %v8424_v17, %v5376_v59  ;;  %v5470_v17 = vpop.xlane.xlu1 %1574 }
 0x222   :  { %vm1871_vm2 = vcmp.eq.f32.partialorder %v8417_v39, %v5411_v25  ;;  %8420 = vst [vmem:[#allocation28_spill] sm:$0xff] %v5437_v45  ;;  %8421 = vst [vmem:[#allocation30_spill] sm:$0xff] %v5441_v33  ;;  %vm2603_vm7 = vcmp.lt.s32.totalorder %v2123_v48, %v2124_v16  ;;  %v5453_v4 = vsub.f32 %v744_v63, %v4111_v42  ;;  %v2125_v54 = vsel %vm1869_vm4, %v4709_v3, 512  ;;  %v1193_v28 = vpop.f32.mrf.mxu1 }
 0x223   :  { %8422 = vst [vmem:[#allocation33_spill] sm:$0xff] %v5444_v40  ;;  %vm1872_vm8 = vcmp.eq.f32.partialorder %v8426_v32, %v5411_v25  ;;  %v2604_v56 = vsel %vm2603_vm7, %v2123_v48, %v2124_v16  ;;  %8427 = vst [vmem:[#allocation35_spill] sm:$0xff] %v5461_v12  ;;  %v1783_v59 = vmax.f32 %v1782_v1, %v5429_v44  ;;  %v5466_v63 = vpop.f32.mrf.mxu0  ;;  %v2126_v16 = vsel %vm1870_vm6, %v4741_v52, 512 }
 0x224   :  { %v5446_v10 = vpop.xlane.xlu0 %1589  ;;  %8425 = vst [vmem:[#allocation34_spill] sm:$0xff] %v5453_v4  ;;  %vm2605_vm10 = vcmp.lt.s32.totalorder %v2604_v56, %v2125_v54  ;;  %vm1876_vm11 = vcmp.eq.f32.partialorder %v8430_v9, %v5398_v14  ;;  %v1791_v1 = vmax.f32 %v5444_v40, %v5453_v4  ;;  %v5503_v39 = vsub.f32 %v5178_v49, %v4111_v42  ;;  %v5519_v49 = vpop.f32.mrf.mxu1  ;;  %v8437_v40 = vld [vmem:[#allocation43_spill] sm:$0xff] }
 0x225   :  { %1739 = vmax.xlane.f32.xlu0 %v1738_v36  ;;  %v5448_v36 = vsel %vm2587_vm5, %v2586_v5, %v2122_v26  ;;  %v8428_v26 = vld [vmem:[#allocation37_spill] sm:$0xff]  ;;  %v1746_v5 = vmax.f32 %v5437_v45, %v5441_v33  ;;  %v2606_v48 = vsel %vm2605_vm10, %v2604_v56, %v2125_v54  ;;  %1784 = vmax.xlane.f32.xlu1 %v1783_v59  ;;  %v2128_v56 = vsel %vm1872_vm8, %v4699_v22, 512  ;;  %v754_v4 = vpop.f32.mrf.mxu0 }
 0x226   :  { %8423 = vst [vmem:[#allocation32_spill] sm:$0xff] %v5448_v36  ;;  %v2590_v29 = vshra.s32 %v5448_v36, 16  ;;  %vm1875_vm9 = vcmp.eq.f32.partialorder %v8428_v26, %v5398_v14  ;;  %vm2607_vm12 = vcmp.lt.s32.totalorder %v2606_v48, %v2126_v16  ;;  %v5482_v33 = vsub.f32 %v1191_v27, %v4113_v43  ;;  %v8433_v45 = vld [vmem:[#allocation41_spill] sm:$0xff]  ;;  %8435 = vst [vmem:[#allocation203_spill] sm:$0xff] %v5503_v39 }
 0x227   :  { %v5493_v54 = vsel %vm2607_vm12, %v2606_v48, %v2126_v16  ;;  %vm1879_vm13 = vcmp.eq.f32.partialorder %v8433_v45, %v5470_v17  ;;  %v5499_v27 = vsub.f32 %v5163_v23, %v4109_v41  ;;  %v1747_v32 = vmax.f32 %v1746_v5, %v5461_v12  ;;  %v5523_v5 = vpop.xlane.xlu1 %1584  ;;  %v8444_v45 = vld [vmem:[#allocation38_spill] sm:$0xff] }
 0x228   :  { %v5472_v36 = vcvt.s32.f32 %v2590_v29  ;;  %v5477_v0 = vpop.xlane.xlu0 %1599  ;;  %8431 = vst [vmem:[#allocation39_spill] sm:$0xff] %v5482_v33  ;;  %v2127_v29 = vsel %vm1871_vm2, %v4680_v15, 512  ;;  %8432 = vst [vmem:[#allocation202_spill] sm:$0xff] %v5493_v54  ;;  %v2610_v59 = vshra.s32 %v5493_v54, 16  ;;  %v2131_v16 = vsel %vm1875_vm9, %v4680_v15, 512  ;;  %v8441_v54 = vld [vmem:[#allocation45_spill] sm:$0xff] }
 0x229   :  { %8434 = vst [vmem:[#allocation41_spill] sm:$0xff] %v5499_v27  ;;  %v2132_v23 = vsel %vm1876_vm11, %v4699_v22, 512  ;;  %v5517_v48 = vsub.f32 %v5142_v55, %v4125_v53  ;;  %vm1880_vm14 = vcmp.eq.f32.partialorder %v8437_v40, %v5470_v17  ;;  %v1792_v44 = vmax.f32 %v1791_v1, %v5482_v33  ;;  %v8443_v1 = vld [vmem:[#allocation36_spill] sm:$0xff]  ;;  %v8445_v33 = vld [vmem:[#allocation49_spill] sm:$0xff] }
 0x22a   :  { %8429 = vst [vmem:[#allocation37_spill] sm:$0xff] %v5472_v36  ;;  %2593 = vmin.xlane.f32.xlu0 %v5472_v36  ;;  %v5527_v26 = vcvt.s32.f32 %v2610_v59  ;;  %v5531_v9 = vsub.f32 %v1193_v28, %v4125_v53  ;;  %v5537_v55 = vsel %vm1879_vm13, %v4680_v15, 512  ;;  %v5541_v36 = vsub.f32 %v5186_v47, %v4113_v43  ;;  %v8442_v59 = vld [vmem:[#allocation47_spill] sm:$0xff]  ;;  %v756_v47 = vpop.f32.mrf.mxu0 }
 0x22b   :  { %8436 = vst [vmem:[#allocation204_spill] sm:$0xff] %v5517_v48  ;;  %vm1883_vm15 = vcmp.eq.f32.partialorder %v8441_v54, %v5419_v11  ;;  %vm1884_vm0 = vcmp.eq.f32.partialorder %v8442_v59, %v5419_v11  ;;  %v1756_v28 = vmax.f32 %v5499_v27, %v5503_v39  ;;  %vm1873_vm1 = vcmp.eq.f32.partialorder %v8443_v1, %v5411_v25  ;;  %v5559_v39 = vpop.f32.mrf.mxu1  ;;  %v8447_v27 = vld [vmem:[#allocation71_spill] sm:$0xff] }
 0x22c   :  { %v5525_v12 = vpop.xlane.xlu0 %1609  ;;  %8438 = vst [vmem:[#allocation43_spill] sm:$0xff] %v5527_v26  ;;  %8439 = vst [vmem:[#allocation205_spill] sm:$0xff] %v5531_v9  ;;  %vm1874_vm2 = vcmp.eq.f32.partialorder %v8444_v45, %v5411_v25  ;;  %vm2623_vm3 = vcmp.lt.s32.totalorder %v2127_v29, %v2128_v56  ;;  %vm1887_vm4 = vcmp.eq.f32.partialorder %v8445_v33, %v5523_v5  ;;  %v2129_v18 = vsel %vm1873_vm1, %v4709_v3, 512  ;;  %v8452_v33 = vld [vmem:[#allocation40_spill] sm:$0xff] }
 0x22d   :  { %8440 = vst [vmem:[#allocation206_spill] sm:$0xff] %v5541_v36  ;;  %vm1907_vm5 = vcmp.eq.f32.partialorder %v8446_v46, %v5525_v12  ;;  %v2624_v34 = vsel %vm2623_vm3, %v2127_v29, %v2128_v56  ;;  %vm1908_vm6 = vcmp.eq.f32.partialorder %v8447_v27, %v5525_v12  ;;  %v1748_v1 = vmax.f32 %v1747_v32, %v5517_v48  ;;  %v1203_v54 = vpop.f32.mrf.mxu1  ;;  %v8456_v48 = vld [vmem:[#allocation74_spill] sm:$0xff] }
 0x22e   :  { %2613 = vmin.xlane.f32.xlu0 %v5527_v26  ;;  %vm2625_vm7 = vcmp.lt.s32.totalorder %v2624_v34, %v2129_v18  ;;  %v1793_v25 = vmax.f32 %v1792_v44, %v5531_v9  ;;  %v5566_v45 = vsub.f32 %v754_v4, %v4109_v41  ;;  %v2130_v26 = vsel %vm1874_vm2, %v4741_v52, 512  ;;  %v8451_v4 = vld [vmem:[#allocation51_spill] sm:$0xff] }
 0x22f   :  { %v2626_v50 = vsel %vm2625_vm7, %v2624_v34, %v2129_v18  ;;  %v5570_v60 = vsub.f32 %v756_v47, %v4111_v42  ;;  %v5576_v29 = vsel %vm1880_vm14, %v4699_v22, 512  ;;  %v5582_v44 = vsel %vm1883_vm15, %v4680_v15, 512  ;;  %v8453_v47 = vld [vmem:[#allocation42_spill] sm:$0xff]  ;;  %v8485_v9 = vld [vmem:[#allocation59_spill] sm:$0xff] }
 0x230   :  { %8448 = vst [vmem:[#allocation45_spill] sm:$0xff] %v5566_v45  ;;  %v5588_v34 = vsel %vm1884_vm0, %v4699_v22, 512  ;;  %vm2627_vm8 = vcmp.lt.s32.totalorder %v2626_v50, %v2130_v26  ;;  %1794 = vmax.xlane.f32.xlu1 %v1793_v25  ;;  %v5591_v18 = vmax.f32 %v1756_v28, %v5541_v36  ;;  %v5595_v40 = vsub.f32 %v5203_v57, %v4125_v53  ;;  %v8455_v36 = vld [vmem:[#allocation72_spill] sm:$0xff] }
 0x231   :  { %8449 = vst [vmem:[#allocation47_spill] sm:$0xff] %v5570_v60  ;;  %vm1888_vm9 = vcmp.eq.f32.partialorder %v8451_v4, %v5523_v5  ;;  %v5599_v56 = vsel %vm2627_vm8, %v2626_v50, %v2130_v26  ;;  %v5605_v32 = vsel %vm1887_vm4, %v4680_v15, 512  ;;  %v2163_v59 = vsel %vm1907_vm5, %v4680_v15, 512  ;;  %v5616_v26 = vpop.xlane.xlu0 %1619 }
 0x232   :  { %1749 = vmax.xlane.f32.xlu0 %v1748_v1  ;;  %8450 = vst [vmem:[#allocation36_spill] sm:$0xff] %v5595_v40  ;;  %v2164_v57 = vsel %vm1908_vm6, %v4699_v22, 512  ;;  %v2630_v50 = vshra.s32 %v5599_v56, 16  ;;  %v1801_v28 = vmax.f32 %v5566_v45, %v5570_v60  ;;  %vm1877_vm10 = vcmp.eq.f32.partialorder %v8452_v33, %v5398_v14  ;;  %v8470_v45 = vld [vmem:[#allocation80_spill] sm:$0xff] }
 0x233   :  { %vm1878_vm11 = vcmp.eq.f32.partialorder %v8453_v47, %v5398_v14  ;;  %vm2643_vm12 = vcmp.lt.s32.totalorder %v2131_v16, %v2132_v23  ;;  %v5627_v1 = vsub.f32 %v1203_v54, %v4113_v43  ;;  %v2133_v27 = vsel %vm1877_vm10, %v4709_v3, 512  ;;  %v8459_v47 = vld [vmem:[#allocation77_spill] sm:$0xff] }
 0x234   :  { %v5624_v46 = vcvt.s32.f32 %v2630_v50  ;;  %v2644_v25 = vsel %vm2643_vm12, %v2131_v16, %v2132_v23  ;;  %vm1909_vm14 = vcmp.eq.f32.partialorder %v8455_v36, %v5525_v12  ;;  %vm1910_vm15 = vcmp.eq.f32.partialorder %v8456_v48, %v5525_v12  ;;  %v1205_v12 = vpop.f32.mrf.mxu1 }
 0x235   :  { %8454 = vst [vmem:[#allocation38_spill] sm:$0xff] %v5627_v1  ;;  %vm2645_vm13 = vcmp.lt.s32.totalorder %v2644_v25, %v2133_v27  ;;  %vm2803_vm0 = vcmp.lt.s32.totalorder %v2163_v59, %v2164_v57  ;;  %v2134_v14 = vsel %vm1878_vm11, %v4741_v52, 512  ;;  %v2165_v33 = vsel %vm1909_vm14, %v4709_v3, 512  ;;  %v5647_v23 = vpop.xlane.xlu0 %1629 }
 0x236   :  { %2633 = vmin.xlane.f32.xlu0 %v5624_v46  ;;  %v2646_v50 = vsel %vm2645_vm13, %v2644_v25, %v2133_v27  ;;  %v2804_v54 = vsel %vm2803_vm0, %v2163_v59, %v2164_v57  ;;  %v5641_v16 = vsel %vm1888_vm9, %v4699_v22, 512  ;;  %v5645_v36 = vsub.f32 %v5224_v31, %v4109_v41  ;;  %v8460_v31 = vld [vmem:[#allocation79_spill] sm:$0xff]  ;;  %v8461_v25 = vld [vmem:[#allocation53_spill] sm:$0xff] }
 0x237   :  { %vm2647_vm1 = vcmp.lt.s32.totalorder %v2646_v50, %v2134_v14  ;;  %vm2805_vm2 = vcmp.lt.s32.totalorder %v2804_v54, %v2165_v33  ;;  %v5651_v48 = vsub.f32 %v5240_v61, %v4111_v42  ;;  %v2166_v57 = vsel %vm1910_vm15, %v4741_v52, 512 }
 0x238   :  { %8457 = vst [vmem:[#allocation49_spill] sm:$0xff] %v5645_v36  ;;  %v5653_v59 = vsel %vm2647_vm1, %v2646_v50, %v2134_v14  ;;  %v2806_v4 = vsel %vm2805_vm2, %v2804_v54, %v2165_v33  ;;  %vm1915_vm3 = vcmp.eq.f32.partialorder %v8459_v47, %v5616_v26  ;;  %vm1916_vm4 = vcmp.eq.f32.partialorder %v8460_v31, %v5616_v26  ;;  %v8464_v54 = vld [vmem:[#allocation55_spill] sm:$0xff] }
 0x239   :  { %8458 = vst [vmem:[#allocation69_spill] sm:$0xff] %v5651_v48  ;;  %v2650_v27 = vshra.s32 %v5653_v59, 16  ;;  %vm2807_vm5 = vcmp.lt.s32.totalorder %v2806_v4, %v2166_v57  ;;  %vm1891_vm6 = vcmp.eq.f32.partialorder %v8461_v25, %v5446_v10  ;;  %v1802_v61 = vmax.f32 %v1801_v28, %v5627_v1  ;;  %v5678_v60 = vpop.xlane.xlu0 %1639  ;;  %v8468_v1 = vld [vmem:[#allocation44_spill] sm:$0xff] }
 0x23a   :  { %v5665_v14 = vsub.f32 %v1205_v12, %v4125_v53  ;;  %v5667_v50 = vsel %vm2807_vm5, %v2806_v4, %v2166_v57  ;;  %v5671_v33 = vsub.f32 %v5247_v24, %v4113_v43  ;;  %vm1892_vm7 = vcmp.eq.f32.partialorder %v8464_v54, %v5446_v10  ;;  %v8466_v12 = vld [vmem:[#allocation56_spill] sm:$0xff] }
 0x23b   :  { %v5675_v47 = vcvt.s32.f32 %v2650_v27  ;;  %v2810_v31 = vshra.s32 %v5667_v50, 16  ;;  %v1766_v28 = vmax.f32 %v5645_v36, %v5651_v48  ;;  %vm1893_vm8 = vcmp.eq.f32.partialorder %v8466_v12, %v5446_v10  ;;  %v8469_v36 = vld [vmem:[#allocation46_spill] sm:$0xff] }
 0x23c   :  { %8462 = vst [vmem:[#allocation71_spill] sm:$0xff] %v5665_v14  ;;  %8463 = vst [vmem:[#allocation51_spill] sm:$0xff] %v5671_v33  ;;  %v2171_v57 = vsel %vm1915_vm3, %v4680_v15, 512  ;;  %v2172_v24 = vsel %vm1916_vm4, %v4699_v22, 512  ;;  %v5687_v4 = vsel %vm1891_vm6, %v4680_v15, 512  ;;  %v1758_v25 = vmax.f32 %v5591_v18, %v5595_v40  ;;  %v8477_v40 = vld [vmem:[#allocation87_spill] sm:$0xff] }
 0x23d   :  { %8465 = vst [vmem:[#allocation40_spill] sm:$0xff] %v5675_v47  ;;  %2653 = vmin.xlane.f32.xlu0 %v5675_v47  ;;  %v5690_v27 = vcvt.s32.f32 %v2810_v31  ;;  %vm1881_vm9 = vcmp.eq.f32.partialorder %v8468_v1, %v5470_v17  ;;  %v1803_v48 = vmax.f32 %v1802_v61, %v5665_v14  ;;  %vm1882_vm10 = vcmp.eq.f32.partialorder %v8469_v36, %v5470_v17  ;;  %v8471_v1 = vld [vmem:[#allocation82_spill] sm:$0xff] }
 0x23e   :  { %vm2663_vm11 = vcmp.lt.s32.totalorder %v5537_v55, %v5576_v29  ;;  %vm1917_vm12 = vcmp.eq.f32.partialorder %v8470_v45, %v5616_v26  ;;  %v2137_v31 = vsel %vm1881_vm9, %v4709_v3, 512  ;;  %vm1918_vm13 = vcmp.eq.f32.partialorder %v8471_v1, %v5616_v26  ;;  %v5709_v61 = vpop.xlane.xlu0 %1649  ;;  %v5725_v1 = vpop.xlane.xlu1 %1594 }
 0x23f   :  { %8467 = vst [vmem:[#allocation42_spill] sm:$0xff] %v5690_v27  ;;  %2813 = vmin.xlane.f32.xlu1 %v5690_v27  ;;  %v2664_v18 = vsel %vm2663_vm11, %v5537_v55, %v5576_v29  ;;  %vm2843_vm14 = vcmp.lt.s32.totalorder %v2171_v57, %v2172_v24  ;;  %v5715_v17 = vsel %vm1892_vm7, %v4699_v22, 512  ;;  %v2173_v45 = vsel %vm1917_vm12, %v4709_v3, 512 }
 0x240   :  { %vm2665_vm15 = vcmp.lt.s32.totalorder %v2664_v18, %v2137_v31  ;;  %v2844_v36 = vsel %vm2843_vm14, %v2171_v57, %v2172_v24  ;;  %v5722_v55 = vsel %vm1893_vm8, %v4709_v3, 512  ;;  %v2138_v29 = vsel %vm1882_vm10, %v4741_v52, 512 }
 0x241   :  { %1759 = vmax.xlane.f32.xlu0 %v1758_v25  ;;  %v2666_v26 = vsel %vm2665_vm15, %v2664_v18, %v2137_v31  ;;  %vm2845_vm0 = vcmp.lt.s32.totalorder %v2844_v36, %v2173_v45  ;;  %v5729_v54 = vsub.f32 %v5278_v38, %v4109_v41  ;;  %v2174_v57 = vsel %vm1918_vm13, %v4741_v52, 512  ;;  %v8475_v31 = vld [vmem:[#allocation48_spill] sm:$0xff]  ;;  %v8476_v38 = vld [vmem:[#allocation85_spill] sm:$0xff] }
 0x242   :  { %vm2667_vm1 = vcmp.lt.s32.totalorder %v2666_v26, %v2138_v29  ;;  %v2846_v24 = vsel %vm2845_vm0, %v2844_v36, %v2173_v45  ;;  %v5734_v12 = vsub.f32 %v5291_v21, %v4111_v42  ;;  %vm1885_vm3 = vcmp.eq.f32.partialorder %v8475_v31, %v5419_v11  ;;  %v5759_v31 = vpop.xlane.xlu1 %1604 }
 0x243   :  { %8472 = vst [vmem:[#allocation72_spill] sm:$0xff] %v5729_v54  ;;  %1804 = vmax.xlane.f32.xlu1 %v1803_v48  ;;  %v5736_v25 = vsel %vm2667_vm1, %v2666_v26, %v2138_v29  ;;  %vm2847_vm2 = vcmp.lt.s32.totalorder %v2846_v24, %v2174_v57  ;;  %vm1923_vm4 = vcmp.eq.f32.partialorder %v8476_v38, %v5647_v23  ;;  %v8479_v29 = vld [vmem:[#allocation50_spill] sm:$0xff]  ;;  %v8480_v26 = vld [vmem:[#allocation57_spill] sm:$0xff] }
 0x244   :  { %8473 = vst [vmem:[#allocation74_spill] sm:$0xff] %v5734_v12  ;;  %8474 = vst [vmem:[#allocation77_spill] sm:$0xff] %v5736_v25  ;;  %vm1924_vm5 = vcmp.eq.f32.partialorder %v8477_v40, %v5647_v23  ;;  %v2670_v45 = vshra.s32 %v5736_v25, 16  ;;  %v5747_v36 = vsel %vm2847_vm2, %v2846_v24, %v2174_v57  ;;  %v5750_v21 = vmax.f32 %v1766_v28, %v5671_v33 }
 0x245   :  { %v5740_v18 = vpop.xlane.xlu0 %1659  ;;  %8478 = vst [vmem:[#allocation79_spill] sm:$0xff] %v5747_v36  ;;  %v2850_v48 = vshra.s32 %v5747_v36, 16  ;;  %vm1886_vm6 = vcmp.eq.f32.partialorder %v8479_v29, %v5419_v11  ;;  %vm2683_vm7 = vcmp.lt.s32.totalorder %v5582_v44, %v5588_v34  ;;  %vm1895_vm8 = vcmp.eq.f32.partialorder %v8480_v26, %v5725_v1 }
 0x246   :  { %v5761_v40 = vcvt.s32.f32 %v2670_v45  ;;  %v2141_v57 = vsel %vm1885_vm3, %v4709_v3, 512  ;;  %v2684_v28 = vsel %vm2683_vm7, %v5582_v44, %v5588_v34  ;;  %v2179_v24 = vsel %vm1923_vm4, %v4680_v15, 512  ;;  %v5798_v29 = vpop.xlane.xlu1 %1614 }
 0x247   :  { %v2180_v38 = vsel %vm1924_vm5, %v4699_v22, 512  ;;  %v5768_v33 = vcvt.s32.f32 %v2850_v48  ;;  %vm2685_vm9 = vcmp.lt.s32.totalorder %v2684_v28, %v2141_v57  ;;  %vm2723_vm10 = vcmp.lt.s32.totalorder %v5687_v4, %v5715_v17  ;;  %v8484_v48 = vld [vmem:[#allocation58_spill] sm:$0xff] }
 0x248   :  { %8481 = vst [vmem:[#allocation53_spill] sm:$0xff] %v5761_v40  ;;  %v1776_v45 = vmax.f32 %v5729_v54, %v5734_v12  ;;  %v5778_v47 = vsub.f32 %v5311_v20, %v4113_v43  ;;  %2673 = vmin.xlane.f32.xlu0 %v5761_v40  ;;  %v2142_v44 = vsel %vm1886_vm6, %v4741_v52, 512  ;;  %v2686_v34 = vsel %vm2685_vm9, %v2684_v28, %v2141_v57  ;;  %v8486_v12 = vld [vmem:[#allocation60_spill] sm:$0xff]  ;;  %v8490_v28 = vld [vmem:[#allocation90_spill] sm:$0xff]  ;;  %v8494_v40 = vld [vmem:[#allocation61_spill] sm:$0xff] }
 0x249   :  { %8482 = vst [vmem:[#allocation55_spill] sm:$0xff] %v5768_v33  ;;  %vm1894_vm11 = vcmp.eq.f32.partialorder %v8484_v48, %v5446_v10  ;;  %vm1896_vm12 = vcmp.eq.f32.partialorder %v8485_v9, %v5725_v1  ;;  %vm1897_vm13 = vcmp.eq.f32.partialorder %v8486_v12, %v5725_v1  ;;  %2853 = vmin.xlane.f32.xlu1 %v5768_v33  ;;  %v8487_v20 = vld [vmem:[#allocation88_spill] sm:$0xff]  ;;  %v5808_v9 = vsel %vm1895_vm8, %v4680_v15, 512  ;;  %v8495_v33 = vld [vmem:[#allocation63_spill] sm:$0xff] }
 0x24a   :  { %8483 = vst [vmem:[#allocation56_spill] sm:$0xff] %v5778_v47  ;;  %vm2687_vm14 = vcmp.lt.s32.totalorder %v2686_v34, %v2142_v44  ;;  %vm1925_vm15 = vcmp.eq.f32.partialorder %v8487_v20, %v5647_v23  ;;  %v5796_v11 = vsub.f32 %v5259_v37, %v4125_v53  ;;  %vm1926_vm0 = vcmp.eq.f32.partialorder %v8490_v28, %v5647_v23 }
 0x24b   :  { %v5800_v57 = vsel %vm2687_vm14, %v2686_v34, %v2142_v44  ;;  %vm2883_vm1 = vcmp.lt.s32.totalorder %v2179_v24, %v2180_v38  ;;  %v2181_v20 = vsel %vm1925_vm15, %v4709_v3, 512  ;;  %v5815_v44 = vsel %vm1896_vm12, %v4699_v22, 512 }
 0x24c   :  { %8488 = vst [vmem:[#allocation44_spill] sm:$0xff] %v5796_v11  ;;  %8489 = vst [vmem:[#allocation46_spill] sm:$0xff] %v5800_v57  ;;  %v2690_v12 = vshra.s32 %v5800_v57, 16  ;;  %v2884_v37 = vsel %vm2883_vm1, %v2179_v24, %v2180_v38  ;;  %v5818_v34 = vsel %vm1897_vm13, %v4709_v3, 512  ;;  %v5821_v23 = vmax.f32 %v1776_v45, %v5778_v47  ;;  %v5838_v47 = vpop.xlane.xlu1 %1624  ;;  %v8501_v57 = vld [vmem:[#allocation54_spill] sm:$0xff] }
 0x24d   :  { %v5770_v14 = vpop.xlane.xlu0 %1669  ;;  %vm2885_vm2 = vcmp.lt.s32.totalorder %v2884_v37, %v2181_v20  ;;  %v5825_v26 = vsub.f32 %v5346_v8, %v4109_v41  ;;  %v2182_v24 = vsel %vm1926_vm0, %v4741_v52, 512  ;;  %vm1899_vm3 = vcmp.eq.f32.partialorder %v8494_v40, %v5477_v0  ;;  %v8497_v8 = vld [vmem:[#allocation93_spill] sm:$0xff] }
 0x24e   :  { %v5827_v28 = vcvt.s32.f32 %v2690_v12  ;;  %v2886_v38 = vsel %vm2885_vm2, %v2884_v37, %v2181_v20  ;;  %vm1900_vm4 = vcmp.eq.f32.partialorder %v8495_v33, %v5477_v0  ;;  %v5836_v45 = vsub.f32 %v5365_v6, %v4111_v42  ;;  %v8498_v12 = vld [vmem:[#allocation52_spill] sm:$0xff]  ;;  %v8499_v20 = vld [vmem:[#allocation95_spill] sm:$0xff] }
 0x24f   :  { %8492 = vst [vmem:[#allocation82_spill] sm:$0xff] %v5825_v26  ;;  %vm1931_vm5 = vcmp.eq.f32.partialorder %v8497_v8, %v5678_v60  ;;  %vm2887_vm6 = vcmp.lt.s32.totalorder %v2886_v38, %v2182_v24  ;;  %vm1889_vm7 = vcmp.eq.f32.partialorder %v8498_v12, %v5523_v5  ;;  %vm1932_vm8 = vcmp.eq.f32.partialorder %v8499_v20, %v5678_v60  ;;  %v8502_v8 = vld [vmem:[#allocation64_spill] sm:$0xff] }
 0x250   :  { %8493 = vst [vmem:[#allocation48_spill] sm:$0xff] %v5827_v28  ;;  %8496 = vst [vmem:[#allocation85_spill] sm:$0xff] %v5836_v45  ;;  %2693 = vmin.xlane.f32.xlu0 %v5827_v28  ;;  %v5847_v37 = vsel %vm2887_vm6, %v2886_v38, %v2182_v24  ;;  %vm1890_vm9 = vcmp.eq.f32.partialorder %v8501_v57, %v5523_v5  ;;  %vm2703_vm12 = vcmp.lt.s32.totalorder %v5605_v32, %v5641_v16  ;;  %v8507_v5 = vld [vmem:[#allocation65_spill] sm:$0xff] }
 0x251   :  { %8500 = vst [vmem:[#allocation87_spill] sm:$0xff] %v5847_v37  ;;  %vm1901_vm13 = vcmp.eq.f32.partialorder %v8502_v8, %v5477_v0  ;;  %v5859_v12 = vsub.f32 %v5329_v2, %v4125_v53  ;;  %v2890_v27 = vshra.s32 %v5847_v37, 16  ;;  %v2145_v24 = vsel %vm1889_vm7, %v4709_v3, 512  ;;  %v5874_v2 = vpop.xlane.xlu1 %1634  ;;  %v8518_v8 = vld [vmem:[#allocation105_spill] sm:$0xff] }
 0x252   :  { %v2704_v38 = vsel %vm2703_vm12, %v5605_v32, %v5641_v16  ;;  %v5867_v28 = vsub.f32 %v5390_v19, %v4113_v43  ;;  %v2187_v36 = vsel %vm1931_vm5, %v4680_v15, 512  ;;  %v1768_v25 = vmax.f32 %v5750_v21, %v5796_v11  ;;  %v8506_v11 = vld [vmem:[#allocation62_spill] sm:$0xff] }
 0x253   :  { %8503 = vst [vmem:[#allocation50_spill] sm:$0xff] %v5859_v12  ;;  %vm2705_vm14 = vcmp.lt.s32.totalorder %v2704_v38, %v2145_v24  ;;  %vm2743_vm15 = vcmp.lt.s32.totalorder %v5808_v9, %v5815_v44  ;;  %v2188_v32 = vsel %vm1932_vm8, %v4699_v22, 512  ;;  %v5880_v16 = vcvt.s32.f32 %v2890_v27  ;;  %v8505_v27 = vld [vmem:[#allocation96_spill] sm:$0xff] }
 0x254   :  { %8504 = vst [vmem:[#allocation57_spill] sm:$0xff] %v5867_v28  ;;  %v2146_v19 = vsel %vm1890_vm9, %v4741_v52, 512  ;;  %v2706_v37 = vsel %vm2705_vm14, %v2704_v38, %v2145_v24  ;;  %v1786_v21 = vmax.f32 %v5825_v26, %v5836_v45  ;;  %1769 = vmax.xlane.f32.xlu0 %v1768_v25  ;;  %v2724_v20 = vsel %vm2723_vm10, %v5687_v4, %v5715_v17  ;;  %v8509_v38 = vld [vmem:[#allocation98_spill] sm:$0xff] }
 0x255   :  { %vm2707_vm0 = vcmp.lt.s32.totalorder %v2706_v37, %v2146_v19  ;;  %vm1933_vm1 = vcmp.eq.f32.partialorder %v8505_v27, %v5678_v60  ;;  %vm1898_vm2 = vcmp.eq.f32.partialorder %v8506_v11, %v5725_v1  ;;  %vm1903_vm5 = vcmp.eq.f32.partialorder %v8507_v5, %v5759_v31  ;;  %2893 = vmin.xlane.f32.xlu1 %v5880_v16  ;;  %v8523_v1 = vld [vmem:[#allocation108_spill] sm:$0xff] }
 0x256   :  { %v5900_v57 = vsel %vm2707_vm0, %v2706_v37, %v2146_v19  ;;  %v2150_v25 = vsel %vm1894_vm11, %v4741_v52, 512  ;;  %vm2725_vm10 = vcmp.lt.s32.totalorder %v2724_v20, %v5722_v55  ;;  %vm1934_vm6 = vcmp.eq.f32.partialorder %v8509_v38, %v5678_v60  ;;  %v8510_v37 = vld [vmem:[#allocation67_spill] sm:$0xff]  ;;  %v5915_v19 = vpop.xlane.xlu1 %1644 }
 0x257   :  { %v5812_v54 = vpop.xlane.xlu0 %2333  ;;  %v2710_v17 = vshra.s32 %v5900_v57, 16  ;;  %v2726_v24 = vsel %vm2725_vm10, %v2724_v20, %v5722_v55  ;;  %vm2923_vm7 = vcmp.lt.s32.totalorder %v2187_v36, %v2188_v32  ;;  %vm1904_vm8 = vcmp.eq.f32.partialorder %v8510_v37, %v5759_v31 }
 0x258   :  { %8491 = vst [vmem:[#allocation80_spill] sm:$0xff] %v5812_v54  ;;  %vm2727_vm9 = vcmp.lt.s32.totalorder %v2726_v24, %v2150_v25  ;;  %v2189_v10 = vsel %vm1933_vm1, %v4709_v3, 512  ;;  %v2924_v48 = vsel %vm2923_vm7, %v2187_v36, %v2188_v32  ;;  %v5919_v27 = vmax.f32 %v1786_v21, %v5867_v28  ;;  %v8513_v21 = vld [vmem:[#allocation68_spill] sm:$0xff] }
 0x259   :  { %v5921_v45 = vcvt.s32.f32 %v2710_v17  ;;  %v5923_v26 = vsel %vm2727_vm9, %v2726_v24, %v2150_v25  ;;  %vm2925_vm11 = vcmp.lt.s32.totalorder %v2924_v48, %v2189_v10  ;;  %v5927_v60 = vsub.f32 %v5416_v58, %v4125_v53  ;;  %v8515_v25 = vld [vmem:[#allocation66_spill] sm:$0xff] }
 0x25a   :  { %8512 = vst [vmem:[#allocation60_spill] sm:$0xff] %v5923_v26  ;;  %v2730_v55 = vshra.s32 %v5923_v26, 16  ;;  %v2190_v20 = vsel %vm1934_vm6, %v4741_v52, 512  ;;  %v2926_v38 = vsel %vm2925_vm11, %v2924_v48, %v2189_v10  ;;  %v2155_v36 = vsel %vm1899_vm3, %v4680_v15, 512  ;;  %v1655_v17 = vpop.xlane.xlu1 %1654  ;;  %v8516_v48 = vld [vmem:[#allocation73_spill] sm:$0xff] }
 0x25b   :  { %v5853_v6 = vpop.xlane.xlu0 %1679  ;;  %8511 = vst [vmem:[#allocation59_spill] sm:$0xff] %v5921_v45  ;;  %v2156_v32 = vsel %vm1900_vm4, %v4699_v22, 512  ;;  %vm1905_vm12 = vcmp.eq.f32.partialorder %v8513_v21, %v5759_v31  ;;  %2713 = vmin.xlane.f32.xlu0 %v5921_v45  ;;  %vm2927_vm14 = vcmp.lt.s32.totalorder %v2926_v38, %v2190_v20  ;;  %vm1902_vm0 = vcmp.eq.f32.partialorder %v8515_v25, %v5477_v0 }
 0x25c   :  { %v5950_v40 = vsel %vm1903_vm5, %v4680_v15, 512  ;;  %v5956_v33 = vsel %vm1904_vm8, %v4699_v22, 512  ;;  %v5958_v24 = vsel %vm2927_vm14, %v2926_v38, %v2190_v20  ;;  %v2157_v10 = vsel %vm1901_vm13, %v4709_v3, 512  ;;  %v8519_v38 = vld [vmem:[#allocation107_spill] sm:$0xff]  ;;  %v8521_v20 = vld [vmem:[#allocation76_spill] sm:$0xff] }
 0x25d   :  { %vm1911_vm3 = vcmp.eq.f32.partialorder %v8516_v48, %v5798_v29  ;;  %v5966_v5 = vcvt.s32.f32 %v2730_v55  ;;  %v2930_v21 = vshra.s32 %v5958_v24, 16  ;;  %vm2763_vm4 = vcmp.lt.s32.totalorder %v2155_v36, %v2156_v32  ;;  %v8520_v48 = vld [vmem:[#allocation75_spill] sm:$0xff] }
 0x25e   :  { %v1778_v37 = vmax.f32 %v5821_v23, %v5859_v12  ;;  %v5972_v28 = vsel %vm1905_vm12, %v4709_v3, 512  ;;  %vm2783_vm13 = vcmp.lt.s32.totalorder %v5950_v40, %v5956_v33  ;;  %vm1943_vm1 = vcmp.eq.f32.partialorder %v8518_v8, %v1655_v17  ;;  %v8524_v8 = vld [vmem:[#allocation110_spill] sm:$0xff] }
 0x25f   :  { %8517 = vst [vmem:[#allocation90_spill] sm:$0xff] %v5966_v5  ;;  %vm1944_vm5 = vcmp.eq.f32.partialorder %v8519_v38, %v1655_v17  ;;  %2733 = vmin.xlane.f32.xlu0 %v5966_v5  ;;  %v5981_v55 = vcvt.s32.f32 %v2930_v21  ;;  %v2744_v23 = vsel %vm2743_vm15, %v5808_v9, %v5815_v44  ;;  %vm1912_vm10 = vcmp.eq.f32.partialorder %v8520_v48, %v5798_v29  ;;  %v8522_v21 = vld [vmem:[#allocation70_spill] sm:$0xff] }
 0x260   :  { %v5907_v4 = vpop.xlane.xlu0 %2353  ;;  %vm1913_vm6 = vcmp.eq.f32.partialorder %v8521_v20, %v5798_v29  ;;  %v5993_v12 = vsel %vm1911_vm3, %v4680_v15, 512  ;;  %vm2745_vm7 = vcmp.lt.s32.totalorder %v2744_v23, %v5818_v34  ;;  %vm1906_vm8 = vcmp.eq.f32.partialorder %v8522_v21, %v5759_v31 }
 0x261   :  { %8508 = vst [vmem:[#allocation58_spill] sm:$0xff] %v5907_v4  ;;  %v6002_v26 = vsub.f32 %v5433_v7, %v4109_v41  ;;  %v6006_v9 = vsub.f32 %v5466_v63, %v4111_v42  ;;  %2933 = vmin.xlane.f32.xlu1 %v5981_v55  ;;  %v2154_v44 = vsel %vm1898_vm2, %v4741_v52, 512  ;;  %v2746_v48 = vsel %vm2745_vm7, %v2744_v23, %v5818_v34 }
 0x262   :  { %v2199_v45 = vsel %vm1943_vm1, %v4680_v15, 512  ;;  %v2200_v41 = vsel %vm1944_vm5, %v4699_v22, 512  ;;  %vm2747_vm15 = vcmp.lt.s32.totalorder %v2746_v48, %v2154_v44  ;;  %v2764_v42 = vsel %vm2763_vm4, %v2155_v36, %v2156_v32 }
 0x263   :  { %v6022_v7 = vsel %vm1912_vm10, %v4699_v22, 512  ;;  %1779 = vmax.xlane.f32.xlu0 %v1778_v37  ;;  %v6024_v63 = vsel %vm2747_vm15, %v2746_v48, %v2154_v44  ;;  %vm2765_vm2 = vcmp.lt.s32.totalorder %v2764_v42, %v2157_v10  ;;  %vm1945_vm9 = vcmp.eq.f32.partialorder %v8523_v1, %v1655_v17  ;;  %v8530_v1 = vld [vmem:[#allocation84_spill] sm:$0xff] }
 0x264   :  { %v5942_v58 = vpop.xlane.xlu0 %2373  ;;  %v6029_v11 = vsub.f32 %v5519_v49, %v4113_v43  ;;  %v2750_v34 = vshra.s32 %v6024_v63, 16  ;;  %v2158_v36 = vsel %vm1902_vm0, %v4741_v52, 512  ;;  %v2766_v32 = vsel %vm2765_vm2, %v2764_v42, %v2157_v10  ;;  %v8527_v10 = vld [vmem:[#allocation81_spill] sm:$0xff] }
 0x265   :  { %8514 = vst [vmem:[#allocation88_spill] sm:$0xff] %v5942_v58  ;;  %v1796_v37 = vmax.f32 %v6002_v26, %v6006_v9  ;;  %vm2767_vm11 = vcmp.lt.s32.totalorder %v2766_v32, %v2158_v36  ;;  %vm1946_vm12 = vcmp.eq.f32.partialorder %v8524_v8, %v1655_v17  ;;  %vm2983_vm14 = vcmp.lt.s32.totalorder %v2199_v45, %v2200_v41  ;;  %v8526_v17 = vld [vmem:[#allocation78_spill] sm:$0xff] }
 0x266   :  { %v6039_v38 = vcvt.s32.f32 %v2750_v34  ;;  %v6041_v23 = vsel %vm2767_vm11, %v2766_v32, %v2158_v36  ;;  %v2201_v43 = vsel %vm1945_vm9, %v4709_v3, 512  ;;  %v2984_v49 = vsel %vm2983_vm14, %v2199_v45, %v2200_v41  ;;  %v8528_v45 = vld [vmem:[#allocation83_spill] sm:$0xff] }
 0x267   :  { %v2169_v0 = vsel %vm1913_vm6, %v4709_v3, 512  ;;  %vm2823_vm0 = vcmp.lt.s32.totalorder %v5993_v12, %v6022_v7  ;;  %v2770_v25 = vshra.s32 %v6041_v23, 16  ;;  %vm2985_vm3 = vcmp.lt.s32.totalorder %v2984_v49, %v2201_v43 }
 0x268   :  { %v5996_v5 = vpop.xlane.xlu0 %1689  ;;  %vm1914_vm4 = vcmp.eq.f32.partialorder %v8526_v17, %v5798_v29  ;;  %vm1919_vm1 = vcmp.eq.f32.partialorder %v8527_v10, %v5838_v47  ;;  %vm1920_vm5 = vcmp.eq.f32.partialorder %v8528_v45, %v5838_v47  ;;  %2753 = vmin.xlane.f32.xlu0 %v6039_v38  ;;  %v2202_v20 = vsel %vm1946_vm12, %v4741_v52, 512  ;;  %v8544_v29 = vld [vmem:[#allocation103_spill] sm:$0xff] }
 0x269   :  { %v2986_v48 = vsel %vm2985_vm3, %v2984_v49, %v2201_v43  ;;  %v6062_v41 = vmax.f32 %v1796_v37, %v6029_v11  ;;  %v6066_v42 = vsub.f32 %v5559_v39, %v4125_v53  ;;  %vm1921_vm10 = vcmp.eq.f32.partialorder %v8530_v1, %v5838_v47  ;;  %v8531_v43 = vld [vmem:[#allocation89_spill] sm:$0xff]  ;;  %v8532_v49 = vld [vmem:[#allocation91_spill] sm:$0xff] }
 0x26a   :  { %vm2987_vm6 = vcmp.lt.s32.totalorder %v2986_v48, %v2202_v20  ;;  %v6070_v34 = vcvt.s32.f32 %v2770_v25  ;;  %v2784_v32 = vsel %vm2783_vm13, %v5950_v40, %v5956_v33  ;;  %v2329_v37 = vand.u32 65535, %v4782_v35  ;;  %v8534_v25 = vld [vmem:[#allocation92_spill] sm:$0xff] }
 0x26b   :  { %8529 = vst [vmem:[#allocation63_spill] sm:$0xff] %v6066_v42  ;;  %v6072_v36 = vsel %vm2987_vm6, %v2986_v48, %v2202_v20  ;;  %v2175_v8 = vsel %vm1919_vm1, %v4680_v15, 512  ;;  %v2176_v53 = vsel %vm1920_vm5, %v4699_v22, 512  ;;  %vm2785_vm7 = vcmp.lt.s32.totalorder %v2784_v32, %v5972_v28  ;;  %v8535_v20 = vld [vmem:[#allocation86_spill] sm:$0xff] }
 0x26c   :  { %v2990_v39 = vshra.s32 %v6072_v36, 16  ;;  %vm1927_vm15 = vcmp.eq.f32.partialorder %v8531_v43, %v5874_v2  ;;  %vm1928_vm2 = vcmp.eq.f32.partialorder %v8532_v49, %v5874_v2  ;;  %2773 = vmin.xlane.f32.xlu0 %v6070_v34  ;;  %v2162_v35 = vsel %vm1906_vm8, %v4741_v52, 512  ;;  %v8538_v49 = vld [vmem:[#allocation99_spill] sm:$0xff] }
 0x26d   :  { %v2786_v40 = vsel %vm2785_vm7, %v2784_v32, %v5972_v28  ;;  %vm1929_vm13 = vcmp.eq.f32.partialorder %v8534_v25, %v5874_v2  ;;  %vm2335_vm11 = vcmp.eq.f32.partialorder %v4797_v51, %v5812_v54  ;;  %v1798_v45 = vmax.f32 %v6062_v41, %v6066_v42 }
 0x26e   :  { %v6098_v10 = vcvt.s32.f32 %v2990_v39  ;;  %vm2787_vm9 = vcmp.lt.s32.totalorder %v2786_v40, %v2162_v35  ;;  %vm1922_vm12 = vcmp.eq.f32.partialorder %v8535_v20, %v5838_v47  ;;  %v2331_v28 = vcvt.s32.f32 %v2329_v37  ;;  %v8536_v37 = vld [vmem:[#allocation97_spill] sm:$0xff]  ;;  %v6185_v47 = vpop.xlane.xlu1 %1664 }
 0x26f   :  { %v6044_v44 = vpop.xlane.xlu0 %2393  ;;  %v6106_v31 = vsel %vm2787_vm9, %v2786_v40, %v2162_v35  ;;  %v2177_v21 = vsel %vm1921_vm10, %v4709_v3, 512  ;;  %v6113_v48 = vsel %vm1927_vm15, %v4680_v15, 512  ;;  %v6116_v32 = vsel %vm1928_vm2, %v4699_v22, 512  ;;  %v8539_v35 = vld [vmem:[#allocation100_spill] sm:$0xff] }
 0x270   :  { %8525 = vst [vmem:[#allocation61_spill] sm:$0xff] %v6044_v44  ;;  %2993 = vmin.xlane.f32.xlu1 %v6098_v10  ;;  %v2790_v51 = vshra.s32 %v6106_v31, 16  ;;  %vm2863_vm8 = vcmp.lt.s32.totalorder %v2175_v8, %v2176_v53  ;;  %v6121_v41 = vsel %vm1929_vm13, %v4709_v3, 512  ;;  %vm1935_vm14 = vcmp.eq.f32.partialorder %v8536_v37, %v5915_v19 }
 0x271   :  { %v8537_v1 = vmax.f32 %v5919_v27, %v5927_v60  ;;  %v2336_v39 = vsel %vm2335_vm11, %v2331_v28, inf  ;;  %vm1936_vm3 = vcmp.eq.f32.partialorder %v8538_v49, %v5915_v19  ;;  %vm1937_vm1 = vcmp.eq.f32.partialorder %v8539_v35, %v5915_v19  ;;  %v8540_v27 = vld [vmem:[#allocation94_spill] sm:$0xff]  ;;  %v8542_v35 = vld [vmem:[#allocation101_spill] sm:$0xff] }
 0x272   :  { %v2824_v40 = vsel %vm2823_vm0, %v5993_v12, %v6022_v7  ;;  %v2349_v25 = vand.u32 65535, %v4831_v13  ;;  %vm1930_vm5 = vcmp.eq.f32.partialorder %v8540_v27, %v5874_v2  ;;  %vm2903_vm10 = vcmp.lt.s32.totalorder %v6113_v48, %v6116_v32 }
 0x273   :  { %1789 = vmax.xlane.f32.xlu0 %v8537_v1  ;;  %v6144_v28 = vcvt.s32.f32 %v2790_v51  ;;  %vm2825_vm6 = vcmp.lt.s32.totalorder %v2824_v40, %v2169_v0  ;;  %vm2355_vm7 = vcmp.eq.f32.partialorder %v4861_v30, %v5907_v4  ;;  %v2191_v37 = vsel %vm1935_vm14, %v4680_v15, 512  ;;  %v8541_v1 = vld [vmem:[#allocation102_spill] sm:$0xff] }
 0x274   :  { %v6094_v33 = vpop.xlane.xlu0 %2413  ;;  %2337 = vmin.xlane.f32.xlu1 %v2336_v39  ;;  %v2170_v13 = vsel %vm1914_vm4, %v4741_v52, 512  ;;  %v2826_v12 = vsel %vm2825_vm6, %v2824_v40, %v2169_v0  ;;  %v2351_v7 = vcvt.s32.f32 %v2349_v25  ;;  %vm1938_vm0 = vcmp.eq.f32.partialorder %v8541_v1, %v5915_v19  ;;  %v8546_v40 = vld [vmem:[#allocation104_spill] sm:$0xff]  ;;  %v8562_v1 = vld [vmem:[#allocation158_spill] sm:$0xff] }
 0x275   :  { %8533 = vst [vmem:[#allocation93_spill] sm:$0xff] %v6094_v33  ;;  %v2192_v51 = vsel %vm1936_vm3, %v4699_v22, 512  ;;  %v2193_v49 = vsel %vm1937_vm1, %v4709_v3, 512  ;;  %vm1939_vm15 = vcmp.eq.f32.partialorder %v8542_v35, %v5709_v61  ;;  %vm2827_vm2 = vcmp.lt.s32.totalorder %v2826_v12, %v2170_v13 }
 0x276   :  { %vm1940_vm4 = vcmp.eq.f32.partialorder %v8544_v29, %v5709_v61  ;;  %v6164_v0 = vsel %vm2827_vm2, %v2826_v12, %v2170_v13  ;;  %v2356_v17 = vsel %vm2355_vm7, %v2351_v7, inf  ;;  %v2864_v39 = vsel %vm2863_vm8, %v2175_v8, %v2176_v53  ;;  %v8547_v7 = vld [vmem:[#allocation145_spill] sm:$0xff]  ;;  %v8549_v29 = vld [vmem:[#allocation106_spill] sm:$0xff] }
 0x277   :  { %2793 = vmin.xlane.f32.xlu0 %v6144_v28  ;;  %8545 = vst [vmem:[#allocation95_spill] sm:$0xff] %v6164_v0  ;;  %vm1941_vm13 = vcmp.eq.f32.partialorder %v8546_v40, %v5709_v61  ;;  %v2830_v25 = vshra.s32 %v6164_v0, 16  ;;  %vm2865_vm9 = vcmp.lt.s32.totalorder %v2864_v39, %v2177_v21  ;;  %v2369_v35 = vand.u32 65535, %v4868_v62  ;;  %v8548_v53 = vld [vmem:[#allocation109_spill] sm:$0xff] }
 0x278   :  { %v6128_v43 = vpop.xlane.xlu0 %1699  ;;  %v2195_v4 = vsel %vm1939_vm15, %v4680_v15, 512  ;;  %2357 = vmin.xlane.f32.xlu1 %v2356_v17  ;;  %v2178_v13 = vsel %vm1922_vm12, %v4741_v52, 512  ;;  %v2866_v12 = vsel %vm2865_vm9, %v2864_v39, %v2177_v21  ;;  %vm2375_vm11 = vcmp.eq.f32.partialorder %v8547_v7, %v5942_v58  ;;  %v8550_v17 = vld [vmem:[#allocation111_spill] sm:$0xff]  ;;  %v8554_v58 = vld [vmem:[#allocation112_spill] sm:$0xff] }
 0x279   :  { %v2196_v8 = vsel %vm1940_vm4, %v4699_v22, 512  ;;  %vm1947_vm8 = vcmp.eq.f32.partialorder %v8548_v53, %v5740_v18  ;;  %vm2867_vm14 = vcmp.lt.s32.totalorder %v2866_v12, %v2178_v13  ;;  %v2371_v62 = vcvt.s32.f32 %v2369_v35  ;;  %v8557_v53 = vld [vmem:[#allocation116_spill] sm:$0xff] }
 0x27a   :  { %vm2943_vm3 = vcmp.lt.s32.totalorder %v2191_v37, %v2192_v51  ;;  %vm1942_vm1 = vcmp.eq.f32.partialorder %v8549_v29, %v5709_v61  ;;  %vm1948_vm6 = vcmp.eq.f32.partialorder %v8550_v17, %v5740_v18  ;;  %v6187_v20 = vsel %vm2867_vm14, %v2866_v12, %v2178_v13  ;;  %v8555_v12 = vld [vmem:[#allocation113_spill] sm:$0xff]  ;;  %v6222_v17 = vpop.xlane.xlu1 %1674 }
 0x27b   :  { %1799 = vmax.xlane.f32.xlu0 %v1798_v45  ;;  %8551 = vst [vmem:[#allocation54_spill] sm:$0xff] %v6187_v20  ;;  %v2197_v45 = vsel %vm1941_vm13, %v4709_v3, 512  ;;  %v6195_v39 = vcvt.s32.f32 %v2830_v25  ;;  %v2870_v35 = vshra.s32 %v6187_v20, 16  ;;  %v2376_v7 = vsel %vm2375_vm11, %v2371_v62, inf  ;;  %v8556_v62 = vld [vmem:[#allocation115_spill] sm:$0xff] }
 0x27c   :  { %v6160_v30 = vpop.xlane.xlu0 %2433  ;;  %vm2963_vm12 = vcmp.lt.s32.totalorder %v2195_v4, %v2196_v8  ;;  %vm1949_vm7 = vcmp.eq.f32.partialorder %v8554_v58, %v5740_v18  ;;  %v6204_v13 = vsel %vm1947_vm8, %v4680_v15, 512  ;;  %2377 = vmin.xlane.f32.xlu1 %v2376_v7  ;;  %v2904_v40 = vsel %vm2903_vm10, %v6113_v48, %v6116_v32 }
 0x27d   :  { %8543 = vst [vmem:[#allocation52_spill] sm:$0xff] %v6160_v30  ;;  %8553 = vst [vmem:[#allocation96_spill] sm:$0xff] %v6195_v39  ;;  %v6212_v25 = vsel %vm1948_vm6, %v4699_v22, 512  ;;  %vm1951_vm15 = vcmp.eq.f32.partialorder %v8555_v12, %v6185_v47  ;;  %vm1952_vm2 = vcmp.eq.f32.partialorder %v8556_v62, %v6185_v47  ;;  %vm2905_vm4 = vcmp.lt.s32.totalorder %v2904_v40, %v6121_v41  ;;  %v8569_v12 = vld [vmem:[#allocation117_spill] sm:$0xff] }
 0x27e   :  { %vm1953_vm13 = vcmp.eq.f32.partialorder %v8557_v53, %v6185_v47  ;;  %v2186_v48 = vsel %vm1930_vm5, %v4741_v52, 512  ;;  %v2906_v32 = vsel %vm2905_vm4, %v2904_v40, %v6121_v41  ;;  %v2944_v7 = vsel %vm2943_vm3, %v2191_v37, %v2192_v51  ;;  %v8559_v41 = vld [vmem:[#allocation154_spill] sm:$0xff]  ;;  %v1685_v40 = vpop.xlane.xlu1 %1684  ;;  %v8575_v53 = vld [vmem:[#allocation121_spill] sm:$0xff] }
 0x27f   :  { %2833 = vmin.xlane.f32.xlu0 %v6195_v39  ;;  %v6232_v20 = vcvt.s32.f32 %v2870_v35  ;;  %vm2907_vm10 = vcmp.lt.s32.totalorder %v2906_v32, %v2186_v48  ;;  %vm2945_vm9 = vcmp.lt.s32.totalorder %v2944_v7, %v2193_v49  ;;  %v8558_v39 = vld [vmem:[#allocation152_spill] sm:$0xff]  ;;  %v2194_v2 = vsel %vm1938_vm0, %v4741_v52, 512  ;;  %v8560_v37 = vld [vmem:[#allocation114_spill] sm:$0xff] }
 0x280   :  { %v2389_v0 = vand.u32 65535, %v8558_v39  ;;  %v6235_v42 = vsel %vm2907_vm10, %v2906_v32, %v2186_v48  ;;  %v2946_v27 = vsel %vm2945_vm9, %v2944_v7, %v2193_v49  ;;  %vm2395_vm5 = vcmp.eq.f32.partialorder %v8559_v41, %v6044_v44 }
 0x281   :  { %v6189_v21 = vpop.xlane.xlu0 %2453  ;;  %vm1950_vm11 = vcmp.eq.f32.partialorder %v8560_v37, %v5740_v18  ;;  %v2910_v51 = vshra.s32 %v6235_v42, 16  ;;  %vm2947_vm8 = vcmp.lt.s32.totalorder %v2946_v27, %v2194_v2  ;;  %v2964_v35 = vsel %vm2963_vm12, %v2195_v4, %v2196_v8  ;;  %v8565_v8 = vld [vmem:[#allocation161_spill] sm:$0xff] }
 0x282   :  { %8552 = vst [vmem:[#allocation64_spill] sm:$0xff] %v6189_v21  ;;  %v2391_v39 = vcvt.s32.f32 %v2389_v0  ;;  %v6248_v48 = vsel %vm2947_vm8, %v2946_v27, %v2194_v2  ;;  %v2198_v19 = vsel %vm1942_vm1, %v4741_v52, 512  ;;  %vm2965_vm0 = vcmp.lt.s32.totalorder %v2964_v35, %v2197_v45  ;;  %v8566_v2 = vld [vmem:[#allocation128_spill] sm:$0xff] }
 0x283   :  { %2873 = vmin.xlane.f32.xlu0 %v6232_v20  ;;  %8561 = vst [vmem:[#allocation62_spill] sm:$0xff] %v6248_v48  ;;  %v2409_v49 = vand.u32 65535, %v8562_v1  ;;  %v6255_v32 = vcvt.s32.f32 %v2910_v51  ;;  %v2950_v7 = vshra.s32 %v6248_v48, 16  ;;  %v2966_v44 = vsel %vm2965_vm0, %v2964_v35, %v2197_v45  ;;  %v8567_v45 = vld [vmem:[#allocation129_spill] sm:$0xff]  ;;  %v8570_v51 = vld [vmem:[#allocation119_spill] sm:$0xff]  ;;  %v8573_v1 = vld [vmem:[#allocation118_spill] sm:$0xff] }
 0x284   :  { %v2396_v41 = vsel %vm2395_vm5, %v2391_v39, inf  ;;  %v2207_v4 = vsel %vm1951_vm15, %v4680_v15, 512  ;;  %vm2967_vm14 = vcmp.lt.s32.totalorder %v2966_v44, %v2198_v19  ;;  %vm2415_vm3 = vcmp.eq.f32.partialorder %v8565_v8, %v6094_v33  ;;  %v8571_v39 = vld [vmem:[#allocation120_spill] sm:$0xff]  ;;  %v8580_v33 = vld [vmem:[#allocation122_spill] sm:$0xff] }
 0x285   :  { %v6230_v54 = vpop.xlane.xlu0 %1709  ;;  %8563 = vst [vmem:[#allocation65_spill] sm:$0xff] %v6255_v32  ;;  %2397 = vmin.xlane.f32.xlu1 %v2396_v41  ;;  %v2411_v61 = vcvt.s32.f32 %v2409_v49  ;;  %v2208_v29 = vsel %vm1952_vm2, %v4699_v22, 512  ;;  %vm1967_vm1 = vcmp.eq.f32.partialorder %v8566_v2, %v1685_v40  ;;  %vm1968_vm6 = vcmp.eq.f32.partialorder %v8567_v45, %v1685_v40  ;;  %v8576_v45 = vld [vmem:[#allocation123_spill] sm:$0xff] }
 0x286   :  { %v6273_v27 = vsel %vm2967_vm14, %v2966_v44, %v2198_v19  ;;  %vm1955_vm12 = vcmp.eq.f32.partialorder %v8569_v12, %v5770_v14  ;;  %vm1956_vm15 = vcmp.eq.f32.partialorder %v8570_v51, %v5770_v14  ;;  %vm1957_vm4 = vcmp.eq.f32.partialorder %v8571_v39, %v5770_v14  ;;  %v8577_v51 = vld [vmem:[#allocation131_spill] sm:$0xff] }
 0x287   :  { %2913 = vmin.xlane.f32.xlu0 %v6255_v32  ;;  %8568 = vst [vmem:[#allocation67_spill] sm:$0xff] %v6273_v27  ;;  %v2416_v35 = vsel %vm2415_vm3, %v2411_v61, inf  ;;  %v2205_v62 = vsel %vm1949_vm7, %v4709_v3, 512  ;;  %vm3003_vm2 = vcmp.lt.s32.totalorder %v6204_v13, %v6212_v25  ;;  %v6287_v44 = vcvt.s32.f32 %v2950_v7 }
 0x288   :  { %v2970_v19 = vshra.s32 %v6273_v27, 16  ;;  %vm1954_vm10 = vcmp.eq.f32.partialorder %v8573_v1, %v6185_v47  ;;  %v2209_v49 = vsel %vm1953_vm13, %v4709_v3, 512  ;;  %v2223_v41 = vsel %vm1967_vm1, %v4680_v15, 512 }
 0x289   :  { %v6258_v0 = vpop.xlane.xlu0 %2473  ;;  %8572 = vst [vmem:[#allocation68_spill] sm:$0xff] %v6287_v44  ;;  %v2224_v58 = vsel %vm1968_vm6, %v4699_v22, 512  ;;  %2417 = vmin.xlane.f32.xlu1 %v2416_v35  ;;  %vm3023_vm7 = vcmp.lt.s32.totalorder %v2207_v4, %v2208_v29  ;;  %v2211_v61 = vsel %vm1955_vm12, %v4680_v15, 512  ;;  %v2212_v7 = vsel %vm1956_vm15, %v4699_v22, 512  ;;  %v8579_v35 = vld [vmem:[#allocation132_spill] sm:$0xff] }
 0x28a   :  { %8564 = vst [vmem:[#allocation98_spill] sm:$0xff] %v6258_v0  ;;  %v6301_v8 = vsel %vm1957_vm4, %v4709_v3, 512  ;;  %vm1959_vm13 = vcmp.eq.f32.partialorder %v8575_v53, %v6222_v17  ;;  %vm1960_vm9 = vcmp.eq.f32.partialorder %v8576_v45, %v6222_v17  ;;  %v3004_v12 = vsel %vm3003_vm2, %v6204_v13, %v6212_v25  ;;  %v8581_v25 = vld [vmem:[#allocation124_spill] sm:$0xff]  ;;  %v8586_v53 = vld [vmem:[#allocation125_spill] sm:$0xff] }
 0x28b   :  { %2953 = vmin.xlane.f32.xlu0 %v6287_v44  ;;  %vm1969_vm5 = vcmp.eq.f32.partialorder %v8577_v51, %v1685_v40  ;;  %v6316_v39 = vcvt.s32.f32 %v2970_v19  ;;  %vm3005_vm8 = vcmp.lt.s32.totalorder %v3004_v12, %v2205_v62  ;;  %vm1970_vm0 = vcmp.eq.f32.partialorder %v8579_v35, %v1685_v40 }
 0x28c   :  { %vm3103_vm14 = vcmp.lt.s32.totalorder %v2223_v41, %v2224_v58  ;;  %vm1958_vm3 = vcmp.eq.f32.partialorder %v8580_v33, %v5770_v14  ;;  %v2206_v27 = vsel %vm1950_vm11, %v4741_v52, 512  ;;  %v3006_v44 = vsel %vm3005_vm8, %v3004_v12, %v2205_v62  ;;  %v6351_v12 = vpop.xlane.xlu1 %1694  ;;  %v8598_v14 = vld [vmem:[#allocation133_spill] sm:$0xff] }
 0x28d   :  { %8578 = vst [vmem:[#allocation73_spill] sm:$0xff] %v6316_v39  ;;  %v2225_v48 = vsel %vm1969_vm5, %v4709_v3, 512  ;;  %v3104_v13 = vsel %vm3103_vm14, %v2223_v41, %v2224_v58  ;;  %vm1961_vm1 = vcmp.eq.f32.partialorder %v8581_v25, %v6222_v17  ;;  %vm3007_vm6 = vcmp.lt.s32.totalorder %v3006_v44, %v2206_v27  ;;  %v8591_v25 = vld [vmem:[#allocation130_spill] sm:$0xff]  ;;  %v8599_v33 = vld [vmem:[#allocation137_spill] sm:$0xff] }
 0x28e   :  { %vm3105_vm12 = vcmp.lt.s32.totalorder %v3104_v13, %v2225_v48  ;;  %v3024_v40 = vsel %vm3023_vm7, %v2207_v4, %v2208_v29  ;;  %v6332_v51 = vsel %vm3007_vm6, %v3006_v44, %v2206_v27  ;;  %v2226_v18 = vsel %vm1970_vm0, %v4741_v52, 512  ;;  %v8583_v27 = vld [vmem:[#allocation167_spill] sm:$0xff] }
 0x28f   :  { %v6304_v2 = vpop.xlane.xlu0 %2493  ;;  %2973 = vmin.xlane.f32.xlu0 %v6316_v39  ;;  %8582 = vst [vmem:[#allocation105_spill] sm:$0xff] %v6332_v51  ;;  %v3106_v37 = vsel %vm3105_vm12, %v3104_v13, %v2225_v48  ;;  %vm3025_vm11 = vcmp.lt.s32.totalorder %v3024_v40, %v2209_v49  ;;  %v3010_v62 = vshra.s32 %v6332_v51, 16  ;;  %v2210_v41 = vsel %vm1954_vm10, %v4741_v52, 512  ;;  %v8604_v39 = vld [vmem:[#allocation139_spill] sm:$0xff] }
 0x290   :  { %8574 = vst [vmem:[#allocation66_spill] sm:$0xff] %v6304_v2  ;;  %vm3107_vm15 = vcmp.lt.s32.totalorder %v3106_v37, %v2226_v18  ;;  %v3026_v58 = vsel %vm3025_vm11, %v3024_v40, %v2209_v49  ;;  %v2215_v4 = vsel %vm1959_vm13, %v4680_v15, 512  ;;  %v2429_v48 = vand.u32 65535, %v8583_v27  ;;  %v8588_v40 = vld [vmem:[#allocation126_spill] sm:$0xff]  ;;  %v8593_v27 = vld [vmem:[#allocation135_spill] sm:$0xff] }
 0x291   :  { %v6344_v29 = vsel %vm3107_vm15, %v3106_v37, %v2226_v18  ;;  %vm3027_vm4 = vcmp.lt.s32.totalorder %v3026_v58, %v2210_v41  ;;  %v2216_v44 = vsel %vm1960_vm9, %v4699_v22, 512  ;;  %v6353_v47 = vcvt.s32.f32 %v3010_v62  ;;  %v8589_v18 = vld [vmem:[#allocation127_spill] sm:$0xff]  ;;  %v8590_v62 = vld [vmem:[#allocation170_spill] sm:$0xff] }
 0x292   :  { %v3110_v1 = vshra.s32 %v6344_v29, 16  ;;  %v6356_v49 = vsel %vm3027_vm4, %v3026_v58, %v2210_v41  ;;  %vm3043_vm2 = vcmp.lt.s32.totalorder %v2211_v61, %v2212_v7  ;;  %vm1962_vm10 = vcmp.eq.f32.partialorder %v8586_v53, %v6222_v17  ;;  %v8592_v41 = vld [vmem:[#allocation134_spill] sm:$0xff] }
 0x293   :  { %v6330_v19 = vpop.xlane.xlu0 %1719  ;;  %8584 = vst [vmem:[#allocation107_spill] sm:$0xff] %v6353_v47  ;;  %8585 = vst [vmem:[#allocation75_spill] sm:$0xff] %v6356_v49  ;;  %v2217_v35 = vsel %vm1961_vm1, %v4709_v3, 512  ;;  %v3030_v45 = vshra.s32 %v6356_v49, 16  ;;  %vm1963_vm7 = vcmp.eq.f32.partialorder %v8588_v40, %v5853_v6  ;;  %vm1964_vm13 = vcmp.eq.f32.partialorder %v8589_v18, %v5853_v6  ;;  %3013 = vmin.xlane.f32.xlu0 %v6353_v47  ;;  %v8595_v18 = vld [vmem:[#allocation171_spill] sm:$0xff]  ;;  %v8606_v53 = vld [vmem:[#allocation150_spill] sm:$0xff] }
 0x294   :  { %v6372_v37 = vcvt.s32.f32 %v3110_v1  ;;  %vm2435_vm9 = vcmp.eq.f32.partialorder %v8590_v62, %v6160_v30  ;;  %vm3063_vm5 = vcmp.lt.s32.totalorder %v2215_v4, %v2216_v44  ;;  %vm1965_vm8 = vcmp.eq.f32.partialorder %v8591_v25, %v5853_v6 }
 0x295   :  { %vm1975_vm0 = vcmp.eq.f32.partialorder %v8592_v41, %v6351_v12  ;;  %v2431_v58 = vcvt.s32.f32 %v2429_v48  ;;  %vm1976_vm14 = vcmp.eq.f32.partialorder %v8593_v27, %v6351_v12  ;;  %v6383_v40 = vcvt.s32.f32 %v3030_v45  ;;  %v8597_v45 = vld [vmem:[#allocation174_spill] sm:$0xff] }
 0x296   :  { %3113 = vmin.xlane.f32.xlu1 %v6372_v37  ;;  %v3044_v1 = vsel %vm3043_vm2, %v2211_v61, %v2212_v7  ;;  %v2449_v49 = vand.u32 65535, %v8595_v18  ;;  %v2219_v62 = vsel %vm1963_vm7, %v4680_v15, 512  ;;  %v2220_v30 = vsel %vm1964_vm13, %v4699_v22, 512 }
 0x297   :  { %v6365_v13 = vpop.xlane.xlu0 %2513  ;;  %8594 = vst [vmem:[#allocation70_spill] sm:$0xff] %v6383_v40  ;;  %v2436_v25 = vsel %vm2435_vm9, %v2431_v58, inf  ;;  %vm3045_vm1 = vcmp.lt.s32.totalorder %v3044_v1, %v6301_v8  ;;  %v6393_v48 = vsel %vm1965_vm8, %v4709_v3, 512  ;;  %3033 = vmin.xlane.f32.xlu0 %v6383_v40  ;;  %v2214_v61 = vsel %vm1958_vm3, %v4741_v52, 512 }
 0x298   :  { %8587 = vst [vmem:[#allocation76_spill] sm:$0xff] %v6365_v13  ;;  %v3046_v7 = vsel %vm3045_vm1, %v3044_v1, %v6301_v8  ;;  %vm2455_vm6 = vcmp.eq.f32.partialorder %v8597_v45, %v6189_v21  ;;  %v2231_v58 = vsel %vm1975_vm0, %v4680_v15, 512  ;;  %v2232_v18 = vsel %vm1976_vm14, %v4699_v22, 512  ;;  %v8600_v8 = vld [vmem:[#allocation138_spill] sm:$0xff]  ;;  %v8601_v1 = vld [vmem:[#allocation140_spill] sm:$0xff] }
 0x299   :  { %vm3047_vm12 = vcmp.lt.s32.totalorder %v3046_v7, %v2214_v61  ;;  %v2451_v40 = vcvt.s32.f32 %v2449_v49  ;;  %vm1966_vm3 = vcmp.eq.f32.partialorder %v8598_v14, %v5853_v6  ;;  %vm1971_vm11 = vcmp.eq.f32.partialorder %v8599_v33, %v5996_v5  ;;  %v8603_v21 = vld [vmem:[#allocation136_spill] sm:$0xff]  ;;  %v8608_v33 = vld [vmem:[#allocation151_spill] sm:$0xff] }
 0x29a   :  { %vm1972_vm15 = vcmp.eq.f32.partialorder %v8600_v8, %v5996_v5  ;;  %vm1973_vm4 = vcmp.eq.f32.partialorder %v8601_v1, %v5996_v5  ;;  %2437 = vmin.xlane.f32.xlu1 %v2436_v25  ;;  %v6419_v41 = vsel %vm3047_vm12, %v3046_v7, %v2214_v61  ;;  %v3064_v49 = vsel %vm3063_vm5, %v2215_v4, %v2216_v44  ;;  %v6444_v44 = vpop.xlane.xlu1 %1704  ;;  %v8613_v1 = vld [vmem:[#allocation180_spill] sm:$0xff] }
 0x29b   :  { %v6390_v47 = vpop.xlane.xlu0 %2533  ;;  %8602 = vst [vmem:[#allocation110_spill] sm:$0xff] %v6419_v41  ;;  %v3050_v27 = vshra.s32 %v6419_v41, 16  ;;  %v2456_v45 = vsel %vm2455_vm6, %v2451_v40, inf  ;;  %vm1977_vm2 = vcmp.eq.f32.partialorder %v8603_v21, %v6351_v12  ;;  %v2218_v51 = vsel %vm1962_vm10, %v4741_v52, 512  ;;  %v8647_v41 = vld [vmem:[#allocation182_spill] sm:$0xff] }
 0x29c   :  { %8596 = vst [vmem:[#allocation108_spill] sm:$0xff] %v6390_v47  ;;  %vm3065_vm7 = vcmp.lt.s32.totalorder %v3064_v49, %v2217_v35  ;;  %vm1978_vm13 = vcmp.eq.f32.partialorder %v8604_v39, %v6351_v12  ;;  %vm3143_vm9 = vcmp.lt.s32.totalorder %v2231_v58, %v2232_v18  ;;  %v2233_v40 = vsel %vm1977_vm2, %v4709_v3, 512  ;;  %v8610_v39 = vld [vmem:[#allocation141_spill] sm:$0xff] }
 0x29d   :  { %v6431_v25 = vcvt.s32.f32 %v3050_v27  ;;  %v3066_v61 = vsel %vm3065_vm7, %v3064_v49, %v2217_v35  ;;  %v3144_v7 = vsel %vm3143_vm9, %v2231_v58, %v2232_v18  ;;  %v2227_v21 = vsel %vm1971_vm11, %v4680_v15, 512  ;;  %v8609_v27 = vld [vmem:[#allocation144_spill] sm:$0xff] }
 0x29e   :  { %v2228_v17 = vsel %vm1972_vm15, %v4699_v22, 512  ;;  %2457 = vmin.xlane.f32.xlu1 %v2456_v45  ;;  %vm3067_vm10 = vcmp.lt.s32.totalorder %v3066_v61, %v2218_v51  ;;  %vm3145_vm5 = vcmp.lt.s32.totalorder %v3144_v7, %v2233_v40  ;;  %vm1979_vm8 = vcmp.eq.f32.partialorder %v8606_v53, %v6128_v43 }
 0x29f   :  { %8605 = vst [vmem:[#allocation78_spill] sm:$0xff] %v6431_v25  ;;  %v6434_v4 = vpop.xlane.xlu0 %1729  ;;  %3053 = vmin.xlane.f32.xlu0 %v6431_v25  ;;  %v6449_v35 = vsel %vm3067_vm10, %v3066_v61, %v2218_v51  ;;  %v2234_v58 = vsel %vm1978_vm13, %v4741_v52, 512  ;;  %v3146_v18 = vsel %vm3145_vm5, %v3144_v7, %v2233_v40  ;;  %vm3083_vm0 = vcmp.lt.s32.totalorder %v2219_v62, %v2220_v30  ;;  %v8612_v7 = vld [vmem:[#allocation162_spill] sm:$0xff] }
 0x2a0   :  { %8607 = vst [vmem:[#allocation81_spill] sm:$0xff] %v6449_v35  ;;  %vm1980_vm14 = vcmp.eq.f32.partialorder %v8608_v33, %v6128_v43  ;;  %v3070_v8 = vshra.s32 %v6449_v35, 16  ;;  %vm3147_vm1 = vcmp.lt.s32.totalorder %v3146_v18, %v2234_v58  ;;  %vm1974_vm6 = vcmp.eq.f32.partialorder %v8609_v27, %v5996_v5  ;;  %v8622_v5 = vld [vmem:[#allocation13_spill] sm:$0xff]  ;;  %v8623_v27 = vld [vmem:[#allocation155_spill] sm:$0xff] }
 0x2a1   :  { %v2229_v51 = vsel %vm1973_vm4, %v4709_v3, 512  ;;  %vm3123_vm12 = vcmp.lt.s32.totalorder %v2227_v21, %v2228_v17  ;;  %v6464_v45 = vsel %vm3147_vm1, %v3146_v18, %v2234_v58  ;;  %vm1983_vm11 = vcmp.eq.f32.partialorder %v8610_v39, %v6444_v44  ;;  %v8616_v18 = vld [vmem:[#allocation183_spill] sm:$0xff]  ;;  %v8630_v39 = vld [vmem:[#allocation173_spill] sm:$0xff] }
 0x2a2   :  { %v2235_v12 = vsel %vm1979_vm8, %v4680_v15, 512  ;;  %v6469_v49 = vcvt.s32.f32 %v3070_v8  ;;  %v3150_v61 = vshra.s32 %v6464_v45, 16  ;;  %v2236_v40 = vsel %vm1980_vm14, %v4699_v22, 512 }
 0x2a3   :  { %vm1987_vm15 = vcmp.eq.f32.partialorder %v8612_v7, %v6230_v54  ;;  %v3084_v53 = vsel %vm3083_vm0, %v2219_v62, %v2220_v30  ;;  %v2469_v33 = vand.u32 65535, %v8613_v1  ;;  %v6476_v35 = vpop.xlane.xlu0 %2553  ;;  %vm2475_vm2 = vcmp.eq.f32.partialorder %v8616_v18, %v6258_v0  ;;  %v8617_v18 = vld [vmem:[#allocation186_spill] sm:$0xff]  ;;  %v8627_v7 = vld [vmem:[#allocation159_spill] sm:$0xff] }
 0x2a4   :  { %8611 = vst [vmem:[#allocation83_spill] sm:$0xff] %v6469_v49  ;;  %8614 = vst [vmem:[#allocation84_spill] sm:$0xff] %v6476_v35  ;;  %3073 = vmin.xlane.f32.xlu0 %v6469_v49  ;;  %v6479_v58 = vcvt.s32.f32 %v3150_v61  ;;  %vm3085_vm4 = vcmp.lt.s32.totalorder %v3084_v53, %v6393_v48  ;;  %v3124_v8 = vsel %vm3123_vm12, %v2227_v21, %v2228_v17  ;;  %v2222_v25 = vsel %vm1966_vm3, %v4741_v52, 512  ;;  %v8618_v17 = vld [vmem:[#allocation163_spill] sm:$0xff]  ;;  %v8633_v49 = vld [vmem:[#allocation146_spill] sm:$0xff] }
 0x2a5   :  { %v3086_v30 = vsel %vm3085_vm4, %v3084_v53, %v6393_v48  ;;  %v2471_v62 = vcvt.s32.f32 %v2469_v33  ;;  %vm3125_vm7 = vcmp.lt.s32.totalorder %v3124_v8, %v2229_v51  ;;  %v2230_v61 = vsel %vm1974_vm6, %v4741_v52, 512  ;;  %v8620_v48 = vld [vmem:[#allocation142_spill] sm:$0xff]  ;;  %v8652_v0 = vld [vmem:[#allocation15_spill] sm:$0xff] }
 0x2a6   :  { %8615 = vst [vmem:[#allocation89_spill] sm:$0xff] %v6479_v58  ;;  %3153 = vmin.xlane.f32.xlu1 %v6479_v58  ;;  %vm3087_vm13 = vcmp.lt.s32.totalorder %v3086_v30, %v2222_v25  ;;  %v3126_v1 = vsel %vm3125_vm7, %v3124_v8, %v2229_v51  ;;  %v2489_v21 = vand.u32 65535, %v8617_v18  ;;  %vm1988_vm9 = vcmp.eq.f32.partialorder %v8618_v17, %v6230_v54  ;;  %v6508_v51 = vpop.xlane.xlu1 %1714  ;;  %v8626_v18 = vld [vmem:[#allocation18_spill] sm:$0xff] }
 0x2a7   :  { %v6497_v6 = vsel %vm3087_vm13, %v3086_v30, %v2222_v25  ;;  %v2476_v14 = vsel %vm2475_vm2, %v2471_v62, inf  ;;  %vm3127_vm3 = vcmp.lt.s32.totalorder %v3126_v1, %v2230_v61  ;;  %vm1984_vm10 = vcmp.eq.f32.partialorder %v8620_v48, %v6444_v44 }
 0x2a8   :  { %8619 = vst [vmem:[#allocation91_spill] sm:$0xff] %v6497_v6  ;;  %v3090_v53 = vshra.s32 %v6497_v6, 16  ;;  %v6502_v33 = vsel %vm3127_vm3, %v3126_v1, %v2230_v61  ;;  %vm2495_vm5 = vcmp.eq.f32.partialorder %v8622_v5, %v6304_v2  ;;  %vm1981_vm8 = vcmp.eq.f32.partialorder %v8623_v27, %v6128_v43  ;;  %v8632_v6 = vld [vmem:[#allocation143_spill] sm:$0xff] }
 0x2a9   :  { %8621 = vst [vmem:[#allocation92_spill] sm:$0xff] %v6502_v33  ;;  %v3130_v25 = vshra.s32 %v6502_v33, 16  ;;  %v2491_v8 = vcvt.s32.f32 %v2489_v21  ;;  %vm3163_vm0 = vcmp.lt.s32.totalorder %v2235_v12, %v2236_v40  ;;  %v2243_v62 = vsel %vm1987_vm15, %v4680_v15, 512 }
 0x2aa   :  { %v6511_v30 = vpop.xlane.xlu0 %2573  ;;  %v2244_v61 = vsel %vm1988_vm9, %v4699_v22, 512  ;;  %v6518_v1 = vcvt.s32.f32 %v3090_v53  ;;  %2477 = vmin.xlane.f32.xlu1 %v2476_v14  ;;  %v2509_v17 = vand.u32 65535, %v8626_v18  ;;  %v2239_v21 = vsel %vm1983_vm11, %v4680_v15, 512  ;;  %v8628_v14 = vld [vmem:[#allocation147_spill] sm:$0xff]  ;;  %v8629_v18 = vld [vmem:[#allocation166_spill] sm:$0xff]  ;;  %v6542_v33 = vpop.xlane.xlu1 %1724 }
 0x2ab   :  { %8624 = vst [vmem:[#allocation86_spill] sm:$0xff] %v6511_v30  ;;  %v2240_v5 = vsel %vm1984_vm10, %v4699_v22, 512  ;;  %v2496_v27 = vsel %vm2495_vm5, %v2491_v8, inf  ;;  %vm1982_vm14 = vcmp.eq.f32.partialorder %v8627_v7, %v6128_v43  ;;  %v2237_v53 = vsel %vm1981_vm8, %v4709_v3, 512 }
 0x2ac   :  { %8625 = vst [vmem:[#allocation97_spill] sm:$0xff] %v6518_v1  ;;  %vm1991_vm1 = vcmp.eq.f32.partialorder %v8628_v14, %v6508_v51  ;;  %vm1989_vm6 = vcmp.eq.f32.partialorder %v8629_v18, %v6230_v54  ;;  %3093 = vmin.xlane.f32.xlu0 %v6518_v1  ;;  %vm1990_vm12 = vcmp.eq.f32.partialorder %v8630_v39, %v6230_v54  ;;  %v6539_v48 = vcvt.s32.f32 %v3130_v25  ;;  %v8637_v18 = vld [vmem:[#allocation148_spill] sm:$0xff] }
 0x2ad   :  { %vm3203_vm11 = vcmp.lt.s32.totalorder %v2243_v62, %v2244_v61  ;;  %v3164_v8 = vsel %vm3163_vm0, %v2235_v12, %v2236_v40  ;;  %vm1985_vm4 = vcmp.eq.f32.partialorder %v8632_v6, %v6444_v44  ;;  %vm1986_vm2 = vcmp.eq.f32.partialorder %v8633_v49, %v6444_v44  ;;  %v8634_v44 = vld [vmem:[#allocation178_spill] sm:$0xff] }
 0x2ae   :  { %8631 = vst [vmem:[#allocation99_spill] sm:$0xff] %v6539_v48  ;;  %2497 = vmin.xlane.f32.xlu1 %v2496_v27  ;;  %vm3165_vm15 = vcmp.lt.s32.totalorder %v3164_v8, %v2237_v53  ;;  %vm3183_vm7 = vcmp.lt.s32.totalorder %v2239_v21, %v2240_v5  ;;  %v6548_v1 = vpop.xlane.xlu0 %1739  ;;  %v2238_v25 = vsel %vm1982_vm14, %v4741_v52, 512  ;;  %v2241_v12 = vsel %vm1985_vm4, %v4709_v3, 512 }
 0x2af   :  { %v3166_v2 = vsel %vm3165_vm15, %v3164_v8, %v2237_v53  ;;  %v3184_v40 = vsel %vm3183_vm7, %v2239_v21, %v2240_v5  ;;  %v2245_v6 = vsel %vm1989_vm6, %v4709_v3, 512  ;;  %vm1995_vm13 = vcmp.eq.f32.partialorder %v8634_v44, %v6330_v19  ;;  %v6566_v21 = vpop.xlane.xlu1 %1734  ;;  %v8636_v5 = vld [vmem:[#allocation179_spill] sm:$0xff] }
 0x2b0   :  { %3133 = vmin.xlane.f32.xlu0 %v6539_v48  ;;  %vm3167_vm9 = vcmp.lt.s32.totalorder %v3166_v2, %v2238_v25  ;;  %vm3185_vm3 = vcmp.lt.s32.totalorder %v3184_v40, %v2241_v12  ;;  %v2242_v43 = vsel %vm1986_vm2, %v4741_v52, 512  ;;  %v3204_v7 = vsel %vm3203_vm11, %v2243_v62, %v2244_v61  ;;  %v8646_v48 = vld [vmem:[#allocation27_spill] sm:$0xff] }
 0x2b1   :  { %v6562_v49 = vsel %vm3167_vm9, %v3166_v2, %v2238_v25  ;;  %v3186_v27 = vsel %vm3185_vm3, %v3184_v40, %v2241_v12  ;;  %vm1996_vm10 = vcmp.eq.f32.partialorder %v8636_v5, %v6330_v19  ;;  %vm3205_vm8 = vcmp.lt.s32.totalorder %v3204_v7, %v2245_v6  ;;  %v8642_v5 = vld [vmem:[#allocation191_spill] sm:$0xff] }
 0x2b2   :  { %8635 = vst [vmem:[#allocation100_spill] sm:$0xff] %v6562_v49  ;;  %v3170_v53 = vshra.s32 %v6562_v49, 16  ;;  %vm3187_vm5 = vcmp.lt.s32.totalorder %v3186_v27, %v2242_v43  ;;  %vm1992_vm0 = vcmp.eq.f32.partialorder %v8637_v18, %v6508_v51  ;;  %v2246_v2 = vsel %vm1990_vm12, %v4741_v52, 512  ;;  %v8644_v18 = vld [vmem:[#allocation20_spill] sm:$0xff] }
 0x2b3   :  { %v6573_v8 = vsel %vm3187_vm5, %v3186_v27, %v2242_v43  ;;  %v3206_v62 = vsel %vm3205_vm8, %v3204_v7, %v2245_v6  ;;  %v6582_v12 = vpop.xlane.xlu0 %2593  ;;  %v2247_v40 = vsel %vm1991_vm1, %v4680_v15, 512  ;;  %v2251_v43 = vsel %vm1995_vm13, %v4680_v15, 512  ;;  %v6596_v27 = vpop.xlane.xlu1 %1744 }
 0x2b4   :  { %8638 = vst [vmem:[#allocation94_spill] sm:$0xff] %v6573_v8  ;;  %v6579_v61 = vcvt.s32.f32 %v3170_v53  ;;  %v3190_v25 = vshra.s32 %v6573_v8, 16  ;;  %vm3207_vm14 = vcmp.lt.s32.totalorder %v3206_v62, %v2246_v2  ;;  %v2252_v54 = vsel %vm1996_vm10, %v4699_v22, 512  ;;  %v8643_v53 = vld [vmem:[#allocation19_spill] sm:$0xff] }
 0x2b5   :  { %v6593_v39 = vsel %vm3207_vm14, %v3206_v62, %v2246_v2  ;;  %v2248_v6 = vsel %vm1992_vm0, %v4699_v22, 512  ;;  %vm2515_vm1 = vcmp.eq.f32.partialorder %v8642_v5, %v6365_v13  ;;  %v2529_v44 = vand.u32 65535, %v8643_v53  ;;  %v8645_v2 = vld [vmem:[#allocation149_spill] sm:$0xff]  ;;  %v8653_v5 = vld [vmem:[#allocation194_spill] sm:$0xff]  ;;  %v8654_v53 = vld [vmem:[#allocation156_spill] sm:$0xff] }
 0x2b6   :  { %8639 = vst [vmem:[#allocation102_spill] sm:$0xff] %v6579_v61  ;;  %8640 = vst [vmem:[#allocation101_spill] sm:$0xff] %v6593_v39  ;;  %3173 = vmin.xlane.f32.xlu0 %v6579_v61  ;;  %v6599_v7 = vcvt.s32.f32 %v3190_v25  ;;  %v3210_v14 = vshra.s32 %v6593_v39, 16  ;;  %vm1993_vm6 = vcmp.eq.f32.partialorder %v8645_v2, %v6508_v51  ;;  %v2511_v62 = vcvt.s32.f32 %v2509_v17  ;;  %v8649_v39 = vld [vmem:[#allocation32_spill] sm:$0xff]  ;;  %v8650_v61 = vld [vmem:[#allocation202_spill] sm:$0xff] }
 0x2b7   :  { %vm1997_vm12 = vcmp.eq.f32.partialorder %v8647_v41, %v6330_v19  ;;  %vm3243_vm11 = vcmp.lt.s32.totalorder %v2251_v43, %v2252_v54  ;;  %vm3223_vm15 = vcmp.lt.s32.totalorder %v2247_v40, %v2248_v6  ;;  %v6616_v13 = vpop.xlane.xlu0 %2613  ;;  %v8651_v17 = vld [vmem:[#allocation153_spill] sm:$0xff]  ;;  %v2249_v2 = vsel %vm1993_vm6, %v4709_v3, 512 }
 0x2b8   :  { %8641 = vst [vmem:[#allocation103_spill] sm:$0xff] %v6599_v7  ;;  %3193 = vmin.xlane.f32.xlu1 %v6599_v7  ;;  %v6612_v25 = vcvt.s32.f32 %v3210_v14  ;;  %v2516_v49 = vsel %vm2515_vm1, %v2511_v62, inf  ;;  %vm1994_vm4 = vcmp.eq.f32.partialorder %v8651_v17, %v6508_v51  ;;  %vm1998_vm2 = vcmp.eq.f32.partialorder %v8652_v0, %v6330_v19  ;;  %v6624_v14 = vpop.xlane.xlu1 %1754  ;;  %v8655_v0 = vld [vmem:[#allocation14_spill] sm:$0xff]  ;;  %v8657_v19 = vld [vmem:[#allocation157_spill] sm:$0xff] }
 0x2b9   :  { %vm2535_vm7 = vcmp.eq.f32.partialorder %v8653_v5, %v6390_v47  ;;  %vm1999_vm13 = vcmp.eq.f32.partialorder %v8654_v53, %v6542_v33  ;;  %v2253_v62 = vsel %vm1997_vm12, %v4709_v3, 512  ;;  %v2531_v7 = vcvt.s32.f32 %v2529_v44  ;;  %v8659_v44 = vld [vmem:[#allocation160_spill] sm:$0xff] }
 0x2ba   :  { %8648 = vst [vmem:[#allocation104_spill] sm:$0xff] %v6612_v25  ;;  %3213 = vmin.xlane.f32.xlu0 %v6612_v25  ;;  %v3244_v8 = vsel %vm3243_vm11, %v2251_v43, %v2252_v54  ;;  %vm2003_vm9 = vcmp.eq.f32.partialorder %v8655_v0, %v6434_v4  ;;  %v8656_v25 = vld [vmem:[#allocation188_spill] sm:$0xff]  ;;  %v3224_v5 = vsel %vm3223_vm15, %v2247_v40, %v2248_v6  ;;  %v2254_v32 = vsel %vm1998_vm2, %v4741_v52, 512 }
 0x2bb   :  { %vm2004_vm3 = vcmp.eq.f32.partialorder %v8656_v25, %v6434_v4  ;;  %vm3245_vm10 = vcmp.lt.s32.totalorder %v3244_v8, %v2253_v62  ;;  %v2536_v47 = vsel %vm2535_vm7, %v2531_v7, inf  ;;  %vm3225_vm5 = vcmp.lt.s32.totalorder %v3224_v5, %v2249_v2  ;;  %v6649_v54 = vpop.xlane.xlu0 %1749 }
 0x2bc   :  { %2517 = vmin.xlane.f32.xlu1 %v2516_v49  ;;  %v3246_v58 = vsel %vm3245_vm10, %v3244_v8, %v2253_v62  ;;  %vm2000_vm8 = vcmp.eq.f32.partialorder %v8657_v19, %v6542_v33  ;;  %v2250_v41 = vsel %vm1994_vm4, %v4741_v52, 512  ;;  %v3226_v49 = vsel %vm3225_vm5, %v3224_v5, %v2249_v2  ;;  %v6647_v43 = vpop.xlane.xlu1 %1764  ;;  %v8663_v62 = vld [vmem:[#allocation17_spill] sm:$0xff]  ;;  %v8665_v5 = vld [vmem:[#allocation164_spill] sm:$0xff] }
 0x2bd   :  { %vm3247_vm0 = vcmp.lt.s32.totalorder %v3246_v58, %v2254_v32  ;;  %v2259_v40 = vsel %vm2003_vm9, %v4680_v15, 512  ;;  %v2260_v6 = vsel %vm2004_vm3, %v4699_v22, 512  ;;  %vm3227_vm14 = vcmp.lt.s32.totalorder %v3226_v49, %v2250_v41 }
 0x2be   :  { %v6653_v8 = vsel %vm3247_vm0, %v3246_v58, %v2254_v32  ;;  %vm2001_vm1 = vcmp.eq.f32.partialorder %v8659_v44, %v6542_v33  ;;  %v6659_v25 = vsel %vm3227_vm14, %v3226_v49, %v2250_v41  ;;  %v2255_v17 = vsel %vm1999_vm13, %v4680_v15, 512  ;;  %v8661_v32 = vld [vmem:[#allocation16_spill] sm:$0xff]  ;;  %v8662_v58 = vld [vmem:[#allocation190_spill] sm:$0xff] }
 0x2bf   :  { %8658 = vst [vmem:[#allocation145_spill] sm:$0xff] %v6653_v8  ;;  %v3250_v51 = vshra.s32 %v6653_v8, 16  ;;  %8660 = vst [vmem:[#allocation109_spill] sm:$0xff] %v6659_v25  ;;  %v3230_v2 = vshra.s32 %v6659_v25, 16  ;;  %vm2031_vm6 = vcmp.eq.f32.partialorder %v8661_v32, %v6647_v43  ;;  %vm2032_vm12 = vcmp.eq.f32.partialorder %v8662_v58, %v6647_v43  ;;  %v8667_v49 = vld [vmem:[#allocation26_spill] sm:$0xff]  ;;  %v8668_v32 = vld [vmem:[#allocation193_spill] sm:$0xff]  ;;  %v6692_v53 = vpop.xlane.xlu0 %2633 }
 0x2c0   :  { %2537 = vmin.xlane.f32.xlu1 %v2536_v47  ;;  %v2256_v47 = vsel %vm2000_vm8, %v4699_v22, 512  ;;  %vm2005_vm11 = vcmp.eq.f32.partialorder %v8663_v62, %v6434_v4  ;;  %vm3283_vm15 = vcmp.lt.s32.totalorder %v2259_v40, %v2260_v6  ;;  %vm2002_vm4 = vcmp.eq.f32.partialorder %v8665_v5, %v6542_v33 }
 0x2c1   :  { %v6676_v0 = vcvt.s32.f32 %v3250_v51  ;;  %v6681_v41 = vcvt.s32.f32 %v3230_v2  ;;  %vm2555_vm2 = vcmp.eq.f32.partialorder %v8667_v49, %v6476_v35  ;;  %vm2006_vm7 = vcmp.eq.f32.partialorder %v8668_v32, %v6434_v4  ;;  %v6711_v35 = vpop.xlane.xlu1 %1774  ;;  %v8676_v32 = vld [vmem:[#allocation21_spill] sm:$0xff] }
 0x2c2   :  { %v2287_v19 = vsel %vm2031_vm6, %v4680_v15, 512  ;;  %v2288_v51 = vsel %vm2032_vm12, %v4699_v22, 512  ;;  %v8669_v58 = vand.u32 65535, %v8644_v18  ;;  %v2257_v2 = vsel %vm2001_vm1, %v4709_v3, 512  ;;  %v8671_v18 = vld [vmem:[#allocation201_spill] sm:$0xff] }
 0x2c3   :  { %8664 = vst [vmem:[#allocation106_spill] sm:$0xff] %v6676_v0  ;;  %8666 = vst [vmem:[#allocation111_spill] sm:$0xff] %v6681_v41  ;;  %3253 = vmin.xlane.f32.xlu0 %v6676_v0  ;;  %vm3263_vm13 = vcmp.lt.s32.totalorder %v2255_v17, %v2256_v47  ;;  %v2261_v49 = vsel %vm2005_vm11, %v4709_v3, 512  ;;  %v3284_v7 = vsel %vm3283_vm15, %v2259_v40, %v2260_v6  ;;  %v8670_v0 = vld [vmem:[#allocation192_spill] sm:$0xff]  ;;  %v2262_v25 = vsel %vm2006_vm7, %v4741_v52, 512  ;;  %v8673_v40 = vld [vmem:[#allocation165_spill] sm:$0xff] }
 0x2c4   :  { %v2551_v62 = vcvt.s32.f32 %v8669_v58  ;;  %3233 = vmin.xlane.f32.xlu1 %v6681_v41  ;;  %vm2033_vm9 = vcmp.eq.f32.partialorder %v8670_v0, %v6647_v43  ;;  %vm2575_vm3 = vcmp.eq.f32.partialorder %v8671_v18, %v6511_v30  ;;  %vm3285_vm10 = vcmp.lt.s32.totalorder %v3284_v7, %v2261_v49  ;;  %v8674_v6 = vld [vmem:[#allocation168_spill] sm:$0xff]  ;;  %v8675_v0 = vld [vmem:[#allocation195_spill] sm:$0xff] }
 0x2c5   :  { %vm3423_vm5 = vcmp.lt.s32.totalorder %v2287_v19, %v2288_v51  ;;  %v8672_v58 = vand.u32 65535, %v8646_v48  ;;  %v3286_v41 = vsel %vm3285_vm10, %v3284_v7, %v2261_v49  ;;  %vm2007_vm8 = vcmp.eq.f32.partialorder %v8673_v40, %v6566_v21  ;;  %v8678_v30 = vld [vmem:[#allocation23_spill] sm:$0xff] }
 0x2c6   :  { %v2556_v8 = vsel %vm2555_vm2, %v2551_v62, inf  ;;  %vm2008_vm0 = vcmp.eq.f32.partialorder %v8674_v6, %v6566_v21  ;;  %vm2034_vm14 = vcmp.eq.f32.partialorder %v8675_v0, %v6647_v43  ;;  %vm3287_vm1 = vcmp.lt.s32.totalorder %v3286_v41, %v2262_v25  ;;  %v8682_v0 = vld [vmem:[#allocation172_spill] sm:$0xff] }
 0x2c7   :  { %v2571_v44 = vcvt.s32.f32 %v8672_v58  ;;  %v2289_v48 = vsel %vm2033_vm9, %v4709_v3, 512  ;;  %v6720_v18 = vsel %vm3287_vm1, %v3286_v41, %v2262_v25  ;;  %v3264_v4 = vsel %vm3263_vm13, %v2255_v17, %v2256_v47  ;;  %v6727_v58 = vpop.xlane.xlu0 %2653 }
 0x2c8   :  { %2557 = vmin.xlane.f32.xlu1 %v2556_v8  ;;  %v3290_v7 = vshra.s32 %v6720_v18, 16  ;;  %vm2039_vm6 = vcmp.eq.f32.partialorder %v8676_v32, %v6711_v35  ;;  %vm3265_vm12 = vcmp.lt.s32.totalorder %v3264_v4, %v2257_v2  ;;  %v3424_v49 = vsel %vm3423_vm5, %v2287_v19, %v2288_v51  ;;  %8677 = vst [vmem:[#allocation112_spill] sm:$0xff] %v6727_v58  ;;  %v8684_v32 = vld [vmem:[#allocation22_spill] sm:$0xff] }
 0x2c9   :  { %v2576_v62 = vsel %vm2575_vm3, %v2571_v44, inf  ;;  %vm2040_vm11 = vcmp.eq.f32.partialorder %v8678_v30, %v6711_v35  ;;  %v2258_v8 = vsel %vm2002_vm4, %v4741_v52, 512  ;;  %v3266_v25 = vsel %vm3265_vm12, %v3264_v4, %v2257_v2  ;;  %v8679_v30 = vld [vmem:[#allocation169_spill] sm:$0xff]  ;;  %v6755_v44 = vpop.xlane.xlu1 %1784 }
 0x2ca   :  { %vm3425_vm15 = vcmp.lt.s32.totalorder %v3424_v49, %v2289_v48  ;;  %v6735_v17 = vcvt.s32.f32 %v3290_v7  ;;  %vm3267_vm2 = vcmp.lt.s32.totalorder %v3266_v25, %v2258_v8  ;;  %v2290_v47 = vsel %vm2034_vm14, %v4741_v52, 512  ;;  %v8683_v7 = vld [vmem:[#allocation24_spill] sm:$0xff] }
 0x2cb   :  { %v3426_v41 = vsel %vm3425_vm15, %v3424_v49, %v2289_v48  ;;  %vm2009_vm7 = vcmp.eq.f32.partialorder %v8679_v30, %v6566_v21  ;;  %v6744_v51 = vsel %vm3267_vm2, %v3266_v25, %v2258_v8  ;;  %v2295_v33 = vsel %vm2039_vm6, %v4680_v15, 512  ;;  %v8686_v8 = vld [vmem:[#allocation37_spill] sm:$0xff]  ;;  %v6776_v40 = vpop.xlane.xlu0 %1759 }
 0x2cc   :  { %2577 = vmin.xlane.f32.xlu1 %v2576_v62  ;;  %8680 = vst [vmem:[#allocation113_spill] sm:$0xff] %v6744_v51  ;;  %vm3427_vm4 = vcmp.lt.s32.totalorder %v3426_v41, %v2290_v47  ;;  %3293 = vmin.xlane.f32.xlu0 %v6735_v17  ;;  %v2296_v43 = vsel %vm2040_vm11, %v4699_v22, 512  ;;  %v3270_v5 = vshra.s32 %v6744_v51, 16  ;;  %vm2010_vm13 = vcmp.eq.f32.partialorder %v8682_v0, %v6566_v21 }
 0x2cd   :  { %v6753_v2 = vsel %vm3427_vm4, %v3426_v41, %v2290_v47  ;;  %v2263_v48 = vsel %vm2007_vm8, %v4680_v15, 512  ;;  %v2264_v62 = vsel %vm2008_vm0, %v4699_v22, 512  ;;  %vm2011_vm9 = vcmp.eq.f32.partialorder %v8683_v7, %v6548_v1  ;;  %v8689_v41 = vld [vmem:[#allocation198_spill] sm:$0xff]  ;;  %v8690_v7 = vld [vmem:[#allocation196_spill] sm:$0xff] }
 0x2ce   :  { %8681 = vst [vmem:[#allocation115_spill] sm:$0xff] %v6753_v2  ;;  %v3430_v4 = vshra.s32 %v6753_v2, 16  ;;  %vm2041_vm3 = vcmp.eq.f32.partialorder %v8684_v32, %v6711_v35  ;;  %v6772_v49 = vcvt.s32.f32 %v3270_v5  ;;  %vm2595_vm10 = vcmp.eq.f32.partialorder %v8686_v8, %v6582_v12 }
 0x2cf   :  { %vm3463_vm5 = vcmp.lt.s32.totalorder %v2295_v33, %v2296_v43  ;;  %v8688_v6 = vand.u32 65535, %v8649_v39  ;;  %vm2047_vm8 = vcmp.eq.f32.partialorder %v8689_v41, %v6755_v44  ;;  %v2265_v5 = vsel %vm2009_vm7, %v4709_v3, 512  ;;  %v8692_v39 = vld [vmem:[#allocation25_spill] sm:$0xff] }
 0x2d0   :  { %8685 = vst [vmem:[#allocation116_spill] sm:$0xff] %v6772_v49  ;;  %v6778_v25 = vcvt.s32.f32 %v3430_v4  ;;  %vm3303_vm0 = vcmp.lt.s32.totalorder %v2263_v48, %v2264_v62  ;;  %vm2012_vm14 = vcmp.eq.f32.partialorder %v8690_v7, %v6548_v1  ;;  %3273 = vmin.xlane.f32.xlu1 %v6772_v49  ;;  %v8691_v4 = vld [vmem:[#allocation199_spill] sm:$0xff]  ;;  %vm2013_vm6 = vcmp.eq.f32.partialorder %v8692_v39, %v6548_v1  ;;  %v8699_v7 = vld [vmem:[#allocation200_spill] sm:$0xff]  ;;  %v8705_v39 = vld [vmem:[#allocation34_spill] sm:$0xff] }
 0x2d1   :  { %v2591_v47 = vcvt.s32.f32 %v8688_v6  ;;  %vm2048_vm1 = vcmp.eq.f32.partialorder %v8691_v4, %v6755_v44  ;;  %v2267_v8 = vsel %vm2011_vm9, %v4680_v15, 512  ;;  %v8693_v6 = vld [vmem:[#allocation197_spill] sm:$0xff]  ;;  %v2297_v41 = vsel %vm2041_vm3, %v4709_v3, 512  ;;  %v8694_v4 = vld [vmem:[#allocation43_spill] sm:$0xff] }
 0x2d2   :  { %8687 = vst [vmem:[#allocation152_spill] sm:$0xff] %v6778_v25  ;;  %vm2042_vm12 = vcmp.eq.f32.partialorder %v8693_v6, %v6711_v35  ;;  %3433 = vmin.xlane.f32.xlu0 %v6778_v25  ;;  %v2303_v19 = vsel %vm2047_vm8, %v4680_v15, 512  ;;  %vm2615_vm11 = vcmp.eq.f32.partialorder %v8694_v4, %v6616_v13  ;;  %v3464_v49 = vsel %vm3463_vm5, %v2295_v33, %v2296_v43  ;;  %v6816_v4 = vpop.xlane.xlu0 %2673 }
 0x2d3   :  { %v2596_v30 = vsel %vm2595_vm10, %v2591_v47, inf  ;;  %v2304_v51 = vsel %vm2048_vm1, %v4699_v22, 512  ;;  %v8695_v2 = vand.u32 65535, %v8650_v61  ;;  %vm3465_vm15 = vcmp.lt.s32.totalorder %v3464_v49, %v2297_v41 }
 0x2d4   :  { %v3304_v47 = vsel %vm3303_vm0, %v2263_v48, %v2264_v62  ;;  %v2268_v35 = vsel %vm2012_vm14, %v4699_v22, 512  ;;  %2597 = vmin.xlane.f32.xlu1 %v2596_v30  ;;  %v2298_v32 = vsel %vm2042_vm12, %v4741_v52, 512  ;;  %v3466_v25 = vsel %vm3465_vm15, %v3464_v49, %v2297_v41  ;;  %v6826_v62 = vpop.xlane.xlu1 %1794  ;;  %v8698_v49 = vld [vmem:[#allocation175_spill] sm:$0xff] }
 0x2d5   :  { %v2611_v6 = vcvt.s32.f32 %v8695_v2  ;;  %vm3305_vm2 = vcmp.lt.s32.totalorder %v3304_v47, %v2265_v5  ;;  %vm3467_vm7 = vcmp.lt.s32.totalorder %v3466_v25, %v2298_v32  ;;  %v2266_v61 = vsel %vm2010_vm13, %v4741_v52, 512  ;;  %v8696_v2 = vld [vmem:[#allocation29_spill] sm:$0xff] }
 0x2d6   :  { %v3306_v43 = vsel %vm3305_vm2, %v3304_v47, %v2265_v5  ;;  %vm2049_vm4 = vcmp.eq.f32.partialorder %v8696_v2, %v6755_v44  ;;  %vm3503_vm9 = vcmp.lt.s32.totalorder %v2303_v19, %v2304_v51  ;;  %v6824_v48 = vsel %vm3467_vm7, %v3466_v25, %v2298_v32  ;;  %v8701_v25 = vld [vmem:[#allocation31_spill] sm:$0xff]  ;;  %v8703_v47 = vld [vmem:[#allocation33_spill] sm:$0xff] }
 0x2d7   :  { %v2616_v33 = vsel %vm2615_vm11, %v2611_v6, inf  ;;  %8697 = vst [vmem:[#allocation154_spill] sm:$0xff] %v6824_v48  ;;  %vm3307_vm3 = vcmp.lt.s32.totalorder %v3306_v43, %v2266_v61  ;;  %vm2015_vm10 = vcmp.eq.f32.partialorder %v8698_v49, %v6596_v27  ;;  %vm2014_vm5 = vcmp.eq.f32.partialorder %v8699_v7, %v6548_v1 }
 0x2d8   :  { %v3470_v30 = vshra.s32 %v6824_v48, 16  ;;  %v6833_v21 = vsel %vm3307_vm3, %v3306_v43, %v2266_v61  ;;  %v2269_v0 = vsel %vm2013_vm6, %v4709_v3, 512  ;;  %vm3323_vm13 = vcmp.lt.s32.totalorder %v2267_v8, %v2268_v35  ;;  %2617 = vmin.xlane.f32.xlu1 %v2616_v33 }
 0x2d9   :  { %8700 = vst [vmem:[#allocation114_spill] sm:$0xff] %v6833_v21  ;;  %vm2050_vm8 = vcmp.eq.f32.partialorder %v8701_v25, %v6755_v44  ;;  %v3310_v5 = vshra.s32 %v6833_v21, 16  ;;  %v2305_v41 = vsel %vm2049_vm4, %v4709_v3, 512  ;;  %vm2055_vm0 = vcmp.eq.f32.partialorder %v8703_v47, %v6826_v62  ;;  %v6854_v44 = vpop.xlane.xlu0 %2693  ;;  %v8708_v25 = vld [vmem:[#allocation177_spill] sm:$0xff]  ;;  %v8713_v47 = vld [vmem:[#allocation79_spill] sm:$0xff] }
 0x2da   :  { %v6843_v6 = vcvt.s32.f32 %v3470_v30  ;;  %v3504_v32 = vsel %vm3503_vm9, %v2303_v19, %v2304_v51  ;;  %vm2056_vm14 = vcmp.eq.f32.partialorder %v8705_v39, %v6826_v62  ;;  %vm2635_vm1 = vcmp.eq.f32.partialorder %v5624_v46, %v6692_v53  ;;  %v8707_v51 = vld [vmem:[#allocation176_spill] sm:$0xff]  ;;  %v6866_v46 = vpop.xlane.xlu1 %2813  ;;  %v8721_v39 = vld [vmem:[#allocation185_spill] sm:$0xff] }
 0x2db   :  { %v6848_v61 = vcvt.s32.f32 %v3310_v5  ;;  %vm3505_vm6 = vcmp.lt.s32.totalorder %v3504_v32, %v2305_v41  ;;  %v8706_v33 = vand.u32 65535, %v5599_v56  ;;  %v2306_v2 = vsel %vm2050_vm8, %v4741_v52, 512  ;;  %8709 = vst [vmem:[#allocation128_spill] sm:$0xff] %v6866_v46  ;;  %v8726_v21 = vld [vmem:[#allocation45_spill] sm:$0xff] }
 0x2dc   :  { %8702 = vst [vmem:[#allocation158_spill] sm:$0xff] %v6843_v6  ;;  %3473 = vmin.xlane.f32.xlu0 %v6843_v6  ;;  %v3506_v30 = vsel %vm3505_vm6, %v3504_v32, %v2305_v41  ;;  %v3324_v19 = vsel %vm3323_vm13, %v2267_v8, %v2268_v35  ;;  %vm2016_vm12 = vcmp.eq.f32.partialorder %v8707_v51, %v6596_v27  ;;  %v2270_v8 = vsel %vm2014_vm5, %v4741_v52, 512  ;;  %v8716_v51 = vld [vmem:[#allocation28_spill] sm:$0xff] }
 0x2dd   :  { %8704 = vst [vmem:[#allocation161_spill] sm:$0xff] %v6848_v61  ;;  %v2631_v43 = vcvt.s32.f32 %v8706_v33  ;;  %vm2017_vm11 = vcmp.eq.f32.partialorder %v8708_v25, %v6596_v27  ;;  %3313 = vmin.xlane.f32.xlu1 %v6848_v61  ;;  %vm3507_vm15 = vcmp.lt.s32.totalorder %v3506_v30, %v2306_v2  ;;  %vm3325_vm2 = vcmp.lt.s32.totalorder %v3324_v19, %v2269_v0  ;;  %v8720_v25 = vld [vmem:[#allocation42_spill] sm:$0xff] }
 0x2de   :  { %v6868_v56 = vsel %vm3507_vm15, %v3506_v30, %v2306_v2  ;;  %v3326_v35 = vsel %vm3325_vm2, %v3324_v19, %v2269_v0  ;;  %v2311_v41 = vsel %vm2055_vm0, %v4680_v15, 512  ;;  %v2312_v32 = vsel %vm2056_vm14, %v4699_v22, 512  ;;  %v8711_v2 = vld [vmem:[#allocation77_spill] sm:$0xff] }
 0x2df   :  { %v2636_v5 = vsel %vm2635_vm1, %v2631_v43, inf  ;;  %8710 = vst [vmem:[#allocation129_spill] sm:$0xff] %v6868_v56  ;;  %v3510_v33 = vshra.s32 %v6868_v56, 16  ;;  %vm3327_vm7 = vcmp.lt.s32.totalorder %v3326_v35, %v2270_v8  ;;  %v6883_v43 = vpop.xlane.xlu0 %1769  ;;  %v2271_v1 = vsel %vm2015_vm10, %v4680_v15, 512  ;;  %v8714_v19 = vld [vmem:[#allocation181_spill] sm:$0xff] }
 0x2e0   :  { %v2272_v7 = vsel %vm2016_vm12, %v4699_v22, 512  ;;  %v6894_v0 = vsel %vm3327_vm7, %v3326_v35, %v2270_v8  ;;  %vm2018_vm4 = vcmp.eq.f32.partialorder %v8714_v19, %v6596_v27  ;;  %v2273_v49 = vsel %vm2017_vm11, %v4709_v3, 512  ;;  %v8717_v8 = vld [vmem:[#allocation39_spill] sm:$0xff]  ;;  %v8718_v35 = vld [vmem:[#allocation184_spill] sm:$0xff] }
 0x2e1   :  { %8712 = vst [vmem:[#allocation117_spill] sm:$0xff] %v6894_v0  ;;  %2637 = vmin.xlane.f32.xlu1 %v2636_v5  ;;  %v6899_v56 = vcvt.s32.f32 %v3510_v33  ;;  %v3330_v30 = vshra.s32 %v6894_v0, 16  ;;  %vm2019_vm9 = vcmp.eq.f32.partialorder %v8716_v51, %v6649_v54  ;;  %vm2057_vm3 = vcmp.eq.f32.partialorder %v8717_v8, %v6826_v62  ;;  %v6915_v33 = vpop.xlane.xlu1 %1804  ;;  %v8722_v51 = vld [vmem:[#allocation30_spill] sm:$0xff]  ;;  %v8723_v8 = vld [vmem:[#allocation205_spill] sm:$0xff] }
 0x2e2   :  { %vm3543_vm10 = vcmp.lt.s32.totalorder %v2311_v41, %v2312_v32  ;;  %vm3343_vm5 = vcmp.lt.s32.totalorder %v2271_v1, %v2272_v7  ;;  %vm2023_vm13 = vcmp.eq.f32.partialorder %v8718_v35, %v6624_v14  ;;  %vm2815_vm8 = vcmp.eq.f32.partialorder %v8720_v25, %v6866_v46  ;;  %v8725_v25 = vld [vmem:[#allocation40_spill] sm:$0xff] }
 0x2e3   :  { %8715 = vst [vmem:[#allocation119_spill] sm:$0xff] %v6899_v56  ;;  %3513 = vmin.xlane.f32.xlu0 %v6899_v56  ;;  %v6913_v5 = vcvt.s32.f32 %v3330_v30  ;;  %vm2024_vm0 = vcmp.eq.f32.partialorder %v8721_v39, %v6624_v14  ;;  %vm2020_vm14 = vcmp.eq.f32.partialorder %v8722_v51, %v6649_v54  ;;  %vm2058_vm1 = vcmp.eq.f32.partialorder %v8723_v8, %v6826_v62  ;;  %v8731_v51 = vld [vmem:[#allocation46_spill] sm:$0xff]  ;;  %v8736_v35 = vld [vmem:[#allocation204_spill] sm:$0xff] }
 0x2e4   :  { %v8724_v0 = vand.u32 65535, %v5667_v50  ;;  %v2275_v30 = vsel %vm2019_vm9, %v4680_v15, 512  ;;  %v2313_v56 = vsel %vm2057_vm3, %v4709_v3, 512  ;;  %vm2655_vm6 = vcmp.eq.f32.partialorder %v8725_v25, %v6727_v58  ;;  %v6932_v6 = vpop.xlane.xlu0 %2713 }
 0x2e5   :  { %8719 = vst [vmem:[#allocation120_spill] sm:$0xff] %v6913_v5  ;;  %3333 = vmin.xlane.f32.xlu1 %v6913_v5  ;;  %v3544_v46 = vsel %vm3543_vm10, %v2311_v41, %v2312_v32  ;;  %vm2063_vm12 = vcmp.eq.f32.partialorder %v8726_v21, %v6915_v33  ;;  %v8727_v62 = vand.u32 65535, %v5653_v59  ;;  %v2314_v8 = vsel %vm2058_vm1, %v4741_v52, 512  ;;  %v8729_v59 = vld [vmem:[#allocation35_spill] sm:$0xff]  ;;  %v6970_v19 = vpop.xlane.xlu1 %2853 }
 0x2e6   :  { %v2811_v61 = vcvt.s32.f32 %v8724_v0  ;;  %vm3545_vm11 = vcmp.lt.s32.totalorder %v3544_v46, %v2313_v56  ;;  %v8728_v0 = vld [vmem:[#allocation47_spill] sm:$0xff]  ;;  %v3344_v25 = vsel %vm3343_vm5, %v2271_v1, %v2272_v7  ;;  %v2276_v41 = vsel %vm2020_vm14, %v4699_v22, 512  ;;  %8732 = vst [vmem:[#allocation121_spill] sm:$0xff] %v6970_v19 }
 0x2e7   :  { %v2651_v50 = vcvt.s32.f32 %v8727_v62  ;;  %vm2064_vm15 = vcmp.eq.f32.partialorder %v8728_v0, %v6915_v33  ;;  %v3546_v5 = vsel %vm3545_vm11, %v3544_v46, %v2313_v56  ;;  %vm3345_vm7 = vcmp.lt.s32.totalorder %v3344_v25, %v2273_v49 }
 0x2e8   :  { %v2816_v48 = vsel %vm2815_vm8, %v2811_v61, inf  ;;  %vm3547_vm2 = vcmp.lt.s32.totalorder %v3546_v5, %v2314_v8  ;;  %vm2021_vm9 = vcmp.eq.f32.partialorder %v8729_v59, %v6649_v54  ;;  %v3346_v46 = vsel %vm3345_vm7, %v3344_v25, %v2273_v49  ;;  %v6954_v56 = vpop.xlane.xlu0 %2733  ;;  %v8740_v59 = vld [vmem:[#allocation71_spill] sm:$0xff] }
 0x2e9   :  { %2817 = vmin.xlane.f32.xlu0 %v2816_v48  ;;  %v2656_v32 = vsel %vm2655_vm6, %v2651_v50, inf  ;;  %v6948_v61 = vsel %vm3547_vm2, %v3546_v5, %v2314_v8  ;;  %v2274_v48 = vsel %vm2018_vm4, %v4741_v52, 512  ;;  %v2319_v1 = vsel %vm2063_vm12, %v4680_v15, 512  ;;  %v8734_v50 = vld [vmem:[#allocation38_spill] sm:$0xff] }
 0x2ea   :  { %2657 = vmin.xlane.f32.xlu1 %v2656_v32  ;;  %8730 = vst [vmem:[#allocation118_spill] sm:$0xff] %v6948_v61  ;;  %v2320_v7 = vsel %vm2064_vm15, %v4699_v22, 512  ;;  %v3550_v5 = vshra.s32 %v6948_v61, 16  ;;  %vm3347_vm3 = vcmp.lt.s32.totalorder %v3346_v46, %v2274_v48  ;;  %v2279_v27 = vsel %vm2023_vm13, %v4680_v15, 512  ;;  %v8737_v32 = vld [vmem:[#allocation41_spill] sm:$0xff] }
 0x2eb   :  { %vm3363_vm4 = vcmp.lt.s32.totalorder %v2275_v30, %v2276_v41  ;;  %v6972_v21 = vsel %vm3347_vm3, %v3346_v46, %v2274_v48  ;;  %v2280_v49 = vsel %vm2024_vm0, %v4699_v22, 512  ;;  %vm2065_vm10 = vcmp.eq.f32.partialorder %v8734_v50, %v6915_v33  ;;  %v8738_v48 = vld [vmem:[#allocation203_spill] sm:$0xff] }
 0x2ec   :  { %8733 = vst [vmem:[#allocation123_spill] sm:$0xff] %v6972_v21  ;;  %v6980_v0 = vcvt.s32.f32 %v3550_v5  ;;  %v3350_v8 = vshra.s32 %v6972_v21, 16  ;;  %vm2022_vm5 = vcmp.eq.f32.partialorder %v8736_v35, %v6649_v54  ;;  %v2277_v25 = vsel %vm2021_vm9, %v4709_v3, 512  ;;  %v6991_v39 = vpop.xlane.xlu0 %1779  ;;  %v8739_v5 = vld [vmem:[#allocation55_spill] sm:$0xff] }
 0x2ed   :  { %vm2027_vm13 = vcmp.eq.f32.partialorder %v8737_v32, %v6776_v40  ;;  %vm3583_vm8 = vcmp.lt.s32.totalorder %v2319_v1, %v2320_v7  ;;  %vm2028_vm0 = vcmp.eq.f32.partialorder %v8738_v48, %v6776_v40  ;;  %vm2855_vm14 = vcmp.eq.f32.partialorder %v8739_v5, %v6970_v19  ;;  %v8750_v48 = vld [vmem:[#allocation69_spill] sm:$0xff] }
 0x2ee   :  { %8735 = vst [vmem:[#allocation131_spill] sm:$0xff] %v6980_v0  ;;  %3553 = vmin.xlane.f32.xlu0 %v6980_v0  ;;  %v6996_v46 = vcvt.s32.f32 %v3350_v8  ;;  %v3364_v50 = vsel %vm3363_vm4, %v2275_v30, %v2276_v41  ;;  %vm2066_vm1 = vcmp.eq.f32.partialorder %v8740_v59, %v6915_v33  ;;  %v2321_v62 = vsel %vm2065_vm10, %v4709_v3, 512  ;;  %v8742_v0 = vld [vmem:[#allocation53_spill] sm:$0xff] }
 0x2ef   :  { %v8741_v58 = vand.u32 65535, %v8713_v47  ;;  %vm3365_vm6 = vcmp.lt.s32.totalorder %v3364_v50, %v2277_v25  ;;  %vm2675_vm12 = vcmp.eq.f32.partialorder %v8742_v0, %v6816_v4  ;;  %v2278_v8 = vsel %vm2022_vm5, %v4741_v52, 512  ;;  %v8749_v59 = vld [vmem:[#allocation49_spill] sm:$0xff] }
 0x2f0   :  { %3353 = vmin.xlane.f32.xlu1 %v6996_v46  ;;  %v3366_v30 = vsel %vm3365_vm6, %v3364_v50, %v2277_v25  ;;  %v3584_v41 = vsel %vm3583_vm8, %v2319_v1, %v2320_v7  ;;  %v8743_v5 = vand.u32 65535, %v8711_v2  ;;  %v2322_v54 = vsel %vm2066_vm1, %v4741_v52, 512  ;;  %v7025_v1 = vpop.xlane.xlu1 %2893  ;;  %v8748_v50 = vld [vmem:[#allocation189_spill] sm:$0xff] }
 0x2f1   :  { %v2851_v21 = vcvt.s32.f32 %v8741_v58  ;;  %vm3367_vm11 = vcmp.lt.s32.totalorder %v3366_v30, %v2278_v8  ;;  %vm3585_vm15 = vcmp.lt.s32.totalorder %v3584_v41, %v2321_v62  ;;  %v8744_v58 = vld [vmem:[#allocation187_spill] sm:$0xff]  ;;  %v7023_v35 = vpop.xlane.xlu0 %2753  ;;  %vm3383_vm7 = vcmp.lt.s32.totalorder %v2279_v27, %v2280_v49  ;;  %8746 = vst [vmem:[#allocation122_spill] sm:$0xff] %v7025_v1 }
 0x2f2   :  { %v2671_v19 = vcvt.s32.f32 %v8743_v5  ;;  %vm2025_vm2 = vcmp.eq.f32.partialorder %v8744_v58, %v6624_v14  ;;  %v7017_v47 = vsel %vm3367_vm11, %v3366_v30, %v2278_v8  ;;  %v3586_v0 = vsel %vm3585_vm15, %v3584_v41, %v2321_v62  ;;  %8745 = vst [vmem:[#allocation132_spill] sm:$0xff] %v7023_v35  ;;  %v8752_v5 = vld [vmem:[#allocation206_spill] sm:$0xff] }
 0x2f3   :  { %v2856_v61 = vsel %vm2855_vm14, %v2851_v21, inf  ;;  %v3370_v7 = vshra.s32 %v7017_v47, 16  ;;  %vm3587_vm9 = vcmp.lt.s32.totalorder %v3586_v0, %v2322_v54  ;;  %v8747_v21 = vld [vmem:[#allocation87_spill] sm:$0xff]  ;;  %v2284_v33 = vsel %vm2028_vm0, %v4699_v22, 512 }
 0x2f4   :  { %2857 = vmin.xlane.f32.xlu0 %v2856_v61  ;;  %v2676_v2 = vsel %vm2675_vm12, %v2671_v19, inf  ;;  %v2889_v25 = vand.u32 65535, %v8747_v21  ;;  %v2283_v61 = vsel %vm2027_vm13, %v4680_v15, 512  ;;  %v7037_v62 = vsel %vm3587_vm9, %v3586_v0, %v2322_v54  ;;  %v7060_v0 = vpop.xlane.xlu1 %2933 }
 0x2f5   :  { %2677 = vmin.xlane.f32.xlu1 %v2676_v2  ;;  %v2929_v19 = vand.u32 65535, %v5958_v24  ;;  %vm2026_vm3 = vcmp.eq.f32.partialorder %v8748_v50, %v6624_v14  ;;  %vm2035_vm4 = vcmp.eq.f32.partialorder %v8749_v59, %v6883_v43  ;;  %v3590_v8 = vshra.s32 %v7037_v62, 16  ;;  %v7054_v41 = vpop.xlane.xlu0 %2773  ;;  %8753 = vst [vmem:[#allocation167_spill] sm:$0xff] %v7060_v0  ;;  %v8754_v2 = vld [vmem:[#allocation48_spill] sm:$0xff] }
 0x2f6   :  { %v2281_v32 = vsel %vm2025_vm2, %v4709_v3, 512  ;;  %vm2036_vm10 = vcmp.eq.f32.partialorder %v8750_v48, %v6883_v43  ;;  %v7051_v30 = vcvt.s32.f32 %v3370_v7  ;;  %v3384_v24 = vsel %vm3383_vm7, %v2279_v27, %v2280_v49  ;;  %8751 = vst [vmem:[#allocation124_spill] sm:$0xff] %v7054_v41  ;;  %v8756_v14 = vld [vmem:[#allocation36_spill] sm:$0xff] }
 0x2f7   :  { %vm2029_vm5 = vcmp.eq.f32.partialorder %v8752_v5, %v6776_v40  ;;  %vm3403_vm13 = vcmp.lt.s32.totalorder %v2283_v61, %v2284_v33  ;;  %v7058_v54 = vcvt.s32.f32 %v3590_v8  ;;  %vm3385_vm8 = vcmp.lt.s32.totalorder %v3384_v24, %v2281_v32  ;;  %v8759_v5 = vld [vmem:[#allocation74_spill] sm:$0xff] }
 0x2f8   :  { %v2291_v58 = vsel %vm2035_vm4, %v4680_v15, 512  ;;  %vm2695_vm0 = vcmp.eq.f32.partialorder %v8754_v2, %v6854_v44  ;;  %v2282_v27 = vsel %vm2026_vm3, %v4741_v52, 512  ;;  %v3386_v49 = vsel %vm3385_vm8, %v3384_v24, %v2281_v32 }
 0x2f9   :  { %3373 = vmin.xlane.f32.xlu1 %v7051_v30  ;;  %v2292_v7 = vsel %vm2036_vm10, %v4699_v22, 512  ;;  %3593 = vmin.xlane.f32.xlu0 %v7058_v54  ;;  %v8755_v21 = vand.u32 65535, %v8731_v51  ;;  %vm2895_vm14 = vcmp.eq.f32.partialorder %v5880_v16, %v7025_v1  ;;  %vm3387_vm1 = vcmp.lt.s32.totalorder %v3386_v49, %v2282_v27 }
 0x2fa   :  { %v2989_v8 = vand.u32 65535, %v6072_v36  ;;  %v2891_v48 = vcvt.s32.f32 %v2889_v25  ;;  %v7077_v2 = vsel %vm3387_vm1, %v3386_v49, %v2282_v27  ;;  %vm2935_vm6 = vcmp.eq.f32.partialorder %v5981_v55, %v7060_v0  ;;  %v8757_v49 = vld [vmem:[#allocation72_spill] sm:$0xff]  ;;  %v8808_v0 = vld [vmem:[#allocation61_spill] sm:$0xff] }
 0x2fb   :  { %v2691_v59 = vcvt.s32.f32 %v8755_v21  ;;  %vm2030_vm12 = vcmp.eq.f32.partialorder %v8756_v14, %v6776_v40  ;;  %v3390_v32 = vshra.s32 %v7077_v2, 16  ;;  %v2931_v51 = vcvt.s32.f32 %v2929_v19  ;;  %v7094_v19 = vpop.xlane.xlu1 %2993 }
 0x2fc   :  { %v7084_v24 = vpop.xlane.xlu0 %1789  ;;  %v2285_v16 = vsel %vm2029_vm5, %v4709_v3, 512  ;;  %vm3443_vm11 = vcmp.lt.s32.totalorder %v2291_v58, %v2292_v7  ;;  %v2896_v36 = vsel %vm2895_vm14, %v2891_v48, inf  ;;  %v3404_v25 = vsel %vm3403_vm13, %v2283_v61, %v2284_v33  ;;  %8758 = vst [vmem:[#allocation125_spill] sm:$0xff] %v7094_v19  ;;  %v8761_v48 = vld [vmem:[#allocation59_spill] sm:$0xff] }
 0x2fd   :  { %v2696_v50 = vsel %vm2695_vm0, %v2691_v59, inf  ;;  %v2709_v55 = vand.u32 65535, %v5900_v57  ;;  %2897 = vmin.xlane.f32.xlu0 %v2896_v36  ;;  %v2936_v27 = vsel %vm2935_vm6, %v2931_v51, inf  ;;  %vm2043_vm15 = vcmp.eq.f32.partialorder %v8757_v49, %v6991_v39  ;;  %v8760_v57 = vld [vmem:[#allocation51_spill] sm:$0xff] }
 0x2fe   :  { %2697 = vmin.xlane.f32.xlu1 %v2696_v50  ;;  %vm3405_vm2 = vcmp.lt.s32.totalorder %v3404_v25, %v2285_v16  ;;  %v7096_v21 = vcvt.s32.f32 %v3390_v32  ;;  %vm2044_vm7 = vcmp.eq.f32.partialorder %v8759_v5, %v6991_v39  ;;  %v2286_v61 = vsel %vm2030_vm12, %v4741_v52, 512 }
 0x2ff   :  { %v3406_v33 = vsel %vm3405_vm2, %v3404_v25, %v2285_v16  ;;  %vm2037_vm9 = vcmp.eq.f32.partialorder %v8760_v57, %v6883_v43  ;;  %v3444_v59 = vsel %vm3443_vm11, %v2291_v58, %v2292_v7  ;;  %vm2715_vm4 = vcmp.eq.f32.partialorder %v8761_v48, %v6932_v6  ;;  %v7124_v25 = vpop.xlane.xlu1 %2337 }
 0x300   :  { %vm3407_vm3 = vcmp.lt.s32.totalorder %v3406_v33, %v2286_v61  ;;  %v2991_v32 = vcvt.s32.f32 %v2989_v8  ;;  %vm2995_vm10 = vcmp.eq.f32.partialorder %v6098_v10, %v7094_v19  ;;  %v2299_v40 = vsel %vm2043_vm15, %v4680_v15, 512  ;;  %v7118_v14 = vpop.xlane.xlu0 %2793  ;;  %v8763_v10 = vld [vmem:[#allocation44_spill] sm:$0xff]  ;;  %v8805_v19 = vld [vmem:[#allocation75_spill] sm:$0xff] }
 0x301   :  { %v7109_v50 = vsel %vm3407_vm3, %v3406_v33, %v2286_v61  ;;  %2937 = vmin.xlane.f32.xlu0 %v2936_v27  ;;  %v2300_v58 = vsel %vm2044_vm7, %v4699_v22, 512  ;;  %v2711_v7 = vcvt.s32.f32 %v2709_v55  ;;  %8762 = vst [vmem:[#allocation126_spill] sm:$0xff] %v7118_v14  ;;  %v2293_v51 = vsel %vm2037_vm9, %v4709_v3, 512  ;;  %v8764_v27 = vld [vmem:[#allocation56_spill] sm:$0xff]  ;;  %v8767_v61 = vld [vmem:[#allocation82_spill] sm:$0xff]  ;;  %v8768_v33 = vld [vmem:[#allocation85_spill] sm:$0xff] }
 0x302   :  { %3393 = vmin.xlane.f32.xlu1 %v7096_v21  ;;  %v3410_v16 = vshra.s32 %v7109_v50, 16  ;;  %v2996_v36 = vsel %vm2995_vm10, %v2991_v32, inf  ;;  %vm3445_vm5 = vcmp.lt.s32.totalorder %v3444_v59, %v2293_v51  ;;  %vm2038_vm13 = vcmp.eq.f32.partialorder %v8763_v10, %v6883_v43  ;;  %v8765_v55 = vld [vmem:[#allocation60_spill] sm:$0xff] }
 0x303   :  { %v2716_v8 = vsel %vm2715_vm4, %v2711_v7, inf  ;;  %vm3483_vm8 = vcmp.lt.s32.totalorder %v2299_v40, %v2300_v58  ;;  %vm2045_vm0 = vcmp.eq.f32.partialorder %v8764_v27, %v6991_v39  ;;  %v2729_v49 = vand.u32 65535, %v8765_v55  ;;  %v8769_v7 = vld [vmem:[#allocation90_spill] sm:$0xff] }
 0x304   :  { %v7129_v5 = vcvt.s32.f32 %v3410_v16  ;;  %vm2051_vm14 = vcmp.eq.f32.partialorder %v8767_v61, %v7084_v24  ;;  %vm2052_vm1 = vcmp.eq.f32.partialorder %v8768_v33, %v7084_v24  ;;  %v3446_v57 = vsel %vm3445_vm5, %v3444_v59, %v2293_v51  ;;  %v7136_v32 = vpop.xlane.xlu0 %1799  ;;  %v7142_v16 = vpop.xlane.xlu1 %2357  ;;  %v8771_v27 = vld [vmem:[#allocation50_spill] sm:$0xff]  ;;  %v8773_v33 = vld [vmem:[#allocation57_spill] sm:$0xff] }
 0x305   :  { %2997 = vmin.xlane.f32.xlu0 %v2996_v36  ;;  %v2294_v43 = vsel %vm2038_vm13, %v4741_v52, 512  ;;  %v3484_v48 = vsel %vm3483_vm8, %v2299_v40, %v2300_v58  ;;  %vm2735_vm6 = vcmp.eq.f32.partialorder %v8769_v7, %v6954_v56  ;;  %v2731_v36 = vcvt.s32.f32 %v2729_v49 }
 0x306   :  { %2717 = vmin.xlane.f32.xlu1 %v2716_v8  ;;  %8766 = vst [vmem:[#allocation127_spill] sm:$0xff] %v7129_v5  ;;  %v2301_v8 = vsel %vm2045_vm0, %v4709_v3, 512  ;;  %vm3447_vm12 = vcmp.lt.s32.totalorder %v3446_v57, %v2294_v43  ;;  %v2307_v10 = vsel %vm2051_vm14, %v4680_v15, 512  ;;  %v2308_v59 = vsel %vm2052_vm1, %v4699_v22, 512 }
 0x307   :  { %v2749_v51 = vand.u32 65535, %v6024_v63  ;;  %vm3485_vm11 = vcmp.lt.s32.totalorder %v3484_v48, %v2301_v8  ;;  %v2736_v40 = vsel %vm2735_vm6, %v2731_v36, inf  ;;  %v7147_v58 = vsel %vm3447_vm12, %v3446_v57, %v2294_v43 }
 0x308   :  { %8770 = vst [vmem:[#allocation170_spill] sm:$0xff] %v7147_v58  ;;  %vm2046_vm15 = vcmp.eq.f32.partialorder %v8771_v27, %v6991_v39  ;;  %vm2755_vm2 = vcmp.eq.f32.partialorder %v6039_v38, %v7023_v35  ;;  %vm3523_vm7 = vcmp.lt.s32.totalorder %v2307_v10, %v2308_v59  ;;  %v7153_v49 = vpop.xlane.xlu0 %2833  ;;  %v3486_v61 = vsel %vm3485_vm11, %v3484_v48, %v2301_v8  ;;  %v7162_v39 = vpop.xlane.xlu1 %2377 }
 0x309   :  { %v2751_v55 = vcvt.s32.f32 %v2749_v51  ;;  %8772 = vst [vmem:[#allocation130_spill] sm:$0xff] %v7153_v49  ;;  %vm2053_vm9 = vcmp.eq.f32.partialorder %v8773_v33, %v7084_v24  ;;  %v3450_v63 = vshra.s32 %v7147_v58, 16  ;;  %vm2059_vm3 = vcmp.eq.f32.partialorder %v6002_v26, %v7136_v32  ;;  %v8831_v58 = vld [vmem:[#allocation92_spill] sm:$0xff] }
 0x30a   :  { %3413 = vmin.xlane.f32.xlu1 %v7129_v5  ;;  %vm2060_vm4 = vcmp.eq.f32.partialorder %v6006_v9, %v7136_v32  ;;  %v2302_v38 = vsel %vm2046_vm15, %v4741_v52, 512  ;;  %v3524_v57 = vsel %vm3523_vm7, %v2307_v10, %v2308_v59  ;;  %v2309_v48 = vsel %vm2053_vm9, %v4709_v3, 512 }
 0x30b   :  { %v2756_v43 = vsel %vm2755_vm2, %v2751_v55, inf  ;;  %vm3487_vm10 = vcmp.lt.s32.totalorder %v3486_v61, %v2302_v38  ;;  %v2315_v7 = vsel %vm2059_vm3, %v4680_v15, 512  ;;  %v2316_v8 = vsel %vm2060_vm4, %v4699_v22, 512 }
 0x30c   :  { %v2769_v36 = vand.u32 65535, %v6041_v23  ;;  %vm3525_vm5 = vcmp.lt.s32.totalorder %v3524_v57, %v2309_v48  ;;  %v7169_v26 = vcvt.s32.f32 %v3450_v63  ;;  %v7173_v51 = vsel %vm3487_vm10, %v3486_v61, %v2302_v38  ;;  %v8780_v38 = vld [vmem:[#allocation63_spill] sm:$0xff] }
 0x30d   :  { %8775 = vst [vmem:[#allocation135_spill] sm:$0xff] %v7173_v51  ;;  %vm2775_vm13 = vcmp.eq.f32.partialorder %v6070_v34, %v7054_v41  ;;  %vm2054_vm8 = vcmp.eq.f32.partialorder %v5927_v60, %v7084_v24  ;;  %vm3563_vm0 = vcmp.lt.s32.totalorder %v2315_v7, %v2316_v8  ;;  %v3526_v23 = vsel %vm3525_vm5, %v3524_v57, %v2309_v48 }
 0x30e   :  { %2737 = vmin.xlane.f32.xlu1 %v2736_v40  ;;  %8774 = vst [vmem:[#allocation134_spill] sm:$0xff] %v7169_v26  ;;  %v7171_v9 = vpop.xlane.xlu1 %2397  ;;  %v7175_v40 = vpop.xlane.xlu0 %2873  ;;  %v2771_v22 = vcvt.s32.f32 %v2769_v36  ;;  %vm2061_vm14 = vcmp.eq.f32.partialorder %v6029_v11, %v7136_v32  ;;  %v3490_v10 = vshra.s32 %v7173_v51, 16  ;;  %v2310_v59 = vsel %vm2054_vm8, %v4741_v52, 512 }
 0x30f   :  { %8776 = vst [vmem:[#allocation171_spill] sm:$0xff] %v7175_v40  ;;  %v3564_v27 = vsel %vm3563_vm0, %v2315_v7, %v2316_v8  ;;  %vm3527_vm1 = vcmp.lt.s32.totalorder %v3526_v23, %v2310_v59  ;;  %v2317_v60 = vsel %vm2061_vm14, %v4709_v3, 512  ;;  %v2789_v24 = vand.u32 65535, %v6106_v31 }
 0x310   :  { %v2776_v55 = vsel %vm2775_vm13, %v2771_v22, inf  ;;  %v3109_v33 = vand.u32 65535, %v6344_v29  ;;  %vm3565_vm6 = vcmp.lt.s32.totalorder %v3564_v27, %v2317_v60  ;;  %v7193_v11 = vcvt.s32.f32 %v3490_v10 }
 0x311   :  { %v7195_v63 = vsel %vm3527_vm1, %v3526_v23, %v2310_v59  ;;  %vm2795_vm12 = vcmp.eq.f32.partialorder %v6144_v28, %v7118_v14  ;;  %vm2062_vm11 = vcmp.eq.f32.partialorder %v8780_v38, %v7136_v32  ;;  %v2791_v3 = vcvt.s32.f32 %v2789_v24  ;;  %v8783_v32 = vld [vmem:[#allocation95_spill] sm:$0xff]  ;;  %v8788_v24 = vld [vmem:[#allocation54_spill] sm:$0xff] }
 0x312   :  { %2757 = vmin.xlane.f32.xlu1 %v2756_v43  ;;  %v7186_v34 = vpop.xlane.xlu1 %2417  ;;  %v7190_v61 = vpop.xlane.xlu0 %2913  ;;  %8778 = vst [vmem:[#allocation133_spill] sm:$0xff] %v7193_v11  ;;  %8779 = vst [vmem:[#allocation137_spill] sm:$0xff] %v7195_v63  ;;  %v3566_v57 = vsel %vm3565_vm6, %v3564_v27, %v2317_v60  ;;  %v3530_v31 = vshra.s32 %v7195_v63, 16  ;;  %v3111_v29 = vcvt.s32.f32 %v3109_v33  ;;  %v2318_v48 = vsel %vm2062_vm11, %v4741_v52, 512  ;;  %v8786_v52 = vld [vmem:[#allocation96_spill] sm:$0xff] }
 0x313   :  { %8777 = vst [vmem:[#allocation174_spill] sm:$0xff] %v7190_v61  ;;  %v2796_v7 = vsel %vm2795_vm12, %v2791_v3, inf  ;;  %vm3567_vm2 = vcmp.lt.s32.totalorder %v3566_v57, %v2318_v48  ;;  %v2829_v36 = vand.u32 65535, %v8783_v32  ;;  %vm2835_vm7 = vcmp.eq.f32.partialorder %v8786_v52, %v7153_v49  ;;  %v8792_v32 = vld [vmem:[#allocation89_spill] sm:$0xff]  ;;  %v8818_v63 = vld [vmem:[#allocation76_spill] sm:$0xff] }
 0x314   :  { %v7211_v22 = vcvt.s32.f32 %v3530_v31  ;;  %v7215_v10 = vsel %vm3567_vm2, %v3566_v57, %v2318_v48  ;;  %v2869_v33 = vand.u32 65535, %v8788_v24  ;;  %v3149_v38 = vand.u32 65535, %v6464_v45  ;;  %v8793_v45 = vld [vmem:[#allocation65_spill] sm:$0xff] }
 0x315   :  { %8785 = vst [vmem:[#allocation139_spill] sm:$0xff] %v7215_v10  ;;  %v2831_v59 = vcvt.s32.f32 %v2829_v36  ;;  %vm2875_vm9 = vcmp.eq.f32.partialorder %v6232_v20, %v7175_v40  ;;  %vm2915_vm4 = vcmp.eq.f32.partialorder %v8793_v45, %v7190_v61  ;;  %v8800_v45 = vld [vmem:[#allocation105_spill] sm:$0xff]  ;;  %v2400_v61 = vcvt.f32.s32 %v8808_v0 }
 0x316   :  { %3453 = vmin.xlane.f32.xlu1 %v7169_v26  ;;  %v7206_v8 = vpop.xlane.xlu0 %2953  ;;  %8784 = vst [vmem:[#allocation136_spill] sm:$0xff] %v7211_v22  ;;  %v2871_v31 = vcvt.s32.f32 %v2869_v33  ;;  %v3129_v35 = vand.u32 65535, %v8831_v58  ;;  %vm3619_vm2 = vcmask 195712  }
 0x317   :  { %8782 = vst [vmem:[#allocation140_spill] sm:$0xff] %v7206_v8 }
 0x31a   :  { %2777 = vmin.xlane.f32.xlu1 %v2776_v55  ;;  %v7220_v27 = vpop.xlane.xlu0 %2973  ;;  %v2836_v55 = vsel %vm2835_vm7, %v2831_v59, inf  ;;  %v8795_v59 = vld [vmem:[#allocation62_spill] sm:$0xff] }
 0x31b   :  { %8787 = vst [vmem:[#allocation150_spill] sm:$0xff] %v7220_v27 }
 0x31e   :  { %3493 = vmin.xlane.f32.xlu1 %v7193_v11  ;;  %v7229_v57 = vpop.xlane.xlu0 %3013  ;;  %v8819_v11 = vld [vmem:[#allocation108_spill] sm:$0xff] }
 0x31f   :  { %v7203_v43 = vpop.xlane.xlu1 %3113  ;;  %8790 = vst [vmem:[#allocation144_spill] sm:$0xff] %v7229_v57  ;;  %v2540_v14 = vcvt.f32.s32 %v8819_v11 }
 0x320   :  { %8781 = vst [vmem:[#allocation138_spill] sm:$0xff] %v7203_v43  ;;  %vm3115_vm15 = vcmp.eq.f32.partialorder %v6372_v37, %v7203_v43  ;;  %v3570_v37 = vshra.s32 %v7215_v10, 16 }
 0x321   :  { %v3116_v28 = vsel %vm3115_vm15, %v3111_v29, inf  ;;  %v2909_v29 = vand.u32 65535, %v6235_v42  ;;  %v8796_v42 = vld [vmem:[#allocation68_spill] sm:$0xff]  ;;  %vm3612_vm15 = vcmask 130112  }
 0x322   :  { %2797 = vmin.xlane.f32.xlu1 %v2796_v7  ;;  %3117 = vmin.xlane.f32.xlu0 %v3116_v28  ;;  %v7227_v3 = vcvt.s32.f32 %v3570_v37  ;;  %v3151_v7 = vcvt.s32.f32 %v3149_v38  ;;  %v2876_v28 = vsel %vm2875_vm9, %v2871_v31, inf  ;;  %v7241_v52 = vpop.xlane.xlu0 %3033  ;;  %v2949_v37 = vand.u32 65535, %v8795_v59  ;;  %v8797_v38 = vld [vmem:[#allocation67_spill] sm:$0xff]  ;;  %v8801_v59 = vld [vmem:[#allocation80_spill] sm:$0xff] }
 0x323   :  { %v7213_v23 = vpop.xlane.xlu1 %2437  ;;  %8794 = vst [vmem:[#allocation162_spill] sm:$0xff] %v7241_v52  ;;  %v2911_v20 = vcvt.s32.f32 %v2909_v29  ;;  %vm2955_vm10 = vcmp.eq.f32.partialorder %v8796_v42, %v7206_v8  ;;  %v2969_v31 = vand.u32 65535, %v8797_v38  ;;  %v2340_v42 = vcvt.f32.s32 %v8801_v59 }
 0x324   :  { %8789 = vst [vmem:[#allocation151_spill] sm:$0xff] %v7227_v3  ;;  %v2951_v33 = vcvt.s32.f32 %v2949_v37  ;;  %v8803_v37 = vld [vmem:[#allocation107_spill] sm:$0xff]  ;;  %vm3626_vm9 = vcmask 261312  }
 0x325   :  { %v2971_v29 = vcvt.s32.f32 %v2969_v31  ;;  %vm3015_vm13 = vcmp.eq.f32.partialorder %v8803_v37, %v7229_v57  ;;  %v2341_v8 = vshll.u32 %v2340_v42, 16  ;;  %v8811_v37 = vld [vmem:[#allocation70_spill] sm:$0xff] }
 0x326   :  { %3533 = vmin.xlane.f32.xlu1 %v7211_v22  ;;  %vm3035_vm8 = vcmp.eq.f32.partialorder %v8811_v37, %v7241_v52  ;;  %v8815_v42 = vld [vmem:[#allocation110_spill] sm:$0xff] }
 0x327   :  { %v7223_v60 = vpop.xlane.xlu1 %2457  ;;  %v3049_v0 = vand.u32 65535, %v8815_v42  ;;  %v8817_v22 = vld [vmem:[#allocation66_spill] sm:$0xff] }
 0x328   :  { %v2500_v49 = vcvt.f32.s32 %v8817_v22 }
 0x329   :  { %v3051_v42 = vcvt.s32.f32 %v3049_v0  ;;  %v2339_v0 = vcvt.f32.s32 %v7124_v25 }
 0x32a   :  { %2837 = vmin.xlane.f32.xlu1 %v2836_v55  ;;  %v2916_v55 = vsel %vm2915_vm4, %v2911_v20, inf }
 0x32e   :  { %3573 = vmin.xlane.f32.xlu1 %v7227_v3 }
 0x32f   :  { %v7235_v48 = vpop.xlane.xlu1 %3153 }
 0x330   :  { %8791 = vst [vmem:[#allocation141_spill] sm:$0xff] %v7235_v48  ;;  %vm3155_vm3 = vcmp.eq.f32.partialorder %v8792_v32, %v7235_v48  ;;  %v7249_v32 = vpop.xlane.xlu0 %3053  ;;  %v8802_v48 = vld [vmem:[#allocation94_spill] sm:$0xff] }
 0x331   :  { %v3156_v36 = vsel %vm3155_vm3, %v3151_v7, inf  ;;  %8798 = vst [vmem:[#allocation180_spill] sm:$0xff] %v7249_v32  ;;  %v8799_v7 = vld [vmem:[#allocation73_spill] sm:$0xff]  ;;  %v3189_v43 = vand.u32 65535, %v8802_v48  ;;  %v8810_v48 = vld [vmem:[#allocation52_spill] sm:$0xff]  ;;  %vm3633_vm3 = vcmask 326912  }
 0x332   :  { %2877 = vmin.xlane.f32.xlu1 %v2876_v28  ;;  %3157 = vmin.xlane.f32.xlu0 %v3156_v36  ;;  %v2956_v28 = vsel %vm2955_vm10, %v2951_v33, inf  ;;  %vm2975_vm5 = vcmp.eq.f32.partialorder %v8799_v7, %v7220_v27  ;;  %v3009_v36 = vand.u32 65535, %v8800_v45  ;;  %v3029_v7 = vand.u32 65535, %v8805_v19  ;;  %v8807_v27 = vld [vmem:[#allocation88_spill] sm:$0xff] }
 0x333   :  { %v7246_v24 = vpop.xlane.xlu1 %2477  ;;  %v2380_v45 = vcvt.f32.s32 %v8807_v27  ;;  %v2440_v3 = vcvt.f32.s32 %v8810_v48  ;;  %v8813_v19 = vld [vmem:[#allocation64_spill] sm:$0xff]  ;;  %v8814_v27 = vld [vmem:[#allocation103_spill] sm:$0xff]  ;;  %vm3640_vm10 = vcmask 392512  }
 0x334   :  { %v7260_v38 = vpop.xlane.xlu0 %3073  ;;  %v3011_v33 = vcvt.s32.f32 %v3009_v36  ;;  %v3191_v36 = vcvt.s32.f32 %v3189_v43  ;;  %v2460_v57 = vcvt.f32.s32 %v8813_v19  ;;  %v2401_v19 = vshll.u32 %v2400_v61, 16  ;;  %v8823_v61 = vld [vmem:[#allocation86_spill] sm:$0xff] }
 0x335   :  { %8804 = vst [vmem:[#allocation183_spill] sm:$0xff] %v7260_v38  ;;  %v2381_v40 = vshll.u32 %v2380_v45, 16 }
 0x336   :  { %2917 = vmin.xlane.f32.xlu1 %v2916_v55  ;;  %v2976_v55 = vsel %vm2975_vm5, %v2971_v29, inf  ;;  %v3016_v59 = vsel %vm3015_vm13, %v3011_v33, inf  ;;  %v8809_v29 = vld [vmem:[#allocation93_spill] sm:$0xff]  ;;  %v7294_v11 = vshll.u32 %v2460_v57, 16  ;;  %vm3647_vm5 = vcmask 458112  }
 0x337   :  { %v7254_v20 = vpop.xlane.xlu1 %2497  ;;  %v2420_v1 = vcvt.f32.s32 %v8809_v29  ;;  %v8816_v29 = vld [vmem:[#allocation98_spill] sm:$0xff] }
 0x338   :  { %v2480_v10 = vcvt.f32.s32 %v8816_v29  ;;  %v7280_v43 = vpop.xlane.xlu0 %3093  ;;  %v8822_v29 = vld [vmem:[#allocation81_spill] sm:$0xff] }
 0x339   :  { %v3069_v37 = vand.u32 65535, %v8822_v29  ;;  %v8824_v29 = vld [vmem:[#allocation83_spill] sm:$0xff] }
 0x33a   :  { %2957 = vmin.xlane.f32.xlu1 %v2956_v28  ;;  %v8806_v28 = vld [vmem:[#allocation58_spill] sm:$0xff]  ;;  %vm3075_vm1 = vcmp.eq.f32.partialorder %v8824_v29, %v7260_v38  ;;  %v3614_v29 = vadd.s32 4294967280, %v4680_v15 }
 0x33b   :  { %v2360_v31 = vcvt.f32.s32 %v8806_v28  ;;  %v3031_v28 = vcvt.s32.f32 %v3029_v7 }
 0x33d   :  { %v2361_v33 = vshll.u32 %v2360_v31, 16  ;;  %v3036_v7 = vsel %vm3035_vm8, %v3031_v28, inf  ;;  %v8820_v31 = vld [vmem:[#allocation84_spill] sm:$0xff]  ;;  %v7297_v28 = vshll.u32 %v2480_v10, 16  ;;  %v3607_v10 = vadd.s32 4294967288, %v4680_v15 }
 0x33e   :  { %2977 = vmin.xlane.f32.xlu1 %v2976_v55  ;;  %v2560_v45 = vcvt.f32.s32 %v8820_v31  ;;  %v2620_v31 = vcvt.f32.s32 %v6616_v13  ;;  %v2359_v13 = vcvt.f32.s32 %v7142_v16  ;;  %v2379_v16 = vcvt.f32.s32 %v7162_v39 }
 0x33f   :  { %vm3654_vm8 = vcmask 523712  }
 0x340   :  { %v7308_v57 = vshll.u32 %v2560_v45, 16  ;;  %v7325_v52 = vshll.u32 %v2620_v31, 16  ;;  %v2362_v31 = vadd.s32 %v2361_v33, %v2359_v13 }
 0x341   :  { %v7270_v55 = vpop.xlane.xlu1 %3193 }
 0x342   :  { %3017 = vmin.xlane.f32.xlu1 %v3016_v59  ;;  %8812 = vst [vmem:[#allocation186_spill] sm:$0xff] %v7270_v55  ;;  %vm3195_vm0 = vcmp.eq.f32.partialorder %v8814_v27, %v7270_v55  ;;  %v2520_v59 = vcvt.f32.s32 %v8818_v63  ;;  %v7285_v27 = vshll.u32 %v2420_v1, 16  ;;  %v7292_v63 = vshll.u32 %v2440_v3, 16 }
 0x343   :  { %v3196_v48 = vsel %vm3195_vm0, %v3191_v36, inf  ;;  %v8821_v36 = vld [vmem:[#allocation78_spill] sm:$0xff]  ;;  %v2580_v1 = vcvt.f32.s32 %v8823_v61  ;;  %v7302_v55 = vshll.u32 %v2500_v49, 16  ;;  %v7317_v49 = vpop.xlane.xlu0 %3133  ;;  %vm3661_vm0 = vcmask 589312  }
 0x344   :  { %3197 = vmin.xlane.f32.xlu0 %v3196_v48  ;;  %vm3055_vm14 = vcmp.eq.f32.partialorder %v8821_v36, %v7249_v32  ;;  %v2600_v48 = vcvt.f32.s32 %v6582_v12  ;;  %v7306_v36 = vshll.u32 %v2540_v14, 16  ;;  %8825 = vst [vmem:[#allocation163_spill] sm:$0xff] %v7317_v49  ;;  %v8826_v14 = vld [vmem:[#allocation91_spill] sm:$0xff] }
 0x345   :  { %v7290_v22 = vpop.xlane.xlu1 %2517  ;;  %v3056_v3 = vsel %vm3055_vm14, %v3051_v42, inf  ;;  %v3089_v61 = vand.u32 65535, %v8826_v14  ;;  %v8827_v42 = vld [vmem:[#allocation109_spill] sm:$0xff]  ;;  %v7321_v32 = vshll.u32 %v2580_v1, 16  ;;  %v2342_v14 = vadd.s32 %v2341_v8, %v2339_v0 }
 0x346   :  { %3037 = vmin.xlane.f32.xlu1 %v3036_v7  ;;  %v7304_v7 = vshll.u32 %v2520_v59, 16  ;;  %v3071_v59 = vcvt.s32.f32 %v3069_v37  ;;  %v3229_v45 = vand.u32 65535, %v8827_v42  ;;  %v7323_v25 = vshll.u32 %v2600_v48, 16  ;;  %v8829_v48 = vld [vmem:[#allocation97_spill] sm:$0xff] }
 0x347   :  { %v3621_v37 = vadd.s32 4294967272, %v4680_v15  ;;  %v2399_v1 = vcvt.f32.s32 %v7171_v9  ;;  %vm3095_vm6 = vcmp.eq.f32.partialorder %v8829_v48, %v7280_v43  ;;  %v3091_v26 = vcvt.s32.f32 %v3089_v61  ;;  %v8832_v9 = vld [vmem:[#allocation111_spill] sm:$0xff]  ;;  %v7353_v33 = vpop.xlane.xlu0 %3173  ;;  %v8835_v48 = vld [vmem:[#allocation100_spill] sm:$0xff] }
 0x348   :  { %v3076_v51 = vsel %vm3075_vm1, %v3071_v59, inf  ;;  %v3231_v39 = vcvt.s32.f32 %v3229_v45  ;;  %v3628_v8 = vadd.s32 4294967264, %v4680_v15  ;;  %v2419_v0 = vcvt.f32.s32 %v7186_v34  ;;  %8833 = vst [vmem:[#allocation13_spill] sm:$0xff] %v7353_v33 }
 0x349   :  { %v7314_v12 = vpop.xlane.xlu1 %2537  ;;  %v3096_v13 = vsel %vm3095_vm6, %v3091_v26, inf  ;;  %v2402_v58 = vadd.s32 %v2401_v19, %v2399_v1  ;;  %v3635_v61 = vadd.s32 4294967256, %v4680_v15  ;;  %v2439_v45 = vcvt.f32.s32 %v7213_v23 }
 0x34a   :  { %3057 = vmin.xlane.f32.xlu1 %v3056_v3  ;;  %v8828_v3 = vld [vmem:[#allocation12_spill] sm:$0xff]  ;;  %v3169_v26 = vand.u32 65535, %v8835_v48  ;;  %v2422_v1 = vadd.s32 %v7285_v27, %v2419_v0  ;;  %v3642_v23 = vadd.s32 4294967248, %v4680_v15  ;;  %v2640_v27 = vcvt.f32.s32 %v6692_v53 }
 0x34b   :  { %v7330_v38 = vsub.s32 %v4680_v15, %v8828_v3  ;;  %v7335_v42 = vsub.s32 %v3607_v10, %v8828_v3  ;;  %v7344_v5 = vsub.s32 %v3614_v29, %v8828_v3  ;;  %v2382_v10 = vadd.s32 %v2381_v40, %v2379_v16  ;;  %v8834_v29 = vld [vmem:[#allocation99_spill] sm:$0xff] }
 0x34c   :  { %vm3135_vm11 = vcmp.eq.f32.partialorder %v8834_v29, %v7317_v49  ;;  %v3131_v16 = vcvt.s32.f32 %v3129_v35  ;;  %v7365_v19 = vsub.s32 %v3628_v8, %v8828_v3  ;;  %v8836_v8 = vld [vmem:[#allocation102_spill] sm:$0xff]  ;;  %v3171_v0 = vcvt.s32.f32 %v3169_v26 }
 0x34d   :  { %v7340_v41 = vpop.xlane.xlu1 %3233  ;;  %v3606_v34 = vrot.slane %v2342_v14, %v7330_v38  ;;  %v3611_v40 = vrot.slane %v2362_v31, %v7335_v42  ;;  %v3618_v14 = vrot.slane %v2382_v10, %v7344_v5  ;;  %v7373_v31 = vsub.s32 %v3635_v61, %v8828_v3  ;;  %v8838_v10 = vld [vmem:[#allocation101_spill] sm:$0xff]  ;;  %v8845_v49 = vld [vmem:[#allocation114_spill] sm:$0xff] }
 0x34e   :  { %3077 = vmin.xlane.f32.xlu1 %v3076_v51  ;;  %8830 = vst [vmem:[#allocation142_spill] sm:$0xff] %v7340_v41  ;;  %vm3235_vm12 = vcmp.eq.f32.partialorder %v8832_v9, %v7340_v41  ;;  %v7351_v51 = vsub.s32 %v3621_v37, %v8828_v3  ;;  %v3136_v9 = vsel %vm3135_vm11, %v3131_v16, inf  ;;  %vm3175_vm7 = vcmp.eq.f32.partialorder %v8836_v8, %v7353_v33 }
 0x34f   :  { %v3236_v59 = vsel %vm3235_vm12, %v3231_v39, inf  ;;  %v2459_v39 = vcvt.f32.s32 %v7223_v60  ;;  %v7379_v60 = vpop.xlane.xlu0 %3213  ;;  %v3209_v29 = vand.u32 65535, %v8838_v10  ;;  %v3632_v61 = vrot.slane %v2422_v1, %v7365_v19 }
 0x350   :  { %3237 = vmin.xlane.f32.xlu0 %v3236_v59  ;;  %v3625_v35 = vrot.slane %v2402_v58, %v7351_v51  ;;  %8837 = vst [vmem:[#allocation155_spill] sm:$0xff] %v7379_v60  ;;  %v3613_v58 = vsel %vm3612_vm15, %v3611_v40, %v3606_v34  ;;  %v3649_v53 = vadd.s32 4294967240, %v4680_v15  ;;  %v3176_v48 = vsel %vm3175_vm7, %v3171_v0, inf  ;;  %v8839_v34 = vld [vmem:[#allocation104_spill] sm:$0xff] }
 0x351   :  { %v7361_v37 = vpop.xlane.xlu1 %2557  ;;  %v3620_v16 = vsel %vm3619_vm2, %v3618_v14, %v3613_v58  ;;  %v3656_v8 = vadd.s32 4294967232, %v4680_v15  ;;  %vm3215_vm4 = vcmp.eq.f32.partialorder %v8839_v34, %v7379_v60  ;;  %v3663_v40 = vadd.s32 4294967224, %v4680_v15 }
 0x352   :  { %3097 = vmin.xlane.f32.xlu1 %v3096_v13  ;;  %v2442_v13 = vadd.s32 %v7292_v63, %v2439_v45  ;;  %v7387_v63 = vsub.s32 %v3642_v23, %v8828_v3  ;;  %v2462_v45 = vadd.s32 %v7294_v11, %v2459_v39  ;;  %v3627_v26 = vsel %vm3626_vm9, %v3625_v35, %v3620_v16  ;;  %v8841_v23 = vld [vmem:[#allocation145_spill] sm:$0xff] }
 0x353   :  { %v7398_v11 = vpop.xlane.xlu0 %3253  ;;  %v3211_v1 = vcvt.s32.f32 %v3209_v29  ;;  %v3249_v39 = vand.u32 65535, %v8841_v23  ;;  %v7401_v14 = vshll.u32 %v2640_v27, 16  ;;  %v3634_v35 = vsel %vm3633_vm3, %v3632_v61, %v3627_v26  ;;  %v8842_v61 = vld [vmem:[#allocation106_spill] sm:$0xff] }
 0x354   :  { %8840 = vst [vmem:[#allocation18_spill] sm:$0xff] %v7398_v11  ;;  %v3670_v0 = vadd.s32 4294967216, %v4680_v15  ;;  %v7409_v58 = vsub.s32 %v3649_v53, %v8828_v3  ;;  %v3677_v16 = vadd.s32 4294967208, %v4680_v15  ;;  %v7414_v27 = vsub.s32 %v3656_v8, %v8828_v3 }
 0x355   :  { %v7381_v59 = vpop.xlane.xlu1 %2577  ;;  %vm3255_vm13 = vcmp.eq.f32.partialorder %v8842_v61, %v7398_v11  ;;  %v2479_v26 = vcvt.f32.s32 %v7246_v24  ;;  %v7421_v34 = vsub.s32 %v3663_v40, %v8828_v3  ;;  %v3251_v23 = vcvt.s32.f32 %v3249_v39  ;;  %v8844_v11 = vld [vmem:[#allocation154_spill] sm:$0xff] }
 0x356   :  { %3137 = vmin.xlane.f32.xlu1 %v3136_v9  ;;  %v3639_v9 = vrot.slane %v2442_v13, %v7373_v31  ;;  %v3646_v13 = vrot.slane %v2462_v45, %v7387_v63  ;;  %v3684_v45 = vadd.s32 4294967200, %v4680_v15  ;;  %v2499_v8 = vcvt.f32.s32 %v7254_v20 }
 0x357   :  { %v7423_v53 = vpop.xlane.xlu0 %3293  ;;  %v2519_v24 = vcvt.f32.s32 %v7290_v22  ;;  %v7434_v40 = vsub.s32 %v3677_v16, %v8828_v3  ;;  %v3698_v39 = vadd.s32 4294967184, %v4680_v15  ;;  %vm3668_vm14 = vcmask 654912   ;;  %v8843_v22 = vld [vmem:[#allocation115_spill] sm:$0xff] }
 0x358   :  { %v3641_v29 = vsel %vm3640_vm10, %v3639_v9, %v3634_v35  ;;  %v7429_v35 = vsub.s32 %v3670_v0, %v8828_v3  ;;  %v2539_v20 = vcvt.f32.s32 %v7314_v12  ;;  %vm3295_vm1 = vcmp.eq.f32.partialorder %v6735_v17, %v7423_v53 }
 0x359   :  { %v7406_v10 = vpop.xlane.xlu1 %3273  ;;  %v3648_v9 = vsel %vm3647_vm5, %v3646_v13, %v3641_v29  ;;  %v7442_v13 = vsub.s32 %v3684_v45, %v8828_v3  ;;  %v3429_v0 = vand.u32 65535, %v8843_v22  ;;  %v2482_v16 = vadd.s32 %v7297_v28, %v2479_v26 }
 0x35a   :  { %3177 = vmin.xlane.f32.xlu1 %v3176_v48  ;;  %v3216_v48 = vsel %vm3215_vm4, %v3211_v1, inf  ;;  %v3289_v1 = vand.u32 65535, %v6720_v18  ;;  %v3256_v18 = vsel %vm3255_vm13, %v3251_v23, inf  ;;  %vm3675_vm6 = vcmask 720512  }
 0x35b   :  { %v2559_v29 = vcvt.f32.s32 %v7361_v37  ;;  %v7449_v61 = vpop.xlane.xlu0 %3433  ;;  %v3469_v41 = vand.u32 65535, %v8844_v11  ;;  %v2502_v12 = vadd.s32 %v7302_v55, %v2499_v8  ;;  %v2579_v45 = vcvt.f32.s32 %v7381_v59  ;;  %v8846_v59 = vld [vmem:[#allocation152_spill] sm:$0xff] }
 0x35c   :  { %v3291_v23 = vcvt.s32.f32 %v3289_v1  ;;  %v3309_v22 = vand.u32 65535, %v8845_v49  ;;  %v2522_v28 = vadd.s32 %v7304_v7, %v2519_v24  ;;  %v7463_v1 = vsub.s32 %v3698_v39, %v8828_v3 }
 0x35d   :  { %v2598_v60 = vpop.xlane.xlu1 %2597  ;;  %v2542_v55 = vadd.s32 %v7306_v36, %v2539_v20  ;;  %vm3435_vm12 = vcmp.eq.f32.partialorder %v8846_v59, %v7449_v61  ;;  %v3431_v8 = vcvt.s32.f32 %v3429_v0  ;;  %v3653_v49 = vrot.slane %v2482_v16, %v7409_v58  ;;  %v8847_v36 = vld [vmem:[#allocation158_spill] sm:$0xff] }
 0x35e   :  { %3217 = vmin.xlane.f32.xlu1 %v3216_v48  ;;  %v3691_v48 = vadd.s32 4294967192, %v4680_v15  ;;  %v2599_v26 = vcvt.f32.s32 %v2598_v60  ;;  %v3296_v37 = vsel %vm3295_vm1, %v3291_v23, inf  ;;  %v2562_v7 = vadd.s32 %v7308_v57, %v2559_v29 }
 0x35f   :  { %v3705_v17 = vadd.s32 4294967176, %v4680_v15  ;;  %v3660_v24 = vrot.slane %v2502_v12, %v7414_v27  ;;  %v2582_v39 = vadd.s32 %v7321_v32, %v2579_v45  ;;  %v3311_v23 = vcvt.s32.f32 %v3309_v22  ;;  %v8848_v15 = vld [vmem:[#allocation161_spill] sm:$0xff] }
 0x360   :  { %v7455_v33 = vsub.s32 %v3691_v48, %v8828_v3  ;;  %v3471_v48 = vcvt.s32.f32 %v3469_v41  ;;  %v3667_v0 = vrot.slane %v2522_v28, %v7421_v34  ;;  %v2602_v16 = vadd.s32 %v7323_v25, %v2599_v26  ;;  %v8849_v12 = vld [vmem:[#allocation129_spill] sm:$0xff] }
 0x361   :  { %v3436_v41 = vsel %vm3435_vm12, %v3431_v8, inf  ;;  %v3674_v57 = vrot.slane %v2542_v55, %v7429_v35  ;;  %v3509_v45 = vand.u32 65535, %v8849_v12  ;;  %vm8189_vm4 = vcmask 786112   ;;  %v8850_v55 = vld [vmem:[#allocation117_spill] sm:$0xff] }
 0x362   :  { %3257 = vmin.xlane.f32.xlu1 %v3256_v18  ;;  %v2618_v18 = vpop.xlane.xlu1 %2617  ;;  %v3681_v25 = vrot.slane %v2562_v7, %v7434_v40  ;;  %vm3689_vm13 = vcmask 851712   ;;  %v3688_v26 = vrot.slane %v2582_v39, %v7442_v13  ;;  %v3329_v59 = vand.u32 65535, %v8850_v55  ;;  %v8855_v55 = vld [vmem:[#allocation131_spill] sm:$0xff] }
 0x363   :  { %v2619_v11 = vcvt.f32.s32 %v2618_v18  ;;  %v3655_v18 = vsel %vm3654_vm8, %v3653_v49, %v3648_v9  ;;  %v7497_v8 = vsub.s32 %v3705_v17, %v8828_v3  ;;  %vm3696_vm1 = vcmask 917312  }
 0x364   :  { %v3662_v28 = vsel %vm3661_vm0, %v3660_v24, %v3655_v18  ;;  %v3511_v24 = vcvt.s32.f32 %v3509_v45  ;;  %vm3703_vm12 = vcmask 982912   ;;  %v8853_v18 = vld [vmem:[#allocation118_spill] sm:$0xff] }
 0x365   :  { %v7470_v60 = vpop.xlane.xlu0 %3473  ;;  %v2622_v32 = vadd.s32 %v7325_v52, %v2619_v11  ;;  %v3669_v52 = vsel %vm3668_vm14, %v3667_v0, %v3662_v28  ;;  %v3695_v11 = vrot.slane %v2602_v16, %v7455_v33  ;;  %v3331_v16 = vcvt.s32.f32 %v3329_v59 }
 0x366   :  { %3297 = vmin.xlane.f32.xlu1 %v3296_v37  ;;  %vm3475_vm11 = vcmp.eq.f32.partialorder %v8847_v36, %v7470_v60  ;;  %v7477_v20 = vpop.xlane.xlu1 %3313  ;;  %v3676_v49 = vsel %vm3675_vm6, %v3674_v57, %v3669_v52  ;;  %v8852_v57 = vld [vmem:[#allocation120_spill] sm:$0xff] }
 0x367   :  { %vm3315_vm7 = vcmp.eq.f32.partialorder %v8848_v15, %v7477_v20  ;;  %v3476_v22 = vsel %vm3475_vm11, %v3471_v48, inf  ;;  %v3702_v7 = vrot.slane %v2622_v32, %v7463_v1  ;;  %v3683_v39 = vsel %vm8189_vm4, %v3681_v25, %v3676_v49 }
 0x368   :  { %v3316_v29 = vsel %vm3315_vm7, %v3311_v23, inf  ;;  %v8851_v23 = vld [vmem:[#allocation119_spill] sm:$0xff]  ;;  %v3690_v3 = vsel %vm3689_vm13, %v3688_v26, %v3683_v39  ;;  %vm8190_vm7 = vcmask 1048512   ;;  %v3549_v25 = vand.u32 65535, %v8853_v18 }
 0x369   :  { %3317 = vmin.xlane.f32.xlu0 %v3316_v29  ;;  %v3589_v39 = vand.u32 65535, %v7037_v62 }
 0x36a   :  { %3437 = vmin.xlane.f32.xlu1 %v3436_v41  ;;  %v2638_v37 = vpop.xlane.xlu1 %2637  ;;  %v3697_v41 = vsel %vm3696_vm1, %v3695_v11, %v3690_v3 }
 0x36b   :  { %v2639_v9 = vcvt.f32.s32 %v2638_v37  ;;  %v3704_v32 = vsel %vm3703_vm12, %v3702_v7, %v3697_v41  ;;  %v3551_v37 = vcvt.s32.f32 %v3549_v25 }
 0x36c   :  { %v7501_v48 = vpop.xlane.xlu0 %3513 }
 0x36d   :  { %v2642_v36 = vadd.s32 %v7401_v14, %v2639_v9  ;;  %vm3515_vm11 = vcmp.eq.f32.partialorder %v8851_v23, %v7501_v48 }
 0x36e   :  { %3477 = vmin.xlane.f32.xlu1 %v3476_v22  ;;  %v7508_v17 = vpop.xlane.xlu1 %3333  ;;  %v3516_v0 = vsel %vm3515_vm11, %v3511_v24, inf  ;;  %v8854_v22 = vld [vmem:[#allocation123_spill] sm:$0xff]  ;;  %v3369_v24 = vand.u32 65535, %v7017_v47  ;;  %v3389_v47 = vand.u32 65535, %v7077_v2  ;;  %v3409_v2 = vand.u32 65535, %v7109_v50 }
 0x36f   :  { %v3709_v15 = vrot.slane %v2642_v36, %v7497_v8  ;;  %vm3335_vm4 = vcmp.eq.f32.partialorder %v8852_v57, %v7508_v17  ;;  %v3349_v28 = vand.u32 65535, %v8854_v22  ;;  %v2680_v57 = vcvt.f32.s32 %v6816_v4 }
 0x370   :  { %v3336_v14 = vsel %vm3335_vm4, %v3331_v16, inf  ;;  %v3371_v23 = vcvt.s32.f32 %v3369_v24  ;;  %v2740_v24 = vcvt.f32.s32 %v6954_v56 }
 0x371   :  { %v3711_v29 = vsel %vm8190_vm7, %v3709_v15, %v3704_v32  ;;  %3337 = vmin.xlane.f32.xlu0 %v3336_v14  ;;  %v3351_v11 = vcvt.s32.f32 %v3349_v28  ;;  %v3391_v15 = vcvt.s32.f32 %v3389_v47  ;;  %v2700_v32 = vcvt.f32.s32 %v6854_v44 }
 0x372   :  { %3517 = vmin.xlane.f32.xlu1 %v3516_v0  ;;  %v7516_v12 = vpop.xlane.xlu0 %2817  ;;  %3712 = vst [vmem:[#allocation8] ss:$4 sm:$0x1] %v3711_v29  ;;  %v3591_v0 = vcvt.s32.f32 %v3589_v39  ;;  %v2720_v29 = vcvt.f32.s32 %v6932_v6  ;;  %v2681_v28 = vshll.u32 %v2680_v57, 16  ;;  %v3411_v44 = vcvt.s32.f32 %v3409_v2  ;;  %v8857_v6 = vld [vmem:[#allocation127_spill] sm:$0xff] }
 0x373   :  { %v2658_v45 = vpop.xlane.xlu1 %2657 }
 0x377   :  { %v7520_v26 = vpop.xlane.xlu0 %3553 }
 0x378   :  { %vm3555_vm11 = vcmp.eq.f32.partialorder %v8855_v55, %v7520_v26 }
 0x379   :  { %v7524_v59 = vpop.xlane.xlu1 %3353  ;;  %v3556_v52 = vsel %vm3555_vm11, %v3551_v37, inf  ;;  %v2659_v37 = vcvt.f32.s32 %v2658_v45 }
 0x37a   :  { %vm3355_vm4 = vcmp.eq.f32.partialorder %v6996_v46, %v7524_v59  ;;  %3557 = vmin.xlane.f32.xlu1 %v3556_v52  ;;  %v2701_v52 = vshll.u32 %v2700_v32, 16 }
 0x37b   :  { %v3356_v9 = vsel %vm3355_vm4, %v3351_v11, inf  ;;  %v2721_v11 = vshll.u32 %v2720_v29, 16 }
 0x37c   :  { %3357 = vmin.xlane.f32.xlu0 %v3356_v9 }
 0x37d   :  { %v7528_v49 = vpop.xlane.xlu0 %2857 }
 0x37e   :  { %v2678_v7 = vpop.xlane.xlu1 %2677 }
 0x37f   :  { %v2679_v18 = vcvt.f32.s32 %v2678_v7 }
 0x381   :  { %v2682_v4 = vadd.s32 %v2681_v28, %v2679_v18 }
 0x382   :  { %v7532_v36 = vpop.xlane.xlu1 %3373  ;;  %v7534_v3 = vpop.xlane.xlu0 %3593 }
 0x383   :  { %vm3375_vm11 = vcmp.eq.f32.partialorder %v7051_v30, %v7532_v36  ;;  %vm3595_vm4 = vcmp.eq.f32.partialorder %v7058_v54, %v7534_v3  ;;  %v8856_v54 = vld [vmem:[#allocation112_spill] sm:$0xff]  ;;  %v3720_v45 = vrot.slane %v2682_v4, %v7335_v42 }
 0x384   :  { %v3376_v46 = vsel %vm3375_vm11, %v3371_v23, inf  ;;  %v3596_v16 = vsel %vm3595_vm4, %v3591_v0, inf  ;;  %v2660_v14 = vcvt.f32.s32 %v8856_v54 }
 0x385   :  { %3377 = vmin.xlane.f32.xlu0 %v3376_v46  ;;  %3597 = vmin.xlane.f32.xlu1 %v3596_v16  ;;  %v2741_v46 = vshll.u32 %v2740_v24, 16  ;;  %v8858_v16 = vld [vmem:[#allocation132_spill] sm:$0xff]  ;;  %v8861_v24 = vld [vmem:[#allocation134_spill] sm:$0xff] }
 0x387   :  { %v2698_v41 = vpop.xlane.xlu1 %2697 }
 0x388   :  { %v2699_v22 = vcvt.f32.s32 %v2698_v41  ;;  %v2760_v41 = vcvt.f32.s32 %v8858_v16  ;;  %v8863_v16 = vld [vmem:[#allocation128_spill] sm:$0xff] }
 0x38a   :  { %v2702_v39 = vadd.s32 %v2701_v52, %v2699_v22  ;;  %v2761_v18 = vshll.u32 %v2760_v41, 16  ;;  %v2820_v41 = vcvt.f32.s32 %v8863_v16 }
 0x38b   :  { %v7541_v62 = vpop.xlane.xlu1 %3393 }
 0x38c   :  { %vm3395_vm7 = vcmp.eq.f32.partialorder %v7096_v21, %v7541_v62  ;;  %v2661_v21 = vshll.u32 %v2660_v14, 16  ;;  %v3725_v47 = vrot.slane %v2702_v39, %v7344_v5  ;;  %v8859_v14 = vld [vmem:[#allocation170_spill] sm:$0xff] }
 0x38d   :  { %v3396_v30 = vsel %vm3395_vm7, %v3391_v15, inf  ;;  %v3449_v29 = vand.u32 65535, %v8859_v14 }
 0x38e   :  { %3397 = vmin.xlane.f32.xlu0 %v3396_v30  ;;  %v2662_v7 = vadd.s32 %v2661_v21, %v2659_v37 }
 0x38f   :  { %v2718_v25 = vpop.xlane.xlu1 %2717  ;;  %v3451_v21 = vcvt.s32.f32 %v3449_v29 }
 0x390   :  { %v2719_v55 = vcvt.f32.s32 %v2718_v25  ;;  %v3716_v57 = vrot.slane %v2662_v7, %v7330_v38 }
 0x392   :  { %v2722_v23 = vadd.s32 %v2721_v11, %v2719_v55  ;;  %v3721_v32 = vsel %vm3612_vm15, %v3720_v45, %v3716_v57  ;;  %v8860_v11 = vld [vmem:[#allocation124_spill] sm:$0xff]  ;;  %v8864_v57 = vld [vmem:[#allocation126_spill] sm:$0xff] }
 0x393   :  { %v7550_v9 = vpop.xlane.xlu1 %3413  ;;  %v3726_v25 = vsel %vm3619_vm2, %v3725_v47, %v3721_v32  ;;  %v2780_v4 = vcvt.f32.s32 %v8860_v11  ;;  %v8865_v32 = vld [vmem:[#allocation133_spill] sm:$0xff] }
 0x394   :  { %vm3415_vm7 = vcmp.eq.f32.partialorder %v8857_v6, %v7550_v9  ;;  %v3730_v56 = vrot.slane %v2722_v23, %v7351_v51  ;;  %v8862_v23 = vld [vmem:[#allocation135_spill] sm:$0xff] }
 0x395   :  { %v3416_v50 = vsel %vm3415_vm7, %v3411_v44, inf  ;;  %v2781_v45 = vshll.u32 %v2780_v4, 16 }
 0x396   :  { %3417 = vmin.xlane.f32.xlu0 %v3416_v50  ;;  %v3731_v28 = vsel %vm3626_vm9, %v3730_v56, %v3726_v25  ;;  %v3489_v50 = vand.u32 65535, %v8862_v23  ;;  %v2800_v56 = vcvt.f32.s32 %v8864_v57 }
 0x397   :  { %v2738_v0 = vpop.xlane.xlu1 %2737 }
 0x398   :  { %v2739_v15 = vcvt.f32.s32 %v2738_v0 }
 0x39a   :  { %v2742_v30 = vadd.s32 %v2741_v46, %v2739_v15  ;;  %v3491_v15 = vcvt.s32.f32 %v3489_v50 }
 0x39b   :  { %v2758_v54 = vpop.xlane.xlu1 %2757 }
 0x39c   :  { %v3735_v2 = vrot.slane %v2742_v30, %v7365_v19  ;;  %v2759_v22 = vcvt.f32.s32 %v2758_v54  ;;  %v2819_v54 = vcvt.f32.s32 %v7516_v12  ;;  %v8868_v12 = vld [vmem:[#allocation136_spill] sm:$0xff] }
 0x39e   :  { %v3736_v37 = vsel %vm3633_vm3, %v3735_v2, %v3731_v28  ;;  %v2762_v55 = vadd.s32 %v2761_v18, %v2759_v22  ;;  %v2821_v18 = vshll.u32 %v2820_v41, 16  ;;  %v8866_v2 = vld [vmem:[#allocation137_spill] sm:$0xff]  ;;  %v2801_v28 = vshll.u32 %v2800_v56, 16  ;;  %v2898_v56 = vpop.xlane.xlu0 %2897 }
 0x39f   :  { %v7566_v52 = vpop.xlane.xlu1 %3453  ;;  %v3529_v22 = vand.u32 65535, %v8866_v2 }
 0x3a0   :  { %v3740_v44 = vrot.slane %v2762_v55, %v7373_v31  ;;  %vm3455_vm11 = vcmp.eq.f32.partialorder %v8861_v24, %v7566_v52  ;;  %v2822_v55 = vadd.s32 %v2821_v18, %v2819_v54  ;;  %v8871_v18 = vld [vmem:[#allocation113_spill] sm:$0xff] }
 0x3a1   :  { %v3456_v39 = vsel %vm3455_vm11, %v3451_v21, inf  ;;  %v3531_v4 = vcvt.s32.f32 %v3529_v22 }
 0x3a2   :  { %v3741_v6 = vsel %vm3640_vm10, %v3740_v44, %v3736_v37  ;;  %3457 = vmin.xlane.f32.xlu0 %v3456_v39  ;;  %v8867_v44 = vld [vmem:[#allocation130_spill] sm:$0xff] }
 0x3a3   :  { %v2778_v7 = vpop.xlane.xlu1 %2777  ;;  %v2840_v24 = vcvt.f32.s32 %v8867_v44  ;;  %v8875_v44 = vld [vmem:[#allocation116_spill] sm:$0xff] }
 0x3a4   :  { %v2779_v0 = vcvt.f32.s32 %v2778_v7 }
 0x3a5   :  { %v2841_v16 = vshll.u32 %v2840_v24, 16 }
 0x3a6   :  { %v2782_v46 = vadd.s32 %v2781_v45, %v2779_v0  ;;  %v8869_v0 = vld [vmem:[#allocation139_spill] sm:$0xff] }
 0x3a7   :  { %v7575_v47 = vpop.xlane.xlu1 %3493 }
 0x3a8   :  { %v3745_v30 = vrot.slane %v2782_v46, %v7387_v63  ;;  %vm3495_vm4 = vcmp.eq.f32.partialorder %v8865_v32, %v7575_v47  ;;  %v3569_v46 = vand.u32 65535, %v8869_v0  ;;  %v2859_v32 = vcvt.f32.s32 %v7528_v49  ;;  %v2938_v0 = vpop.xlane.xlu0 %2937 }
 0x3a9   :  { %v3496_v14 = vsel %vm3495_vm4, %v3491_v15, inf  ;;  %v8870_v15 = vld [vmem:[#allocation121_spill] sm:$0xff]  ;;  %vm3275_vm4 = vcmp.eq.f32.partialorder %v8875_v44, %v7406_v10 }
 0x3aa   :  { %v3746_v29 = vsel %vm3647_vm5, %v3745_v30, %v3741_v6  ;;  %3497 = vmin.xlane.f32.xlu0 %v3496_v14  ;;  %v3755_v6 = vrot.slane %v2822_v55, %v7414_v27  ;;  %v2860_v57 = vcvt.f32.s32 %v8870_v15  ;;  %v3571_v14 = vcvt.s32.f32 %v3569_v46  ;;  %v8874_v55 = vld [vmem:[#allocation122_spill] sm:$0xff] }
 0x3ab   :  { %v2798_v25 = vpop.xlane.xlu1 %2797 }
 0x3ac   :  { %v2799_v37 = vcvt.f32.s32 %v2798_v25  ;;  %v3269_v25 = vand.u32 65535, %v8871_v18 }
 0x3ae   :  { %v2802_v21 = vadd.s32 %v2801_v28, %v2799_v37  ;;  %v8873_v28 = vld [vmem:[#allocation151_spill] sm:$0xff]  ;;  %v2861_v37 = vshll.u32 %v2860_v57, 16 }
 0x3af   :  { %v7584_v11 = vpop.xlane.xlu1 %3533 }
 0x3b0   :  { %v3750_v39 = vrot.slane %v2802_v21, %v7409_v58  ;;  %vm3535_vm7 = vcmp.eq.f32.partialorder %v8868_v12, %v7584_v11  ;;  %v2900_v21 = vcvt.f32.s32 %v8874_v55  ;;  %v2862_v24 = vadd.s32 %v2861_v37, %v2859_v32 }
 0x3b1   :  { %v3536_v7 = vsel %vm3535_vm7, %v3531_v4, inf  ;;  %vm8879_vm7 = vcmask 786112  }
 0x3b2   :  { %v3751_v23 = vsel %vm3654_vm8, %v3750_v39, %v3746_v29  ;;  %3537 = vmin.xlane.f32.xlu0 %v3536_v7  ;;  %v8872_v29 = vld [vmem:[#allocation171_spill] sm:$0xff]  ;;  %v2899_v39 = vcvt.f32.s32 %v2898_v56  ;;  %v8878_v56 = vld [vmem:[#allocation140_spill] sm:$0xff] }
 0x3b3   :  { %v3756_v50 = vsel %vm3661_vm0, %v3755_v6, %v3751_v23  ;;  %v2838_v45 = vpop.xlane.xlu1 %2837  ;;  %v2880_v2 = vcvt.f32.s32 %v8872_v29  ;;  %v3271_v6 = vcvt.s32.f32 %v3269_v25  ;;  %v8876_v23 = vld [vmem:[#allocation174_spill] sm:$0xff] }
 0x3b4   :  { %v2839_v41 = vcvt.f32.s32 %v2838_v45  ;;  %v2920_v45 = vcvt.f32.s32 %v8876_v23 }
 0x3b5   :  { %v2881_v7 = vshll.u32 %v2880_v2, 16  ;;  %v3276_v57 = vsel %vm3275_vm4, %v3271_v6, inf  ;;  %vm8895_vm4 = vmmov %vm8879_vm7 }
 0x3b6   :  { %v2842_v30 = vadd.s32 %v2841_v16, %v2839_v41  ;;  %v2901_v16 = vshll.u32 %v2900_v21, 16  ;;  %v8877_v41 = vld [vmem:[#allocation167_spill] sm:$0xff]  ;;  %v2921_v32 = vshll.u32 %v2920_v45, 16 }
 0x3b7   :  { %v7596_v54 = vpop.xlane.xlu1 %3573  ;;  %v2940_v15 = vcvt.f32.s32 %v8877_v41 }
 0x3b8   :  { %v3760_v22 = vrot.slane %v2842_v30, %v7421_v34  ;;  %vm3575_vm11 = vcmp.eq.f32.partialorder %v8873_v28, %v7596_v54  ;;  %v2902_v18 = vadd.s32 %v2901_v16, %v2899_v39  ;;  %v8880_v39 = vld [vmem:[#allocation150_spill] sm:$0xff] }
 0x3b9   :  { %v3576_v4 = vsel %vm3575_vm11, %v3571_v14, inf  ;;  %v3765_v14 = vrot.slane %v2862_v24, %v7429_v35  ;;  %v2941_v28 = vshll.u32 %v2940_v15, 16  ;;  %v2980_v6 = vcvt.f32.s32 %v8880_v39 }
 0x3ba   :  { %v3761_v49 = vsel %vm3668_vm14, %v3760_v22, %v3756_v50  ;;  %3577 = vmin.xlane.f32.xlu0 %v3576_v4  ;;  %v2939_v50 = vcvt.f32.s32 %v2938_v0  ;;  %v2960_v22 = vcvt.f32.s32 %v8878_v56  ;;  %v3775_v4 = vrot.slane %v2902_v18, %v7442_v13  ;;  %v8881_v0 = vld [vmem:[#allocation125_spill] sm:$0xff]  ;;  %v8882_v18 = vld [vmem:[#allocation144_spill] sm:$0xff] }
 0x3bb   :  { %v2878_v12 = vpop.xlane.xlu1 %2877  ;;  %v3766_v37 = vsel %vm3675_vm6, %v3765_v14, %v3761_v49  ;;  %v2981_v14 = vshll.u32 %v2980_v6, 16  ;;  %vm8883_vm11 = vcmask 1048512  }
 0x3bc   :  { %v2879_v46 = vcvt.f32.s32 %v2878_v12  ;;  %v2942_v44 = vadd.s32 %v2941_v28, %v2939_v50  ;;  %v2961_v24 = vshll.u32 %v2960_v22, 16  ;;  %v3020_v50 = vcvt.f32.s32 %v8882_v18 }
 0x3be   :  { %v2882_v30 = vadd.s32 %v2881_v7, %v2879_v46  ;;  %3277 = vmin.xlane.f32.xlu0 %v3276_v57  ;;  %v2998_v7 = vpop.xlane.xlu0 %2997  ;;  %v3000_v46 = vcvt.f32.s32 %v8881_v0  ;;  %v3785_v15 = vrot.slane %v2942_v44, %v7463_v1 }
 0x3bf   :  { %v2918_v29 = vpop.xlane.xlu1 %2917  ;;  %v2999_v57 = vcvt.f32.s32 %v2998_v7 }
 0x3c0   :  { %v3770_v25 = vrot.slane %v2882_v30, %v7434_v40  ;;  %v2919_v2 = vcvt.f32.s32 %v2918_v29  ;;  %v3001_v56 = vshll.u32 %v3000_v46, 16 }
 0x3c2   :  { %v3771_v55 = vsel %vm8879_vm7, %v3770_v25, %v3766_v37  ;;  %v2922_v21 = vadd.s32 %v2921_v32, %v2919_v2  ;;  %v3002_v28 = vadd.s32 %v3001_v56, %v2999_v57 }
 0x3c3   :  { %v2958_v12 = vpop.xlane.xlu1 %2957  ;;  %v3776_v16 = vsel %vm3689_vm13, %v3775_v4, %v3771_v55  ;;  %v3021_v55 = vshll.u32 %v3020_v50, 16 }
 0x3c4   :  { %v3780_v23 = vrot.slane %v2922_v21, %v7455_v33  ;;  %v2959_v45 = vcvt.f32.s32 %v2958_v12  ;;  %v8884_v21 = vld [vmem:[#allocation162_spill] sm:$0xff]  ;;  %v3801_v39 = vrot.slane %v3002_v28, %v7335_v42 }
 0x3c5   :  { %v3040_v4 = vcvt.f32.s32 %v8884_v21 }
 0x3c6   :  { %v3781_v49 = vsel %vm3696_vm1, %v3780_v23, %v3776_v16  ;;  %v2962_v41 = vadd.s32 %v2961_v24, %v2959_v45  ;;  %v8885_v23 = vld [vmem:[#allocation180_spill] sm:$0xff] }
 0x3c7   :  { %v2978_v30 = vpop.xlane.xlu1 %2977  ;;  %v3786_v22 = vsel %vm3703_vm12, %v3785_v15, %v3781_v49  ;;  %v3041_v7 = vshll.u32 %v3040_v4, 16  ;;  %v3060_v45 = vcvt.f32.s32 %v8885_v23 }
 0x3c8   :  { %v3790_v29 = vrot.slane %v2962_v41, %v7497_v8  ;;  %v2979_v32 = vcvt.f32.s32 %v2978_v30  ;;  %v8886_v30 = vld [vmem:[#allocation183_spill] sm:$0xff] }
 0x3c9   :  { %v3061_v57 = vshll.u32 %v3060_v45, 16 }
 0x3ca   :  { %v3791_v25 = vsel %vm8883_vm11, %v3790_v29, %v3786_v22  ;;  %v2982_v2 = vadd.s32 %v2981_v14, %v2979_v32  ;;  %v3080_v14 = vcvt.f32.s32 %v8886_v30  ;;  %v3118_v29 = vpop.xlane.xlu0 %3117 }
 0x3cb   :  { %3793 = vst [vmem:[#allocation8 + $0x1] ss:$4 sm:$0x1] %v3791_v25  ;;  %v3018_v37 = vpop.xlane.xlu1 %3017 }
 0x3cc   :  { %v3019_v44 = vcvt.f32.s32 %v3018_v37  ;;  %v3797_v12 = vrot.slane %v2982_v2, %v7330_v38  ;;  %v3081_v25 = vshll.u32 %v3080_v14, 16  ;;  %v3100_v2 = vcvt.f32.s32 %v7280_v43 }
 0x3ce   :  { %v3022_v24 = vadd.s32 %v3021_v55, %v3019_v44  ;;  %v3802_v16 = vsel %vm3612_vm15, %v3801_v39, %v3797_v12  ;;  %v8887_v55 = vld [vmem:[#allocation138_spill] sm:$0xff]  ;;  %v3158_v4 = vpop.xlane.xlu0 %3157 }
 0x3cf   :  { %v3038_v6 = vpop.xlane.xlu1 %3037  ;;  %v3120_v21 = vcvt.f32.s32 %v8887_v55 }
 0x3d0   :  { %v3806_v0 = vrot.slane %v3022_v24, %v7344_v5  ;;  %v3039_v46 = vcvt.f32.s32 %v3038_v6  ;;  %v3119_v24 = vcvt.f32.s32 %v3118_v29  ;;  %v3101_v6 = vshll.u32 %v3100_v2, 16 }
 0x3d2   :  { %v3807_v49 = vsel %vm3619_vm2, %v3806_v0, %v3802_v16  ;;  %v3042_v41 = vadd.s32 %v3041_v7, %v3039_v46  ;;  %v8888_v7 = vld [vmem:[#allocation163_spill] sm:$0xff]  ;;  %v3121_v46 = vshll.u32 %v3120_v21, 16  ;;  %v8889_v16 = vld [vmem:[#allocation141_spill] sm:$0xff] }
 0x3d3   :  { %v3058_v15 = vpop.xlane.xlu1 %3057  ;;  %v3140_v23 = vcvt.f32.s32 %v8888_v7  ;;  %v3160_v43 = vcvt.f32.s32 %v8889_v16 }
 0x3d4   :  { %v3811_v18 = vrot.slane %v3042_v41, %v7351_v51  ;;  %v3059_v50 = vcvt.f32.s32 %v3058_v15  ;;  %v3122_v14 = vadd.s32 %v3121_v46, %v3119_v24 }
 0x3d5   :  { %v3141_v29 = vshll.u32 %v3140_v23, 16  ;;  %v3161_v2 = vshll.u32 %v3160_v43, 16  ;;  %v8893_v23 = vld [vmem:[#allocation155_spill] sm:$0xff] }
 0x3d6   :  { %v3812_v32 = vsel %vm3626_vm9, %v3811_v18, %v3807_v49  ;;  %v3062_v56 = vadd.s32 %v3061_v57, %v3059_v50  ;;  %v3198_v49 = vpop.xlane.xlu0 %3197  ;;  %v8890_v57 = vld [vmem:[#allocation186_spill] sm:$0xff]  ;;  %v3159_v18 = vcvt.f32.s32 %v3158_v4 }
 0x3d7   :  { %v3078_v22 = vpop.xlane.xlu1 %3077  ;;  %v3200_v30 = vcvt.f32.s32 %v8890_v57 }
 0x3d8   :  { %v3816_v28 = vrot.slane %v3062_v56, %v7365_v19  ;;  %v3079_v37 = vcvt.f32.s32 %v3078_v22  ;;  %v3162_v24 = vadd.s32 %v3161_v2, %v3159_v18  ;;  %v8894_v18 = vld [vmem:[#allocation18_spill] sm:$0xff] }
 0x3da   :  { %v3817_v44 = vsel %vm3633_vm3, %v3816_v28, %v3812_v32  ;;  %v3082_v12 = vadd.s32 %v3081_v25, %v3079_v37  ;;  %v8891_v32 = vld [vmem:[#allocation13_spill] sm:$0xff]  ;;  %v3199_v28 = vcvt.f32.s32 %v3198_v49  ;;  %v3238_v55 = vpop.xlane.xlu0 %3237 }
 0x3db   :  { %v3098_v39 = vpop.xlane.xlu1 %3097  ;;  %v3180_v56 = vcvt.f32.s32 %v8891_v32  ;;  %v3239_v43 = vcvt.f32.s32 %v3238_v55 }
 0x3dc   :  { %v3821_v45 = vrot.slane %v3082_v12, %v7373_v31  ;;  %v3099_v0 = vcvt.f32.s32 %v3098_v39  ;;  %v3201_v12 = vshll.u32 %v3200_v30, 16  ;;  %v3841_v30 = vrot.slane %v3162_v24, %v7421_v34 }
 0x3dd   :  { %v3181_v7 = vshll.u32 %v3180_v56, 16 }
 0x3de   :  { %v3822_v41 = vsel %vm3640_vm10, %v3821_v45, %v3817_v44  ;;  %v3102_v15 = vadd.s32 %v3101_v6, %v3099_v0  ;;  %v8892_v44 = vld [vmem:[#allocation142_spill] sm:$0xff]  ;;  %v3831_v6 = vrot.slane %v3122_v14, %v7409_v58  ;;  %v3220_v45 = vcvt.f32.s32 %v8893_v23 }
 0x3df   :  { %v3138_v50 = vpop.xlane.xlu1 %3137  ;;  %v3240_v39 = vcvt.f32.s32 %v8892_v44  ;;  %v3202_v16 = vadd.s32 %v3201_v12, %v3199_v28 }
 0x3e0   :  { %v3826_v22 = vrot.slane %v3102_v15, %v7387_v63  ;;  %v3139_v25 = vcvt.f32.s32 %v3138_v50  ;;  %v3221_v14 = vshll.u32 %v3220_v45, 16 }
 0x3e1   :  { %v3241_v57 = vshll.u32 %v3240_v39, 16 }
 0x3e2   :  { %v3827_v37 = vsel %vm3647_vm5, %v3826_v22, %v3822_v41  ;;  %v3142_v21 = vadd.s32 %v3141_v29, %v3139_v25  ;;  %v3260_v29 = vcvt.f32.s32 %v8894_v18  ;;  %v3851_v22 = vrot.slane %v3202_v16, %v7434_v40 }
 0x3e3   :  { %v3178_v4 = vpop.xlane.xlu1 %3177  ;;  %v3832_v49 = vsel %vm3654_vm8, %v3831_v6, %v3827_v37  ;;  %v3242_v25 = vadd.s32 %v3241_v57, %v3239_v43 }
 0x3e4   :  { %v3836_v0 = vrot.slane %v3142_v21, %v7414_v27  ;;  %v3179_v46 = vcvt.f32.s32 %v3178_v4  ;;  %v3261_v12 = vshll.u32 %v3260_v29, 16 }
 0x3e5   :  { %v3861_v6 = vrot.slane %v3242_v25, %v7455_v33 }
 0x3e6   :  { %v3837_v41 = vsel %vm3661_vm0, %v3836_v0, %v3832_v49  ;;  %v3182_v15 = vadd.s32 %v3181_v7, %v3179_v46  ;;  %v3300_v7 = vcvt.f32.s32 %v7423_v53  ;;  %v3320_v46 = vcvt.f32.s32 %v7477_v20 }
 0x3e7   :  { %v3218_v50 = vpop.xlane.xlu1 %3217  ;;  %v3842_v2 = vsel %vm3668_vm14, %v3841_v30, %v3837_v41 }
 0x3e8   :  { %v3846_v32 = vrot.slane %v3182_v15, %v7429_v35  ;;  %v3219_v56 = vcvt.f32.s32 %v3218_v50  ;;  %v3301_v49 = vshll.u32 %v3300_v7, 16  ;;  %v3321_v15 = vshll.u32 %v3320_v46, 16 }
 0x3ea   :  { %v3847_v28 = vsel %vm3675_vm6, %v3846_v32, %v3842_v2  ;;  %v3222_v37 = vadd.s32 %v3221_v14, %v3219_v56  ;;  %v3340_v14 = vcvt.f32.s32 %v7508_v17 }
 0x3eb   :  { %v3852_v55 = vsel %vm8895_vm4, %v3851_v22, %v3847_v28  ;;  %v3258_v21 = vpop.xlane.xlu1 %3257  ;;  %v3360_v28 = vcvt.f32.s32 %v7524_v59 }
 0x3ec   :  { %v3856_v44 = vrot.slane %v3222_v37, %v7442_v13  ;;  %v3259_v39 = vcvt.f32.s32 %v3258_v21  ;;  %v3341_v20 = vshll.u32 %v3340_v14, 16 }
 0x3ee   :  { %v3857_v24 = vsel %vm3689_vm13, %v3856_v44, %v3852_v55  ;;  %v3262_v4 = vadd.s32 %v3261_v12, %v3259_v39  ;;  %v3361_v55 = vshll.u32 %v3360_v28, 16 }
 0x3ef   :  { %v3862_v23 = vsel %vm3696_vm1, %v3861_v6, %v3857_v24  ;;  %v3298_v45 = vpop.xlane.xlu1 %3297 }
 0x3f0   :  { %v3866_v0 = vrot.slane %v3262_v4, %v7463_v1  ;;  %v3299_v16 = vcvt.f32.s32 %v3298_v45 }
 0x3f2   :  { %v7668_v43 = vsel %vm3703_vm12, %v3866_v0, %v3862_v23  ;;  %v3318_v41 = vpop.xlane.xlu0 %3317  ;;  %v3302_v57 = vadd.s32 %v3301_v49, %v3299_v16 }
 0x3f3   :  { %v3319_v30 = vcvt.f32.s32 %v3318_v41  ;;  %v3438_v0 = vpop.xlane.xlu1 %3437 }
 0x3f4   :  { %v3878_v53 = vrot.slane %v3302_v57, %v7330_v38  ;;  %v3380_v38 = vcvt.f32.s32 %v7532_v36  ;;  %v3440_v36 = vcvt.f32.s32 %v7449_v61  ;;  %v3439_v49 = vcvt.f32.s32 %v3438_v0 }
 0x3f5   :  { %v3322_v50 = vadd.s32 %v3321_v15, %v3319_v30 }
 0x3f6   :  { %v3381_v39 = vshll.u32 %v3380_v38, 16  ;;  %v3441_v15 = vshll.u32 %v3440_v36, 16 }
 0x3f7   :  { %v3882_v18 = vrot.slane %v3322_v50, %v7335_v42 }
 0x3f8   :  { %v3442_v30 = vadd.s32 %v3441_v15, %v3439_v49 }
 0x3f9   :  { %v3883_v29 = vsel %vm3612_vm15, %v3882_v18, %v3878_v53  ;;  %v3478_v18 = vpop.xlane.xlu1 %3477  ;;  %vm8896_vm15 = vmmov %vm8895_vm4 }
 0x3fa   :  { %v3338_v32 = vpop.xlane.xlu0 %3337  ;;  %v3912_v53 = vrot.slane %v3442_v30, %v7409_v58  ;;  %v3500_v58 = vcvt.f32.s32 %v7575_v47  ;;  %v3540_v47 = vcvt.f32.s32 %v7584_v11  ;;  %v3580_v11 = vcvt.f32.s32 %v7596_v54 }
 0x3fb   :  { %v3339_v56 = vcvt.f32.s32 %v3338_v32  ;;  %v3479_v32 = vcvt.f32.s32 %v3478_v18 }
 0x3fd   :  { %v3342_v22 = vadd.s32 %v3341_v20, %v3339_v56  ;;  %v3518_v28 = vpop.xlane.xlu1 %3517 }
 0x3ff   :  { %v3887_v25 = vrot.slane %v3342_v22, %v7344_v5  ;;  %v3400_v5 = vcvt.f32.s32 %v7541_v62 }
 0x401   :  { %v3888_v2 = vsel %vm3619_vm2, %v3887_v25, %v3883_v29  ;;  %v3401_v23 = vshll.u32 %v3400_v5, 16  ;;  %v3460_v29 = vcvt.f32.s32 %v7566_v52  ;;  %vm8897_vm2 = vmmov %vm8883_vm11 }
 0x403   :  { %v3461_v22 = vshll.u32 %v3460_v29, 16 }
 0x405   :  { %v3358_v37 = vpop.xlane.xlu0 %3357 }
 0x406   :  { %v3359_v21 = vcvt.f32.s32 %v3358_v37 }
 0x408   :  { %v3362_v17 = vadd.s32 %v3361_v55, %v3359_v21  ;;  %v3519_v21 = vcvt.f32.s32 %v3518_v28 }
 0x40a   :  { %v3892_v42 = vrot.slane %v3362_v17, %v7351_v51  ;;  %v3420_v51 = vcvt.f32.s32 %v7550_v9  ;;  %v3480_v9 = vcvt.f32.s32 %v7470_v60 }
 0x40c   :  { %v3893_v12 = vsel %vm3626_vm9, %v3892_v42, %v3888_v2  ;;  %v3421_v57 = vshll.u32 %v3420_v51, 16  ;;  %v3481_v20 = vshll.u32 %v3480_v9, 16  ;;  %vm8898_vm9 = vmmov %vm8897_vm2 }
 0x40e   :  { %v3378_v44 = vpop.xlane.xlu0 %3377  ;;  %v3482_v2 = vadd.s32 %v3481_v20, %v3479_v32 }
 0x40f   :  { %v3379_v6 = vcvt.f32.s32 %v3378_v44 }
 0x410   :  { %v3922_v60 = vrot.slane %v3482_v2, %v7421_v34 }
 0x411   :  { %v3382_v24 = vadd.s32 %v3381_v39, %v3379_v6  ;;  %v3558_v6 = vpop.xlane.xlu1 %3557 }
 0x412   :  { %v3559_v5 = vcvt.f32.s32 %v3558_v6 }
 0x413   :  { %v3897_v4 = vrot.slane %v3382_v24, %v7365_v19 }
 0x415   :  { %v3898_v59 = vsel %vm3633_vm3, %v3897_v4, %v3893_v12  ;;  %v3501_v12 = vshll.u32 %v3500_v58, 16  ;;  %v3598_v36 = vpop.xlane.xlu1 %3597 }
 0x417   :  { %v3398_v7 = vpop.xlane.xlu0 %3397 }
 0x418   :  { %v3399_v45 = vcvt.f32.s32 %v3398_v7 }
 0x41a   :  { %v3402_v46 = vadd.s32 %v3401_v23, %v3399_v45  ;;  %v3541_v45 = vshll.u32 %v3540_v47, 16 }
 0x41c   :  { %v3902_v16 = vrot.slane %v3402_v46, %v7373_v31 }
 0x41e   :  { %v3903_v41 = vsel %vm3640_vm10, %v3902_v16, %v3898_v59  ;;  %v3599_v16 = vcvt.f32.s32 %v3598_v36 }
 0x41f   :  { %v3418_v62 = vpop.xlane.xlu0 %3417 }
 0x420   :  { %v3419_v19 = vcvt.f32.s32 %v3418_v62 }
 0x422   :  { %v3422_v50 = vadd.s32 %v3421_v57, %v3419_v19  ;;  %v3280_v57 = vcvt.f32.s32 %v7406_v10  ;;  %v3581_v19 = vshll.u32 %v3580_v11, 16 }
 0x424   :  { %v3907_v14 = vrot.slane %v3422_v50, %v7387_v63  ;;  %v3520_v63 = vcvt.f32.s32 %v7501_v48  ;;  %v3560_v48 = vcvt.f32.s32 %v7520_v26  ;;  %v3600_v26 = vcvt.f32.s32 %v7534_v3 }
 0x426   :  { %v3908_v61 = vsel %vm3647_vm5, %v3907_v14, %v3903_v41  ;;  %v3521_v52 = vshll.u32 %v3520_v63, 16  ;;  %v3561_v59 = vshll.u32 %v3560_v48, 16  ;;  %v3601_v41 = vshll.u32 %v3600_v26, 16 }
 0x427   :  { %v3913_v31 = vsel %vm3654_vm8, %v3912_v53, %v3908_v61  ;;  %v3281_v53 = vshll.u32 %v3280_v57, 16 }
 0x428   :  { %v3522_v39 = vadd.s32 %v3521_v52, %v3519_v21  ;;  %v3562_v46 = vadd.s32 %v3561_v59, %v3559_v5  ;;  %v3602_v50 = vadd.s32 %v3601_v41, %v3599_v16 }
 0x42a   :  { %v3932_v34 = vrot.slane %v3522_v39, %v7434_v40  ;;  %v3942_v40 = vrot.slane %v3562_v46, %v7455_v33  ;;  %v3952_v33 = vrot.slane %v3602_v50, %v7497_v8 }
 0x42b   :  { %v3458_v56 = vpop.xlane.xlu0 %3457 }
 0x42c   :  { %v3459_v25 = vcvt.f32.s32 %v3458_v56 }
 0x42e   :  { %v3462_v37 = vadd.s32 %v3461_v22, %v3459_v25 }
 0x430   :  { %v3917_v55 = vrot.slane %v3462_v37, %v7414_v27 }
 0x432   :  { %v3918_v17 = vsel %vm3661_vm0, %v3917_v55, %v3913_v31 }
 0x433   :  { %v3498_v38 = vpop.xlane.xlu0 %3497  ;;  %v3923_v42 = vsel %vm3668_vm14, %v3922_v60, %v3918_v17 }
 0x434   :  { %v3499_v44 = vcvt.f32.s32 %v3498_v38 }
 0x436   :  { %v3502_v24 = vadd.s32 %v3501_v12, %v3499_v44 }
 0x438   :  { %v3927_v27 = vrot.slane %v3502_v24, %v7429_v35 }
 0x43a   :  { %v3928_v4 = vsel %vm3675_vm6, %v3927_v27, %v3923_v42 }
 0x43b   :  { %v3538_v7 = vpop.xlane.xlu0 %3537  ;;  %v3933_v23 = vsel %vm8896_vm15, %v3932_v34, %v3928_v4 }
 0x43c   :  { %v3539_v0 = vcvt.f32.s32 %v3538_v7 }
 0x43e   :  { %v3542_v51 = vadd.s32 %v3541_v45, %v3539_v0 }
 0x440   :  { %v3937_v35 = vrot.slane %v3542_v51, %v7442_v13 }
 0x442   :  { %v3938_v49 = vsel %vm3689_vm13, %v3937_v35, %v3933_v23 }
 0x443   :  { %v3578_v15 = vpop.xlane.xlu0 %3577  ;;  %v3943_v62 = vsel %vm3696_vm1, %v3942_v40, %v3938_v49 }
 0x444   :  { %v3579_v30 = vcvt.f32.s32 %v3578_v15 }
 0x446   :  { %v3582_v14 = vadd.s32 %v3581_v19, %v3579_v30 }
 0x447   :  { %v3278_v3 = vpop.xlane.xlu0 %3277 }
 0x448   :  { %v3947_v54 = vrot.slane %v3582_v14, %v7463_v1  ;;  %v3279_v13 = vcvt.f32.s32 %v3278_v3 }
 0x44a   :  { %v3948_v18 = vsel %vm3703_vm12, %v3947_v54, %v3943_v62  ;;  %v3282_v61 = vadd.s32 %v3281_v53, %v3279_v13 }
 0x44b   :  { %v3953_v9 = vsel %vm8897_vm2, %v3952_v33, %v3948_v18 }
 0x44c   :  { %v3871_v10 = vrot.slane %v3282_v61, %v7497_v8  ;;  %3955 = vst [vmem:[#allocation8 + $0x3] ss:$4 sm:$0x1] %v3953_v9 }
 0x44e   :  { %v3872_v31 = vsel %vm8898_vm9, %v3871_v10, %v7668_v43 }
 0x44f   :  { %3874 = vst [vmem:[#allocation8 + $0x2] ss:$4 sm:$0x1] %v3872_v31 }
 0x450   :  { %4051 = shalt.err (!%p4048_p5)
}
 0x451   :  { %3965 = dma.vmem_to_hbm [thread:$0]  %s3963_s2, 64, %s7725_s3, [#allocation4]  }
 0x452   :  { %4064 = dma.done.wait [#allocation4], 64  }
 0x453   :  { %4065 = vsyncadd [#allocation4], 4294967232 }
 0x454   :  { %3969 = vsyncpa [#allocation3], 1 }
 0x455   :  { %3970 = vsyncpa [#allocation6], 1 }
 0x456   :  { %3971 = vsyncpa [#allocation4], 1 }

</bundles_post_ra>
